<compile_context>
chip_gen: v5e
topology: v5e:2x2
jax: 0.10.0
libtpu: 0.0.40
codegen_flags: <defaults>
</compile_context>

<pallas_src>
import functools
import math

import jax
import jax.numpy as jnp
from jax.experimental import pallas as pl
from jax.experimental.pallas import tpu as pltpu

_LANE = 128  # padded (lane-dense) model width

# Stacked-weight key ordering (maps param dicts <-> kernel positional refs).
ENC_KEYS = ("wqkv", "bqkv", "wo", "bo", "g1", "be1",
            "w1", "b1", "w2", "b2", "g2", "be2")
DEC_KEYS = ("sa_wqkv", "sa_bqkv", "sa_wo", "sa_bo", "g1", "be1",
            "ca_wq", "ca_bq", "ca_wo", "ca_bo", "g2", "be2",
            "w1", "b1", "w2", "b2", "g3", "be3")


# ----------------------------------------------------------------------------
# Shared math helpers (pure jnp; used inside the kernels AND by the XLA
# reference, so the reference checks exactly the math the kernels run).
# ----------------------------------------------------------------------------

def _lane_mask(dp, d):
    lane = jax.lax.broadcasted_iota(jnp.int32, (1, dp), 1)
    return (lane < d).astype(jnp.float32)


def _head_masks(d, nhead):
    dh = d // nhead
    lane = jax.lax.broadcasted_iota(jnp.int32, (1, d), 1)
    return [((lane >= h * dh) & (lane < (h + 1) * dh)).astype(jnp.float32)
            for h in range(nhead)]


def _causal_bias(n):
    # nn.Transformer.generate_square_subsequent_mask (large-negative finite
    # instead of -inf: identical after softmax, NaN-safe).
    row = jax.lax.broadcasted_iota(jnp.int32, (n, n), 0)
    col = jax.lax.broadcasted_iota(jnp.int32, (n, n), 1)
    return jnp.where(col > row, -1e30, 0.0).astype(jnp.float32)


def _masked_layer_norm(x, g, b, lane_mask, d, eps=1e-5):
    # x: (S, Dp) with padded lanes == 0.  Statistics over the real d lanes
    # only; g/b are zero-padded so padded lanes stay exactly 0 on output.
    mu = jnp.sum(x, axis=-1, keepdims=True) * (1.0 / d)
    xc = (x - mu) * lane_mask
    var = jnp.sum(xc * xc, axis=-1, keepdims=True) * (1.0 / d)
    return xc * jax.lax.rsqrt(var + eps) * g + b


def _softmax_rows(s, approx):
    s = s - jnp.max(s, axis=-1, keepdims=True)
    p = jnp.exp(s)
    z = jnp.sum(p, axis=-1, keepdims=True)
    if approx:
        return p * pl.reciprocal(z, approx=True)   # EUP slot instead of VALU divide
    return p / z


def _attend(q, kt, v, bias, head_masks, d, approx):
    """q: (Sq, d), kt: (d, Sk) pre-transposed, v: (Sk, d).
    Per-head scores via disjoint lane masks (block-diagonal trick): no lane
    slicing, no concat-heads relayout; head outputs sum into (Sq, d)."""
    dh = d // len(head_masks)
    scale = 1.0 / math.sqrt(dh)
    out = None
    for hm in head_masks:
        s = jnp.dot((q * scale) * hm, kt, preferred_element_type=jnp.float32)
        if bias is not None:
            s = s + bias
        p = _softmax_rows(s, approx)
        o = jnp.dot(p, v, preferred_element_type=jnp.float32) * hm
        out = o if out is None else out + o
    return out


def _self_attention(x, wqkv, bqkv, wo, bo, bias, head_masks, d, approx):
    # ONE fused (S, Dp) x (Dp, 3d) projection; ONE (S, d) x (d, Dp) output proj.
    qkv = jnp.dot(x.astype(wqkv.dtype), wqkv,
                  preferred_element_type=jnp.float32) + bqkv
    q = qkv[:, 0:d]
    kt = jnp.transpose(qkv[:, d:2 * d])          # single transpose per source
    v = qkv[:, 2 * d:3 * d]
    heads = _attend(q, kt, v, bias, head_masks, d, approx)
    return jnp.dot(heads.astype(wo.dtype), wo,
                   preferred_element_type=jnp.float32) + bo


def _cross_attention(x, kt_mem, v_mem, wq, bq, wo, bo, head_masks, d, approx):
    q = jnp.dot(x.astype(wq.dtype), wq, preferred_element_type=jnp.float32) + bq
    heads = _attend(q, kt_mem, v_mem, None, head_masks, d, approx)
    return jnp.dot(heads.astype(wo.dtype), wo,
                   preferred_element_type=jnp.float32) + bo


def _ffn(x, w1, b1, w2, b2):
    h = jnp.dot(x.astype(w1.dtype), w1, preferred_element_type=jnp.float32) + b1
    h = jnp.maximum(h, 0.0)
    return jnp.dot(h.astype(w2.dtype), w2, preferred_element_type=jnp.float32) + b2


def _encoder_layer(x, lw, bias, lane_mask, head_masks, d, approx):
    a = _self_attention(x, lw["wqkv"], lw["bqkv"], lw["wo"], lw["bo"],
                        bias, head_masks, d, approx)
    x = _masked_layer_norm(x + a, lw["g1"], lw["be1"], lane_mask, d)
    f = _ffn(x, lw["w1"], lw["b1"], lw["w2"], lw["b2"])
    return _masked_layer_norm(x + f, lw["g2"], lw["be2"], lane_mask, d)


def _decoder_layer(x, lw, kt_mem, v_mem, bias, lane_mask, head_masks, d, approx):
    sa = _self_attention(x, lw["sa_wqkv"], lw["sa_bqkv"], lw["sa_wo"], lw["sa_bo"],
                         bias, head_masks, d, approx)
    x = _masked_layer_norm(x + sa, lw["g1"], lw["be1"], lane_mask, d)
    ca = _cross_attention(x, kt_mem, v_mem, lw["ca_wq"], lw["ca_bq"],
                          lw["ca_wo"], lw["ca_bo"], head_masks, d, approx)
    x = _masked_layer_norm(x + ca, lw["g2"], lw["be2"], lane_mask, d)
    f = _ffn(x, lw["w1"], lw["b1"], lw["w2"], lw["b2"])
    return _masked_layer_norm(x + f, lw["g3"], lw["be3"], lane_mask, d)


# ----------------------------------------------------------------------------
# Kernels
# ----------------------------------------------------------------------------

def _encoder_kernel(*refs, d_model, nhead):
    """Full encoder stack + cross-attn K/V precompute for every decoder layer."""
    n_e = len(ENC_KEYS)
    src_ref = refs[0]
    e = dict(zip(ENC_KEYS, refs[1:1 + n_e]))
    ca_wkv_ref = refs[1 + n_e]
    ca_bkv_ref = refs[2 + n_e]
    mem_ref = refs[3 + n_e]
    kt_ref = refs[4 + n_e]
    v_ref = refs[5 + n_e]

    bs, ls, dp = src_ref.shape
    nlayers_e = e["wqkv"].shape[0]
    nlayers_d = ca_wkv_ref.shape[0]

    bias = _causal_bias(ls)                 # module applies a causal src_mask
    lane_mask = _lane_mask(dp, d_model)
    head_masks = _head_masks(d_model, nhead)

    # Per-layer weight loads hoisted out of the batch loop.
    layers = [{k: e[k][l] for k in ENC_KEYS} for l in range(nlayers_e)]

    for b in range(bs):
        x = src_ref[b]                      # (Ls, Dp), padded lanes are zero
        for lw in layers:
            x = _encoder_layer(x, lw, bias, lane_mask, head_masks, d_model,
                               approx=True)
        mem_ref[b] = x                      # lane-dense (Ls, 128) store
        if b == 0:
            # memory_ = memory[0].repeat(B,1,1): cross-attn K/V are batch
            # invariant, so compute them ONCE per decoder layer here.
            for l in range(nlayers_d):
                kv = (jnp.dot(x.astype(ca_wkv_ref.dtype), ca_wkv_ref[l],
                              preferred_element_type=jnp.float32)
                      + ca_bkv_ref[l])                       # (Ls, 2d)
                kt_ref[l] = jnp.transpose(kv[:, :d_model])   # pre-transposed K
                v_ref[l] = kv[:, d_model:2 * d_model]


def _decoder_kernel(*refs, d_model, nhead):
    """One target-batch element per grid step (parallel across TensorCores)."""
    n_d = len(DEC_KEYS)
    tgt_ref, kt_ref, v_ref = refs[0], refs[1], refs[2]
    w = dict(zip(DEC_KEYS, refs[3:3 + n_d]))
    out_ref = refs[3 + n_d]

    _, lt, dp = tgt_ref.shape
    nlayers_d = w["sa_wqkv"].shape[0]

    bias = _causal_bias(lt)
    lane_mask = _lane_mask(dp, d_model)
    head_masks = _head_masks(d_model, nhead)

    x0 = tgt_ref[0]                          # (Lt, Dp)
    x = x0
    for l in range(nlayers_d):
        lw = {k: w[k][l] for k in DEC_KEYS}
        x = _decoder_layer(x, lw, kt_ref[l], v_ref[l], bias, lane_mask,
                           head_masks, d_model, approx=True)
    out_ref[0] = x0 + x                      # output = tgt + decoder(...); lane-dense store


# ----------------------------------------------------------------------------
# Pallas wrappers
# ----------------------------------------------------------------------------

def _full_spec(shape):
    n = len(shape)
    return pl.BlockSpec(shape, lambda: (0,) * n)


def _replicated_spec(shape):
    n = len(shape)
    return pl.BlockSpec(shape, lambda b: (0,) * n)


def transformer_pallas(packed, tgt_p, src_p, *, d_model, nhead):
    enc, dec = packed["enc"], packed["dec"]
    bs, ls, dp = src_p.shape
    bt, lt, _ = tgt_p.shape
    nlayers_d = dec["sa_wqkv"].shape[0]

    # -------- encoder stack (+ cross-attn K/V precompute): one call ---------
    enc_args = [src_p] + [enc[k] for k in ENC_KEYS] + [dec["ca_wkv"], dec["ca_bkv"]]
    memory_p, kt_mem, v_mem = pl.pallas_call(
        functools.partial(_encoder_kernel, d_model=d_model, nhead=nhead),
        in_specs=[_full_spec(a.shape) for a in enc_args],
        out_specs=(_full_spec((bs, ls, dp)),
                   _full_spec((nlayers_d, d_model, ls)),
                   _full_spec((nlayers_d, ls, d_model))),
        out_shape=(jax.ShapeDtypeStruct((bs, ls, dp), jnp.float32),
                   jax.ShapeDtypeStruct((nlayers_d, d_model, ls), jnp.float32),
                   jax.ShapeDtypeStruct((nlayers_d, ls, d_model), jnp.float32)),
    )(*enc_args)

    # -------- decoder stack: grid over target batch, parallel (v7x 2 TCs) ----
    dec_args = [tgt_p, kt_mem, v_mem] + [dec[k] for k in DEC_KEYS]
    in_specs = ([pl.BlockSpec((1, lt, dp), lambda b: (b, 0, 0)),
                 _replicated_spec(kt_mem.shape),
                 _replicated_spec(v_mem.shape)]
                + [_replicated_spec(dec[k].shape) for k in DEC_KEYS])
    output_p = pl.pallas_call(
        functools.partial(_decoder_kernel, d_model=d_model, nhead=nhead),
        grid=(bt,),
        in_specs=in_specs,
        out_specs=pl.BlockSpec((1, lt, dp), lambda b: (b, 0, 0)),
        out_shape=jax.ShapeDtypeStruct((bt, lt, dp), jnp.float32),
        compiler_params=pltpu.CompilerParams(
            dimension_semantics=("parallel",)),
    )(*dec_args)
    return memory_p, output_p


# ----------------------------------------------------------------------------
# Model-level glue (plain JAX)
# ----------------------------------------------------------------------------

def _pad_dim(x, axis, n):
    pads = [(0, 0)] * x.ndim
    ax = axis % x.ndim
    pads[ax] = (0, n - x.shape[ax])
    return jnp.pad(x, pads)


def _pad_lanes(x, dp=_LANE):
    return _pad_dim(x, -1, dp)


def positional_encoding_add(x, max_len=5000):
    # Replicates PositionalEncoding.forward exactly (including the quirk of
    # slicing pe by x.shape[0] = batch size); dropout is identity at inference.
    d_model = x.shape[-1]
    position = jnp.arange(max_len, dtype=jnp.float32)[:, None]
    div_term = jnp.exp(jnp.arange(0, d_model, 2, dtype=jnp.float32)
                       * (-math.log(10000.0) / d_model))
    pe = jnp.zeros((max_len, 1, d_model), jnp.float32)
    pe = pe.at[:, 0, 0::2].set(jnp.sin(position * div_term))
    pe = pe.at[:, 0, 1::2].set(jnp.cos(position * div_term))
    return x + pe[:x.shape[0]]


def transformer_forward(packed, tgt, src, *, d_model, nhead, pos_enc=False):
    """train=True path of Transformer.forward (eval-mode dropout)."""
    if pos_enc:
        src = positional_encoding_add(src)
        tgt = positional_encoding_add(tgt)
    src_p = _pad_lanes(src)        # lane-dense layout plumbing (zeros in pad)
    tgt_p = _pad_lanes(tgt)
    memory_p, output_p = transformer_pallas(packed, tgt_p, src_p,
                                            d_model=d_model, nhead=nhead)
    return memory_p[..., :d_model], output_p[..., :d_model]


def reference_forward(packed, tgt, src, *, d_model, nhead, pos_enc=False):
    """Pure-JAX (XLA) replica with exact softmax divide, for correctness check."""
    if pos_enc:
        src = positional_encoding_add(src)
        tgt = positional_encoding_add(tgt)
    enc, dec = packed["enc"], packed["dec"]
    src_p, tgt_p = _pad_lanes(src), _pad_lanes(tgt)
    bs, ls, dp = src_p.shape
    bt, lt, _ = tgt_p.shape
    nlayers_e = enc["wqkv"].shape[0]
    nlayers_d = dec["sa_wqkv"].shape[0]
    lane_mask = _lane_mask(dp, d_model)
    head_masks = _head_masks(d_model, nhead)
    src_bias, tgt_bias = _causal_bias(ls), _causal_bias(lt)

    mems = []
    for b in range(bs):
        x = src_p[b]
        for l in range(nlayers_e):
            lw = {k: enc[k][l] for k in ENC_KEYS}
            x = _encoder_layer(x, lw, src_bias, lane_mask, head_masks, d_model,
                               approx=False)
        mems.append(x)
    memory = jnp.stack(mems)

    m0 = memory[0]
    kts, vs = [], []
    for l in range(nlayers_d):
        kv = (jnp.dot(m0.astype(dec["ca_wkv"].dtype), dec["ca_wkv"][l],
                      preferred_element_type=jnp.float32) + dec["ca_bkv"][l])
        kts.append(jnp.transpose(kv[:, :d_model]))
        vs.append(kv[:, d_model:2 * d_model])

    outs = []
    for b in range(bt):
        x0 = tgt_p[b]
        x = x0
        for l in range(nlayers_d):
            lw = {k: dec[k][l] for k in DEC_KEYS}
            x = _decoder_layer(x, lw, kts[l], vs[l], tgt_bias, lane_mask,
                               head_masks, d_model, approx=False)
        outs.append(x0 + x)
    output = jnp.stack(outs)
    return memory[..., :d_model], output[..., :d_model]


# ----------------------------------------------------------------------------
# Parameters: real-dim init, then lane-dense packing (zero-pad + bf16 weights)
# ----------------------------------------------------------------------------

def _n(key, shape, scale=0.1):
    return scale * jax.random.normal(key, shape, jnp.float32)


def init_params(key, d_model, d_hid, nlayers_e, nlayers_d):
    d, f = d_model, d_hid
    ones = jnp.ones((1, d), jnp.float32)
    zeros = jnp.zeros((1, d), jnp.float32)

    def enc_layer(k):
        ks = jax.random.split(k, 8)
        return {"wqkv": _n(ks[0], (d, 3 * d)), "bqkv": _n(ks[1], (1, 3 * d), 0.01),
                "wo": _n(ks[2], (d, d)), "bo": _n(ks[3], (1, d), 0.01),
                "g1": ones, "be1": zeros,
                "w1": _n(ks[4], (d, f)), "b1": _n(ks[5], (1, f), 0.01),
                "w2": _n(ks[6], (f, d)), "b2": _n(ks[7], (1, d), 0.01),
                "g2": ones, "be2": zeros}

    def dec_layer(k):
        ks = jax.random.split(k, 14)
        return {"sa_wqkv": _n(ks[0], (d, 3 * d)), "sa_bqkv": _n(ks[1], (1, 3 * d), 0.01),
                "sa_wo": _n(ks[2], (d, d)), "sa_bo": _n(ks[3], (1, d), 0.01),
                "g1": ones, "be1": zeros,
                "ca_wq": _n(ks[4], (d, d)), "ca_bq": _n(ks[5], (1, d), 0.01),
                "ca_wkv": _n(ks[6], (d, 2 * d)), "ca_bkv": _n(ks[7], (1, 2 * d), 0.01),
                "ca_wo": _n(ks[8], (d, d)), "ca_bo": _n(ks[9], (1, d), 0.01),
                "g2": ones, "be2": zeros,
                "w1": _n(ks[10], (d, f)), "b1": _n(ks[11], (1, f), 0.01),
                "w2": _n(ks[12], (f, d)), "b2": _n(ks[13], (1, d), 0.01),
                "g3": ones, "be3": zeros}

    enc = [enc_layer(jax.random.fold_in(key, i)) for i in range(nlayers_e)]
    dec = [dec_layer(jax.random.fold_in(key, 1000 + i)) for i in range(nlayers_d)]
    stack = lambda ls: {k: jnp.stack([p[k] for p in ls]) for k in ls[0]}
    return {"enc": stack(enc), "dec": stack(dec)}


def pack_params(params, dp=_LANE, mxu_dtype=jnp.bfloat16):
    """Lane-dense packing: zero-pad model-width dims to dp and cast MXU weight
    operands to bf16 (biases / LN params stay f32 for v5e-safe elementwise)."""
    pad_in = lambda v: _pad_dim(v, -2, dp).astype(mxu_dtype)   # padded input rows
    pad_out = lambda v: _pad_dim(v, -1, dp).astype(mxu_dtype)  # padded output cols
    vec_out = lambda v: _pad_dim(v, -1, dp)                    # zero-padded bias/LN vec
    keep = lambda v: v
    enc_rules = {"wqkv": pad_in, "bqkv": keep, "wo": pad_out, "bo": vec_out,
                 "g1": vec_out, "be1": vec_out, "w1": pad_in, "b1": keep,
                 "w2": pad_out, "b2": vec_out, "g2": vec_out, "be2": vec_out}
    dec_rules = {"sa_wqkv": pad_in, "sa_bqkv": keep, "sa_wo": pad_out, "sa_bo": vec_out,
                 "g1": vec_out, "be1": vec_out,
                 "ca_wq": pad_in, "ca_bq": keep, "ca_wkv": pad_in, "ca_bkv": keep,
                 "ca_wo": pad_out, "ca_bo": vec_out, "g2": vec_out, "be2": vec_out,
                 "w1": pad_in, "b1": keep, "w2": pad_out, "b2": vec_out,
                 "g3": vec_out, "be3": vec_out}
    return {"enc": {k: enc_rules[k](v) for k, v in params["enc"].items()},
            "dec": {k: dec_rules[k](v) for k, v in params["dec"].items()}}


# ----------------------------------------------------------------------------
# Main
# ----------------------------------------------------------------------------

if __name__ == "__main__":
    D_MODEL, NHEAD, D_HID = 8, 2, 32
    NLAYERS_E, NLAYERS_D = 2, 2
    B, LS, LT = 2, 16, 8          # src: (1, Ls, D), tgt: (B, Lt=window, D)

    key = jax.random.PRNGKey(0)
    k_par, k_src, k_tgt = jax.random.split(key, 3)

    raw = init_params(k_par, D_MODEL, D_HID, NLAYERS_E, NLAYERS_D)
    packed = pack_params(raw)
    src = jax.random.normal(k_src, (1, LS, D_MODEL), jnp.float32)
    tgt = jax.random.normal(k_tgt, (B, LT, D_MODEL), jnp.float32)

    fwd = jax.jit(functools.partial(transformer_forward,
                                    d_model=D_MODEL, nhead=NHEAD, pos_enc=False))
    memory, output = fwd(packed, tgt, src)
    jax.block_until_ready((memory, output))

    assert memory.shape == (1, LS, D_MODEL)
    assert output.shape == (B, LT, D_MODEL)
    assert bool(jnp.all(jnp.isfinite(memory))) and bool(jnp.all(jnp.isfinite(output)))

    # Cross-check the Pallas kernels against the pure-JAX/XLA replica
    # (same packed weights; only difference is exact vs approx softmax divide).
    ref_fwd = jax.jit(functools.partial(reference_forward,
                                        d_model=D_MODEL, nhead=NHEAD, pos_enc=False))
    ref_mem, ref_out = ref_fwd(packed, tgt, src)
    jax.block_until_ready((ref_mem, ref_out))
    assert bool(jnp.max(jnp.abs(memory - ref_mem)) < 2e-2)
    assert bool(jnp.max(jnp.abs(output - ref_out)) < 2e-2)

    # TODO(synk): dropout layers are identity (inference semantics); the unused
    # linear1/linear2 heads from __init__ are not materialized (forward never
    # uses them).
    print("KERNEL_OK")
</pallas_src>

<mosaic_0001>
module attributes {stable_mosaic.version = 11 : i64} {
  func.func @_encoder_kernel(%arg0: memref<1x16x128xf32, #tpu.memory_space<vmem>>, %arg1: memref<2x128x24xbf16, #tpu.memory_space<vmem>>, %arg2: memref<2x1x24xf32, #tpu.memory_space<vmem>>, %arg3: memref<2x8x128xbf16, #tpu.memory_space<vmem>>, %arg4: memref<2x1x128xf32, #tpu.memory_space<vmem>>, %arg5: memref<2x1x128xf32, #tpu.memory_space<vmem>>, %arg6: memref<2x1x128xf32, #tpu.memory_space<vmem>>, %arg7: memref<2x128x32xbf16, #tpu.memory_space<vmem>>, %arg8: memref<2x1x32xf32, #tpu.memory_space<vmem>>, %arg9: memref<2x32x128xbf16, #tpu.memory_space<vmem>>, %arg10: memref<2x1x128xf32, #tpu.memory_space<vmem>>, %arg11: memref<2x1x128xf32, #tpu.memory_space<vmem>>, %arg12: memref<2x1x128xf32, #tpu.memory_space<vmem>>, %arg13: memref<2x128x16xbf16, #tpu.memory_space<vmem>>, %arg14: memref<2x1x16xf32, #tpu.memory_space<vmem>>, %arg15: memref<1x16x128xf32, #tpu.memory_space<vmem>>, %arg16: memref<2x8x16xf32, #tpu.memory_space<vmem>>, %arg17: memref<2x16x8xf32, #tpu.memory_space<vmem>>) attributes {dimension_semantics = [], scalar_prefetch = 0 : i64, scratch_operands = 0 : i64, tpu.core_type = #tpu.core_type<tc>} {
    %0 = tpu.iota {dimensions = array<i32: 0>} : vector<16x16xi32>
    %1 = tpu.iota {dimensions = array<i32: 1>} : vector<16x16xi32>
    %2 = arith.cmpi sgt, %1, %0 : vector<16x16xi32>
    %cst = arith.constant -1.000000e+30 : f32
    %cst_0 = arith.constant 0.000000e+00 : f32
    %3 = vector.broadcast %cst : f32 to vector<16x16xf32>
    %4 = vector.broadcast %cst_0 : f32 to vector<16x16xf32>
    %5 = arith.select %2, %3, %4 : vector<16x16xi1>, vector<16x16xf32>
    %6 = tpu.iota {dimensions = array<i32: 1>} : vector<1x128xi32>
    %c8_i32 = arith.constant 8 : i32
    %7 = vector.broadcast %c8_i32 : i32 to vector<1x128xi32>
    %8 = arith.cmpi slt, %6, %7 : vector<1x128xi32>
    %9 = arith.extui %8 : vector<1x128xi1> to vector<1x128xi32>
    %10 = arith.sitofp %9 : vector<1x128xi32> to vector<1x128xf32>
    %11 = tpu.iota {dimensions = array<i32: 1>} : vector<1x8xi32>
    %c0_i32 = arith.constant 0 : i32
    %12 = vector.broadcast %c0_i32 : i32 to vector<1x8xi32>
    %13 = arith.cmpi sge, %11, %12 : vector<1x8xi32>
    %c4_i32 = arith.constant 4 : i32
    %14 = vector.broadcast %c4_i32 : i32 to vector<1x8xi32>
    %15 = arith.cmpi slt, %11, %14 : vector<1x8xi32>
    %16 = arith.andi %13, %15 : vector<1x8xi1>
    %17 = arith.extui %16 : vector<1x8xi1> to vector<1x8xi32>
    %18 = arith.sitofp %17 : vector<1x8xi32> to vector<1x8xf32>
    %c4_i32_1 = arith.constant 4 : i32
    %19 = vector.broadcast %c4_i32_1 : i32 to vector<1x8xi32>
    %20 = arith.cmpi sge, %11, %19 : vector<1x8xi32>
    %c8_i32_2 = arith.constant 8 : i32
    %21 = vector.broadcast %c8_i32_2 : i32 to vector<1x8xi32>
    %22 = arith.cmpi slt, %11, %21 : vector<1x8xi32>
    %23 = arith.andi %20, %22 : vector<1x8xi1>
    %24 = arith.extui %23 : vector<1x8xi1> to vector<1x8xi32>
    %25 = arith.sitofp %24 : vector<1x8xi32> to vector<1x8xf32>
    %c0 = arith.constant 0 : index
    %c0_3 = arith.constant 0 : index
    %c0_4 = arith.constant 0 : index
    %26 = vector.load %arg1[%c0, %c0_3, %c0_4] : memref<2x128x24xbf16, #tpu.memory_space<vmem>>, vector<1x128x24xbf16>
    %27 = vector.shape_cast %26 : vector<1x128x24xbf16> to vector<128x24xbf16>
    %c0_5 = arith.constant 0 : index
    %c0_6 = arith.constant 0 : index
    %c0_7 = arith.constant 0 : index
    %28 = vector.load %arg2[%c0_5, %c0_6, %c0_7] : memref<2x1x24xf32, #tpu.memory_space<vmem>>, vector<1x1x24xf32>
    %29 = vector.shape_cast %28 : vector<1x1x24xf32> to vector<1x24xf32>
    %c0_8 = arith.constant 0 : index
    %c0_9 = arith.constant 0 : index
    %c0_10 = arith.constant 0 : index
    %30 = vector.load %arg3[%c0_8, %c0_9, %c0_10] : memref<2x8x128xbf16, #tpu.memory_space<vmem>>, vector<1x8x128xbf16>
    %31 = vector.shape_cast %30 : vector<1x8x128xbf16> to vector<8x128xbf16>
    %c0_11 = arith.constant 0 : index
    %c0_12 = arith.constant 0 : index
    %c0_13 = arith.constant 0 : index
    %32 = vector.load %arg4[%c0_11, %c0_12, %c0_13] : memref<2x1x128xf32, #tpu.memory_space<vmem>>, vector<1x1x128xf32>
    %33 = vector.shape_cast %32 : vector<1x1x128xf32> to vector<1x128xf32>
    %c0_14 = arith.constant 0 : index
    %c0_15 = arith.constant 0 : index
    %c0_16 = arith.constant 0 : index
    %34 = vector.load %arg5[%c0_14, %c0_15, %c0_16] : memref<2x1x128xf32, #tpu.memory_space<vmem>>, vector<1x1x128xf32>
    %35 = vector.shape_cast %34 : vector<1x1x128xf32> to vector<1x128xf32>
    %c0_17 = arith.constant 0 : index
    %c0_18 = arith.constant 0 : index
    %c0_19 = arith.constant 0 : index
    %36 = vector.load %arg6[%c0_17, %c0_18, %c0_19] : memref<2x1x128xf32, #tpu.memory_space<vmem>>, vector<1x1x128xf32>
    %37 = vector.shape_cast %36 : vector<1x1x128xf32> to vector<1x128xf32>
    %c0_20 = arith.constant 0 : index
    %c0_21 = arith.constant 0 : index
    %c0_22 = arith.constant 0 : index
    %38 = vector.load %arg7[%c0_20, %c0_21, %c0_22] : memref<2x128x32xbf16, #tpu.memory_space<vmem>>, vector<1x128x32xbf16>
    %39 = vector.shape_cast %38 : vector<1x128x32xbf16> to vector<128x32xbf16>
    %c0_23 = arith.constant 0 : index
    %c0_24 = arith.constant 0 : index
    %c0_25 = arith.constant 0 : index
    %40 = vector.load %arg8[%c0_23, %c0_24, %c0_25] : memref<2x1x32xf32, #tpu.memory_space<vmem>>, vector<1x1x32xf32>
    %41 = vector.shape_cast %40 : vector<1x1x32xf32> to vector<1x32xf32>
    %c0_26 = arith.constant 0 : index
    %c0_27 = arith.constant 0 : index
    %c0_28 = arith.constant 0 : index
    %42 = vector.load %arg9[%c0_26, %c0_27, %c0_28] : memref<2x32x128xbf16, #tpu.memory_space<vmem>>, vector<1x32x128xbf16>
    %43 = vector.shape_cast %42 : vector<1x32x128xbf16> to vector<32x128xbf16>
    %c0_29 = arith.constant 0 : index
    %c0_30 = arith.constant 0 : index
    %c0_31 = arith.constant 0 : index
    %44 = vector.load %arg10[%c0_29, %c0_30, %c0_31] : memref<2x1x128xf32, #tpu.memory_space<vmem>>, vector<1x1x128xf32>
    %45 = vector.shape_cast %44 : vector<1x1x128xf32> to vector<1x128xf32>
    %c0_32 = arith.constant 0 : index
    %c0_33 = arith.constant 0 : index
    %c0_34 = arith.constant 0 : index
    %46 = vector.load %arg11[%c0_32, %c0_33, %c0_34] : memref<2x1x128xf32, #tpu.memory_space<vmem>>, vector<1x1x128xf32>
    %47 = vector.shape_cast %46 : vector<1x1x128xf32> to vector<1x128xf32>
    %c0_35 = arith.constant 0 : index
    %c0_36 = arith.constant 0 : index
    %c0_37 = arith.constant 0 : index
    %48 = vector.load %arg12[%c0_35, %c0_36, %c0_37] : memref<2x1x128xf32, #tpu.memory_space<vmem>>, vector<1x1x128xf32>
    %49 = vector.shape_cast %48 : vector<1x1x128xf32> to vector<1x128xf32>
    %c1 = arith.constant 1 : index
    %c0_38 = arith.constant 0 : index
    %c0_39 = arith.constant 0 : index
    %50 = vector.load %arg1[%c1, %c0_38, %c0_39] : memref<2x128x24xbf16, #tpu.memory_space<vmem>>, vector<1x128x24xbf16>
    %51 = vector.shape_cast %50 : vector<1x128x24xbf16> to vector<128x24xbf16>
    %c1_40 = arith.constant 1 : index
    %c0_41 = arith.constant 0 : index
    %c0_42 = arith.constant 0 : index
    %52 = vector.load %arg2[%c1_40, %c0_41, %c0_42] : memref<2x1x24xf32, #tpu.memory_space<vmem>>, vector<1x1x24xf32>
    %53 = vector.shape_cast %52 : vector<1x1x24xf32> to vector<1x24xf32>
    %c1_43 = arith.constant 1 : index
    %c0_44 = arith.constant 0 : index
    %c0_45 = arith.constant 0 : index
    %54 = vector.load %arg3[%c1_43, %c0_44, %c0_45] : memref<2x8x128xbf16, #tpu.memory_space<vmem>>, vector<1x8x128xbf16>
    %55 = vector.shape_cast %54 : vector<1x8x128xbf16> to vector<8x128xbf16>
    %c1_46 = arith.constant 1 : index
    %c0_47 = arith.constant 0 : index
    %c0_48 = arith.constant 0 : index
    %56 = vector.load %arg4[%c1_46, %c0_47, %c0_48] : memref<2x1x128xf32, #tpu.memory_space<vmem>>, vector<1x1x128xf32>
    %57 = vector.shape_cast %56 : vector<1x1x128xf32> to vector<1x128xf32>
    %c1_49 = arith.constant 1 : index
    %c0_50 = arith.constant 0 : index
    %c0_51 = arith.constant 0 : index
    %58 = vector.load %arg5[%c1_49, %c0_50, %c0_51] : memref<2x1x128xf32, #tpu.memory_space<vmem>>, vector<1x1x128xf32>
    %59 = vector.shape_cast %58 : vector<1x1x128xf32> to vector<1x128xf32>
    %c1_52 = arith.constant 1 : index
    %c0_53 = arith.constant 0 : index
    %c0_54 = arith.constant 0 : index
    %60 = vector.load %arg6[%c1_52, %c0_53, %c0_54] : memref<2x1x128xf32, #tpu.memory_space<vmem>>, vector<1x1x128xf32>
    %61 = vector.shape_cast %60 : vector<1x1x128xf32> to vector<1x128xf32>
    %c1_55 = arith.constant 1 : index
    %c0_56 = arith.constant 0 : index
    %c0_57 = arith.constant 0 : index
    %62 = vector.load %arg7[%c1_55, %c0_56, %c0_57] : memref<2x128x32xbf16, #tpu.memory_space<vmem>>, vector<1x128x32xbf16>
    %63 = vector.shape_cast %62 : vector<1x128x32xbf16> to vector<128x32xbf16>
    %c1_58 = arith.constant 1 : index
    %c0_59 = arith.constant 0 : index
    %c0_60 = arith.constant 0 : index
    %64 = vector.load %arg8[%c1_58, %c0_59, %c0_60] : memref<2x1x32xf32, #tpu.memory_space<vmem>>, vector<1x1x32xf32>
    %65 = vector.shape_cast %64 : vector<1x1x32xf32> to vector<1x32xf32>
    %c1_61 = arith.constant 1 : index
    %c0_62 = arith.constant 0 : index
    %c0_63 = arith.constant 0 : index
    %66 = vector.load %arg9[%c1_61, %c0_62, %c0_63] : memref<2x32x128xbf16, #tpu.memory_space<vmem>>, vector<1x32x128xbf16>
    %67 = vector.shape_cast %66 : vector<1x32x128xbf16> to vector<32x128xbf16>
    %c1_64 = arith.constant 1 : index
    %c0_65 = arith.constant 0 : index
    %c0_66 = arith.constant 0 : index
    %68 = vector.load %arg10[%c1_64, %c0_65, %c0_66] : memref<2x1x128xf32, #tpu.memory_space<vmem>>, vector<1x1x128xf32>
    %69 = vector.shape_cast %68 : vector<1x1x128xf32> to vector<1x128xf32>
    %c1_67 = arith.constant 1 : index
    %c0_68 = arith.constant 0 : index
    %c0_69 = arith.constant 0 : index
    %70 = vector.load %arg11[%c1_67, %c0_68, %c0_69] : memref<2x1x128xf32, #tpu.memory_space<vmem>>, vector<1x1x128xf32>
    %71 = vector.shape_cast %70 : vector<1x1x128xf32> to vector<1x128xf32>
    %c1_70 = arith.constant 1 : index
    %c0_71 = arith.constant 0 : index
    %c0_72 = arith.constant 0 : index
    %72 = vector.load %arg12[%c1_70, %c0_71, %c0_72] : memref<2x1x128xf32, #tpu.memory_space<vmem>>, vector<1x1x128xf32>
    %73 = vector.shape_cast %72 : vector<1x1x128xf32> to vector<1x128xf32>
    %c0_73 = arith.constant 0 : index
    %c0_74 = arith.constant 0 : index
    %c0_75 = arith.constant 0 : index
    %74 = vector.load %arg0[%c0_73, %c0_74, %c0_75] : memref<1x16x128xf32, #tpu.memory_space<vmem>>, vector<1x16x128xf32>
    %75 = vector.shape_cast %74 : vector<1x16x128xf32> to vector<16x128xf32>
    %76 = arith.truncf %75 : vector<16x128xf32> to vector<16x128xbf16>
    %cst_76 = arith.constant dense<0.000000e+00> : vector<16x24xf32>
    %77 = tpu.matmul %76, %27, %cst_76 {dimension_numbers = #tpu.dot_dimension_numbers<[1], [0], [0], [1], [0, 0, 1, 1], [], []>} : vector<16x128xbf16>, vector<128x24xbf16>, vector<16x24xf32> -> vector<16x24xf32>
    %78 = vector.broadcast %29 : vector<1x24xf32> to vector<16x24xf32>
    %79 = arith.addf %77, %78 : vector<16x24xf32>
    %80 = vector.extract_strided_slice %79 {offsets = [0, 0], sizes = [16, 8], strides = [1, 1]} : vector<16x24xf32> to vector<16x8xf32>
    %81 = vector.extract_strided_slice %79 {offsets = [0, 8], sizes = [16, 8], strides = [1, 1]} : vector<16x24xf32> to vector<16x8xf32>
    %82 = tpu.transpose %81, [1, 0] : vector<16x8xf32> -> vector<8x16xf32>
    %83 = vector.extract_strided_slice %79 {offsets = [0, 16], sizes = [16, 8], strides = [1, 1]} : vector<16x24xf32> to vector<16x8xf32>
    %cst_77 = arith.constant 5.000000e-01 : f32
    %84 = vector.broadcast %cst_77 : f32 to vector<16x8xf32>
    %85 = arith.mulf %80, %84 : vector<16x8xf32>
    %86 = vector.broadcast %18 : vector<1x8xf32> to vector<16x8xf32>
    %87 = arith.mulf %85, %86 : vector<16x8xf32>
    %cst_78 = arith.constant dense<0.000000e+00> : vector<16x16xf32>
    %88 = tpu.matmul %87, %82, %cst_78 {dimension_numbers = #tpu.dot_dimension_numbers<[1], [0], [0], [1], [0, 0, 1, 1], [], []>} : vector<16x8xf32>, vector<8x16xf32>, vector<16x16xf32> -> vector<16x16xf32>
    %89 = arith.addf %88, %5 : vector<16x16xf32>
    %cst_79 = arith.constant dense<0xFF800000> : vector<16xf32>
    %90 = vector.multi_reduction <maximumf>, %89, %cst_79 [1] : vector<16x16xf32> to vector<16xf32>
    %91 = vector.shape_cast %90 : vector<16xf32> to vector<16x1xf32>
    %92 = vector.broadcast %91 : vector<16x1xf32> to vector<16x16xf32>
    %93 = arith.subf %89, %92 : vector<16x16xf32>
    %94 = math.exp %93 : vector<16x16xf32>
    %cst_80 = arith.constant dense<0.000000e+00> : vector<16xf32>
    %95 = vector.multi_reduction <add>, %94, %cst_80 [1] : vector<16x16xf32> to vector<16xf32>
    %96 = vector.shape_cast %95 : vector<16xf32> to vector<16x1xf32>
    %97 = tpu.reciprocal %96 {approx = true} : vector<16x1xf32> -> vector<16x1xf32>
    %98 = vector.broadcast %97 : vector<16x1xf32> to vector<16x16xf32>
    %99 = arith.mulf %94, %98 : vector<16x16xf32>
    %cst_81 = arith.constant dense<0.000000e+00> : vector<16x8xf32>
    %100 = tpu.matmul %99, %83, %cst_81 {dimension_numbers = #tpu.dot_dimension_numbers<[1], [0], [0], [1], [0, 0, 1, 1], [], []>} : vector<16x16xf32>, vector<16x8xf32>, vector<16x8xf32> -> vector<16x8xf32>
    %101 = vector.broadcast %18 : vector<1x8xf32> to vector<16x8xf32>
    %102 = arith.mulf %100, %101 : vector<16x8xf32>
    %cst_82 = arith.constant 5.000000e-01 : f32
    %103 = vector.broadcast %cst_82 : f32 to vector<16x8xf32>
    %104 = arith.mulf %80, %103 : vector<16x8xf32>
    %105 = vector.broadcast %25 : vector<1x8xf32> to vector<16x8xf32>
    %106 = arith.mulf %104, %105 : vector<16x8xf32>
    %cst_83 = arith.constant dense<0.000000e+00> : vector<16x16xf32>
    %107 = tpu.matmul %106, %82, %cst_83 {dimension_numbers = #tpu.dot_dimension_numbers<[1], [0], [0], [1], [0, 0, 1, 1], [], []>} : vector<16x8xf32>, vector<8x16xf32>, vector<16x16xf32> -> vector<16x16xf32>
    %108 = arith.addf %107, %5 : vector<16x16xf32>
    %cst_84 = arith.constant dense<0xFF800000> : vector<16xf32>
    %109 = vector.multi_reduction <maximumf>, %108, %cst_84 [1] : vector<16x16xf32> to vector<16xf32>
    %110 = vector.shape_cast %109 : vector<16xf32> to vector<16x1xf32>
    %111 = vector.broadcast %110 : vector<16x1xf32> to vector<16x16xf32>
    %112 = arith.subf %108, %111 : vector<16x16xf32>
    %113 = math.exp %112 : vector<16x16xf32>
    %cst_85 = arith.constant dense<0.000000e+00> : vector<16xf32>
    %114 = vector.multi_reduction <add>, %113, %cst_85 [1] : vector<16x16xf32> to vector<16xf32>
    %115 = vector.shape_cast %114 : vector<16xf32> to vector<16x1xf32>
    %116 = tpu.reciprocal %115 {approx = true} : vector<16x1xf32> -> vector<16x1xf32>
    %117 = vector.broadcast %116 : vector<16x1xf32> to vector<16x16xf32>
    %118 = arith.mulf %113, %117 : vector<16x16xf32>
    %cst_86 = arith.constant dense<0.000000e+00> : vector<16x8xf32>
    %119 = tpu.matmul %118, %83, %cst_86 {dimension_numbers = #tpu.dot_dimension_numbers<[1], [0], [0], [1], [0, 0, 1, 1], [], []>} : vector<16x16xf32>, vector<16x8xf32>, vector<16x8xf32> -> vector<16x8xf32>
    %120 = vector.broadcast %25 : vector<1x8xf32> to vector<16x8xf32>
    %121 = arith.mulf %119, %120 : vector<16x8xf32>
    %122 = arith.addf %102, %121 : vector<16x8xf32>
    %123 = arith.truncf %122 : vector<16x8xf32> to vector<16x8xbf16>
    %cst_87 = arith.constant dense<0.000000e+00> : vector<16x128xf32>
    %124 = tpu.matmul %123, %31, %cst_87 {dimension_numbers = #tpu.dot_dimension_numbers<[1], [0], [0], [1], [0, 0, 1, 1], [], []>} : vector<16x8xbf16>, vector<8x128xbf16>, vector<16x128xf32> -> vector<16x128xf32>
    %125 = vector.broadcast %33 : vector<1x128xf32> to vector<16x128xf32>
    %126 = arith.addf %124, %125 : vector<16x128xf32>
    %127 = arith.addf %75, %126 : vector<16x128xf32>
    %cst_88 = arith.constant dense<0.000000e+00> : vector<16xf32>
    %128 = vector.multi_reduction <add>, %127, %cst_88 [1] : vector<16x128xf32> to vector<16xf32>
    %129 = vector.shape_cast %128 : vector<16xf32> to vector<16x1xf32>
    %cst_89 = arith.constant 1.250000e-01 : f32
    %130 = vector.broadcast %cst_89 : f32 to vector<16x1xf32>
    %131 = arith.mulf %129, %130 : vector<16x1xf32>
    %132 = vector.broadcast %131 : vector<16x1xf32> to vector<16x128xf32>
    %133 = arith.subf %127, %132 : vector<16x128xf32>
    %134 = vector.broadcast %10 : vector<1x128xf32> to vector<16x128xf32>
    %135 = arith.mulf %133, %134 : vector<16x128xf32>
    %136 = arith.mulf %135, %135 : vector<16x128xf32>
    %cst_90 = arith.constant dense<0.000000e+00> : vector<16xf32>
    %137 = vector.multi_reduction <add>, %136, %cst_90 [1] : vector<16x128xf32> to vector<16xf32>
    %138 = vector.shape_cast %137 : vector<16xf32> to vector<16x1xf32>
    %cst_91 = arith.constant 1.250000e-01 : f32
    %139 = vector.broadcast %cst_91 : f32 to vector<16x1xf32>
    %140 = arith.mulf %138, %139 : vector<16x1xf32>
    %cst_92 = arith.constant 9.99999974E-6 : f32
    %141 = vector.broadcast %cst_92 : f32 to vector<16x1xf32>
    %142 = arith.addf %140, %141 : vector<16x1xf32>
    %143 = math.rsqrt %142 : vector<16x1xf32>
    %144 = vector.broadcast %143 : vector<16x1xf32> to vector<16x128xf32>
    %145 = arith.mulf %135, %144 : vector<16x128xf32>
    %146 = vector.broadcast %35 : vector<1x128xf32> to vector<16x128xf32>
    %147 = arith.mulf %145, %146 : vector<16x128xf32>
    %148 = vector.broadcast %37 : vector<1x128xf32> to vector<16x128xf32>
    %149 = arith.addf %147, %148 : vector<16x128xf32>
    %150 = arith.truncf %149 : vector<16x128xf32> to vector<16x128xbf16>
    %cst_93 = arith.constant dense<0.000000e+00> : vector<16x32xf32>
    %151 = tpu.matmul %150, %39, %cst_93 {dimension_numbers = #tpu.dot_dimension_numbers<[1], [0], [0], [1], [0, 0, 1, 1], [], []>} : vector<16x128xbf16>, vector<128x32xbf16>, vector<16x32xf32> -> vector<16x32xf32>
    %152 = vector.broadcast %41 : vector<1x32xf32> to vector<16x32xf32>
    %153 = arith.addf %151, %152 : vector<16x32xf32>
    %cst_94 = arith.constant 0.000000e+00 : f32
    %154 = vector.broadcast %cst_94 : f32 to vector<16x32xf32>
    %155 = arith.maximumf %153, %154 : vector<16x32xf32>
    %156 = arith.truncf %155 : vector<16x32xf32> to vector<16x32xbf16>
    %cst_95 = arith.constant dense<0.000000e+00> : vector<16x128xf32>
    %157 = tpu.matmul %156, %43, %cst_95 {dimension_numbers = #tpu.dot_dimension_numbers<[1], [0], [0], [1], [0, 0, 1, 1], [], []>} : vector<16x32xbf16>, vector<32x128xbf16>, vector<16x128xf32> -> vector<16x128xf32>
    %158 = vector.broadcast %45 : vector<1x128xf32> to vector<16x128xf32>
    %159 = arith.addf %157, %158 : vector<16x128xf32>
    %160 = arith.addf %149, %159 : vector<16x128xf32>
    %cst_96 = arith.constant dense<0.000000e+00> : vector<16xf32>
    %161 = vector.multi_reduction <add>, %160, %cst_96 [1] : vector<16x128xf32> to vector<16xf32>
    %162 = vector.shape_cast %161 : vector<16xf32> to vector<16x1xf32>
    %cst_97 = arith.constant 1.250000e-01 : f32
    %163 = vector.broadcast %cst_97 : f32 to vector<16x1xf32>
    %164 = arith.mulf %162, %163 : vector<16x1xf32>
    %165 = vector.broadcast %164 : vector<16x1xf32> to vector<16x128xf32>
    %166 = arith.subf %160, %165 : vector<16x128xf32>
    %167 = vector.broadcast %10 : vector<1x128xf32> to vector<16x128xf32>
    %168 = arith.mulf %166, %167 : vector<16x128xf32>
    %169 = arith.mulf %168, %168 : vector<16x128xf32>
    %cst_98 = arith.constant dense<0.000000e+00> : vector<16xf32>
    %170 = vector.multi_reduction <add>, %169, %cst_98 [1] : vector<16x128xf32> to vector<16xf32>
    %171 = vector.shape_cast %170 : vector<16xf32> to vector<16x1xf32>
    %cst_99 = arith.constant 1.250000e-01 : f32
    %172 = vector.broadcast %cst_99 : f32 to vector<16x1xf32>
    %173 = arith.mulf %171, %172 : vector<16x1xf32>
    %cst_100 = arith.constant 9.99999974E-6 : f32
    %174 = vector.broadcast %cst_100 : f32 to vector<16x1xf32>
    %175 = arith.addf %173, %174 : vector<16x1xf32>
    %176 = math.rsqrt %175 : vector<16x1xf32>
    %177 = vector.broadcast %176 : vector<16x1xf32> to vector<16x128xf32>
    %178 = arith.mulf %168, %177 : vector<16x128xf32>
    %179 = vector.broadcast %47 : vector<1x128xf32> to vector<16x128xf32>
    %180 = arith.mulf %178, %179 : vector<16x128xf32>
    %181 = vector.broadcast %49 : vector<1x128xf32> to vector<16x128xf32>
    %182 = arith.addf %180, %181 : vector<16x128xf32>
    %183 = arith.truncf %182 : vector<16x128xf32> to vector<16x128xbf16>
    %cst_101 = arith.constant dense<0.000000e+00> : vector<16x24xf32>
    %184 = tpu.matmul %183, %51, %cst_101 {dimension_numbers = #tpu.dot_dimension_numbers<[1], [0], [0], [1], [0, 0, 1, 1], [], []>} : vector<16x128xbf16>, vector<128x24xbf16>, vector<16x24xf32> -> vector<16x24xf32>
    %185 = vector.broadcast %53 : vector<1x24xf32> to vector<16x24xf32>
    %186 = arith.addf %184, %185 : vector<16x24xf32>
    %187 = vector.extract_strided_slice %186 {offsets = [0, 0], sizes = [16, 8], strides = [1, 1]} : vector<16x24xf32> to vector<16x8xf32>
    %188 = vector.extract_strided_slice %186 {offsets = [0, 8], sizes = [16, 8], strides = [1, 1]} : vector<16x24xf32> to vector<16x8xf32>
    %189 = tpu.transpose %188, [1, 0] : vector<16x8xf32> -> vector<8x16xf32>
    %190 = vector.extract_strided_slice %186 {offsets = [0, 16], sizes = [16, 8], strides = [1, 1]} : vector<16x24xf32> to vector<16x8xf32>
    %cst_102 = arith.constant 5.000000e-01 : f32
    %191 = vector.broadcast %cst_102 : f32 to vector<16x8xf32>
    %192 = arith.mulf %187, %191 : vector<16x8xf32>
    %193 = vector.broadcast %18 : vector<1x8xf32> to vector<16x8xf32>
    %194 = arith.mulf %192, %193 : vector<16x8xf32>
    %cst_103 = arith.constant dense<0.000000e+00> : vector<16x16xf32>
    %195 = tpu.matmul %194, %189, %cst_103 {dimension_numbers = #tpu.dot_dimension_numbers<[1], [0], [0], [1], [0, 0, 1, 1], [], []>} : vector<16x8xf32>, vector<8x16xf32>, vector<16x16xf32> -> vector<16x16xf32>
    %196 = arith.addf %195, %5 : vector<16x16xf32>
    %cst_104 = arith.constant dense<0xFF800000> : vector<16xf32>
    %197 = vector.multi_reduction <maximumf>, %196, %cst_104 [1] : vector<16x16xf32> to vector<16xf32>
    %198 = vector.shape_cast %197 : vector<16xf32> to vector<16x1xf32>
    %199 = vector.broadcast %198 : vector<16x1xf32> to vector<16x16xf32>
    %200 = arith.subf %196, %199 : vector<16x16xf32>
    %201 = math.exp %200 : vector<16x16xf32>
    %cst_105 = arith.constant dense<0.000000e+00> : vector<16xf32>
    %202 = vector.multi_reduction <add>, %201, %cst_105 [1] : vector<16x16xf32> to vector<16xf32>
    %203 = vector.shape_cast %202 : vector<16xf32> to vector<16x1xf32>
    %204 = tpu.reciprocal %203 {approx = true} : vector<16x1xf32> -> vector<16x1xf32>
    %205 = vector.broadcast %204 : vector<16x1xf32> to vector<16x16xf32>
    %206 = arith.mulf %201, %205 : vector<16x16xf32>
    %cst_106 = arith.constant dense<0.000000e+00> : vector<16x8xf32>
    %207 = tpu.matmul %206, %190, %cst_106 {dimension_numbers = #tpu.dot_dimension_numbers<[1], [0], [0], [1], [0, 0, 1, 1], [], []>} : vector<16x16xf32>, vector<16x8xf32>, vector<16x8xf32> -> vector<16x8xf32>
    %208 = vector.broadcast %18 : vector<1x8xf32> to vector<16x8xf32>
    %209 = arith.mulf %207, %208 : vector<16x8xf32>
    %cst_107 = arith.constant 5.000000e-01 : f32
    %210 = vector.broadcast %cst_107 : f32 to vector<16x8xf32>
    %211 = arith.mulf %187, %210 : vector<16x8xf32>
    %212 = vector.broadcast %25 : vector<1x8xf32> to vector<16x8xf32>
    %213 = arith.mulf %211, %212 : vector<16x8xf32>
    %cst_108 = arith.constant dense<0.000000e+00> : vector<16x16xf32>
    %214 = tpu.matmul %213, %189, %cst_108 {dimension_numbers = #tpu.dot_dimension_numbers<[1], [0], [0], [1], [0, 0, 1, 1], [], []>} : vector<16x8xf32>, vector<8x16xf32>, vector<16x16xf32> -> vector<16x16xf32>
    %215 = arith.addf %214, %5 : vector<16x16xf32>
    %cst_109 = arith.constant dense<0xFF800000> : vector<16xf32>
    %216 = vector.multi_reduction <maximumf>, %215, %cst_109 [1] : vector<16x16xf32> to vector<16xf32>
    %217 = vector.shape_cast %216 : vector<16xf32> to vector<16x1xf32>
    %218 = vector.broadcast %217 : vector<16x1xf32> to vector<16x16xf32>
    %219 = arith.subf %215, %218 : vector<16x16xf32>
    %220 = math.exp %219 : vector<16x16xf32>
    %cst_110 = arith.constant dense<0.000000e+00> : vector<16xf32>
    %221 = vector.multi_reduction <add>, %220, %cst_110 [1] : vector<16x16xf32> to vector<16xf32>
    %222 = vector.shape_cast %221 : vector<16xf32> to vector<16x1xf32>
    %223 = tpu.reciprocal %222 {approx = true} : vector<16x1xf32> -> vector<16x1xf32>
    %224 = vector.broadcast %223 : vector<16x1xf32> to vector<16x16xf32>
    %225 = arith.mulf %220, %224 : vector<16x16xf32>
    %cst_111 = arith.constant dense<0.000000e+00> : vector<16x8xf32>
    %226 = tpu.matmul %225, %190, %cst_111 {dimension_numbers = #tpu.dot_dimension_numbers<[1], [0], [0], [1], [0, 0, 1, 1], [], []>} : vector<16x16xf32>, vector<16x8xf32>, vector<16x8xf32> -> vector<16x8xf32>
    %227 = vector.broadcast %25 : vector<1x8xf32> to vector<16x8xf32>
    %228 = arith.mulf %226, %227 : vector<16x8xf32>
    %229 = arith.addf %209, %228 : vector<16x8xf32>
    %230 = arith.truncf %229 : vector<16x8xf32> to vector<16x8xbf16>
    %cst_112 = arith.constant dense<0.000000e+00> : vector<16x128xf32>
    %231 = tpu.matmul %230, %55, %cst_112 {dimension_numbers = #tpu.dot_dimension_numbers<[1], [0], [0], [1], [0, 0, 1, 1], [], []>} : vector<16x8xbf16>, vector<8x128xbf16>, vector<16x128xf32> -> vector<16x128xf32>
    %232 = vector.broadcast %57 : vector<1x128xf32> to vector<16x128xf32>
    %233 = arith.addf %231, %232 : vector<16x128xf32>
    %234 = arith.addf %182, %233 : vector<16x128xf32>
    %cst_113 = arith.constant dense<0.000000e+00> : vector<16xf32>
    %235 = vector.multi_reduction <add>, %234, %cst_113 [1] : vector<16x128xf32> to vector<16xf32>
    %236 = vector.shape_cast %235 : vector<16xf32> to vector<16x1xf32>
    %cst_114 = arith.constant 1.250000e-01 : f32
    %237 = vector.broadcast %cst_114 : f32 to vector<16x1xf32>
    %238 = arith.mulf %236, %237 : vector<16x1xf32>
    %239 = vector.broadcast %238 : vector<16x1xf32> to vector<16x128xf32>
    %240 = arith.subf %234, %239 : vector<16x128xf32>
    %241 = vector.broadcast %10 : vector<1x128xf32> to vector<16x128xf32>
    %242 = arith.mulf %240, %241 : vector<16x128xf32>
    %243 = arith.mulf %242, %242 : vector<16x128xf32>
    %cst_115 = arith.constant dense<0.000000e+00> : vector<16xf32>
    %244 = vector.multi_reduction <add>, %243, %cst_115 [1] : vector<16x128xf32> to vector<16xf32>
    %245 = vector.shape_cast %244 : vector<16xf32> to vector<16x1xf32>
    %cst_116 = arith.constant 1.250000e-01 : f32
    %246 = vector.broadcast %cst_116 : f32 to vector<16x1xf32>
    %247 = arith.mulf %245, %246 : vector<16x1xf32>
    %cst_117 = arith.constant 9.99999974E-6 : f32
    %248 = vector.broadcast %cst_117 : f32 to vector<16x1xf32>
    %249 = arith.addf %247, %248 : vector<16x1xf32>
    %250 = math.rsqrt %249 : vector<16x1xf32>
    %251 = vector.broadcast %250 : vector<16x1xf32> to vector<16x128xf32>
    %252 = arith.mulf %242, %251 : vector<16x128xf32>
    %253 = vector.broadcast %59 : vector<1x128xf32> to vector<16x128xf32>
    %254 = arith.mulf %252, %253 : vector<16x128xf32>
    %255 = vector.broadcast %61 : vector<1x128xf32> to vector<16x128xf32>
    %256 = arith.addf %254, %255 : vector<16x128xf32>
    %257 = arith.truncf %256 : vector<16x128xf32> to vector<16x128xbf16>
    %cst_118 = arith.constant dense<0.000000e+00> : vector<16x32xf32>
    %258 = tpu.matmul %257, %63, %cst_118 {dimension_numbers = #tpu.dot_dimension_numbers<[1], [0], [0], [1], [0, 0, 1, 1], [], []>} : vector<16x128xbf16>, vector<128x32xbf16>, vector<16x32xf32> -> vector<16x32xf32>
    %259 = vector.broadcast %65 : vector<1x32xf32> to vector<16x32xf32>
    %260 = arith.addf %258, %259 : vector<16x32xf32>
    %cst_119 = arith.constant 0.000000e+00 : f32
    %261 = vector.broadcast %cst_119 : f32 to vector<16x32xf32>
    %262 = arith.maximumf %260, %261 : vector<16x32xf32>
    %263 = arith.truncf %262 : vector<16x32xf32> to vector<16x32xbf16>
    %cst_120 = arith.constant dense<0.000000e+00> : vector<16x128xf32>
    %264 = tpu.matmul %263, %67, %cst_120 {dimension_numbers = #tpu.dot_dimension_numbers<[1], [0], [0], [1], [0, 0, 1, 1], [], []>} : vector<16x32xbf16>, vector<32x128xbf16>, vector<16x128xf32> -> vector<16x128xf32>
    %265 = vector.broadcast %69 : vector<1x128xf32> to vector<16x128xf32>
    %266 = arith.addf %264, %265 : vector<16x128xf32>
    %267 = arith.addf %256, %266 : vector<16x128xf32>
    %cst_121 = arith.constant dense<0.000000e+00> : vector<16xf32>
    %268 = vector.multi_reduction <add>, %267, %cst_121 [1] : vector<16x128xf32> to vector<16xf32>
    %269 = vector.shape_cast %268 : vector<16xf32> to vector<16x1xf32>
    %cst_122 = arith.constant 1.250000e-01 : f32
    %270 = vector.broadcast %cst_122 : f32 to vector<16x1xf32>
    %271 = arith.mulf %269, %270 : vector<16x1xf32>
    %272 = vector.broadcast %271 : vector<16x1xf32> to vector<16x128xf32>
    %273 = arith.subf %267, %272 : vector<16x128xf32>
    %274 = vector.broadcast %10 : vector<1x128xf32> to vector<16x128xf32>
    %275 = arith.mulf %273, %274 : vector<16x128xf32>
    %276 = arith.mulf %275, %275 : vector<16x128xf32>
    %cst_123 = arith.constant dense<0.000000e+00> : vector<16xf32>
    %277 = vector.multi_reduction <add>, %276, %cst_123 [1] : vector<16x128xf32> to vector<16xf32>
    %278 = vector.shape_cast %277 : vector<16xf32> to vector<16x1xf32>
    %cst_124 = arith.constant 1.250000e-01 : f32
    %279 = vector.broadcast %cst_124 : f32 to vector<16x1xf32>
    %280 = arith.mulf %278, %279 : vector<16x1xf32>
    %cst_125 = arith.constant 9.99999974E-6 : f32
    %281 = vector.broadcast %cst_125 : f32 to vector<16x1xf32>
    %282 = arith.addf %280, %281 : vector<16x1xf32>
    %283 = math.rsqrt %282 : vector<16x1xf32>
    %284 = vector.broadcast %283 : vector<16x1xf32> to vector<16x128xf32>
    %285 = arith.mulf %275, %284 : vector<16x128xf32>
    %286 = vector.broadcast %71 : vector<1x128xf32> to vector<16x128xf32>
    %287 = arith.mulf %285, %286 : vector<16x128xf32>
    %288 = vector.broadcast %73 : vector<1x128xf32> to vector<16x128xf32>
    %289 = arith.addf %287, %288 : vector<16x128xf32>
    %c0_126 = arith.constant 0 : index
    %c0_127 = arith.constant 0 : index
    %c0_128 = arith.constant 0 : index
    %290 = vector.load %arg15[%c0_126, %c0_127, %c0_128] : memref<1x16x128xf32, #tpu.memory_space<vmem>>, vector<1x16x128xf32>
    %291 = vector.shape_cast %290 : vector<1x16x128xf32> to vector<16x128xf32>
    %292 = vector.shape_cast %289 : vector<16x128xf32> to vector<1x16x128xf32>
    tpu.vector_store %arg15[%c0_126, %c0_127, %c0_128], %292 {strides = array<i32>} : memref<1x16x128xf32, #tpu.memory_space<vmem>>, vector<1x16x128xf32>,
    %293 = arith.truncf %289 : vector<16x128xf32> to vector<16x128xbf16>
    %c0_129 = arith.constant 0 : index
    %c0_130 = arith.constant 0 : index
    %c0_131 = arith.constant 0 : index
    %294 = vector.load %arg13[%c0_129, %c0_130, %c0_131] : memref<2x128x16xbf16, #tpu.memory_space<vmem>>, vector<1x128x16xbf16>
    %295 = vector.shape_cast %294 : vector<1x128x16xbf16> to vector<128x16xbf16>
    %cst_132 = arith.constant dense<0.000000e+00> : vector<16x16xf32>
    %296 = tpu.matmul %293, %295, %cst_132 {dimension_numbers = #tpu.dot_dimension_numbers<[1], [0], [0], [1], [0, 0, 1, 1], [], []>} : vector<16x128xbf16>, vector<128x16xbf16>, vector<16x16xf32> -> vector<16x16xf32>
    %c0_133 = arith.constant 0 : index
    %c0_134 = arith.constant 0 : index
    %c0_135 = arith.constant 0 : index
    %297 = vector.load %arg14[%c0_133, %c0_134, %c0_135] : memref<2x1x16xf32, #tpu.memory_space<vmem>>, vector<1x1x16xf32>
    %298 = vector.shape_cast %297 : vector<1x1x16xf32> to vector<1x16xf32>
    %299 = vector.broadcast %298 : vector<1x16xf32> to vector<16x16xf32>
    %300 = arith.addf %296, %299 : vector<16x16xf32>
    %301 = vector.extract_strided_slice %300 {offsets = [0, 0], sizes = [16, 8], strides = [1, 1]} : vector<16x16xf32> to vector<16x8xf32>
    %302 = tpu.transpose %301, [1, 0] : vector<16x8xf32> -> vector<8x16xf32>
    %c0_136 = arith.constant 0 : index
    %c0_137 = arith.constant 0 : index
    %c0_138 = arith.constant 0 : index
    %303 = vector.load %arg16[%c0_136, %c0_137, %c0_138] : memref<2x8x16xf32, #tpu.memory_space<vmem>>, vector<1x8x16xf32>
    %304 = vector.shape_cast %303 : vector<1x8x16xf32> to vector<8x16xf32>
    %305 = vector.shape_cast %302 : vector<8x16xf32> to vector<1x8x16xf32>
    tpu.vector_store %arg16[%c0_136, %c0_137, %c0_138], %305 {strides = array<i32>} : memref<2x8x16xf32, #tpu.memory_space<vmem>>, vector<1x8x16xf32>,
    %306 = vector.extract_strided_slice %300 {offsets = [0, 8], sizes = [16, 8], strides = [1, 1]} : vector<16x16xf32> to vector<16x8xf32>
    %c0_139 = arith.constant 0 : index
    %c0_140 = arith.constant 0 : index
    %c0_141 = arith.constant 0 : index
    %307 = vector.load %arg17[%c0_139, %c0_140, %c0_141] : memref<2x16x8xf32, #tpu.memory_space<vmem>>, vector<1x16x8xf32>
    %308 = vector.shape_cast %307 : vector<1x16x8xf32> to vector<16x8xf32>
    %309 = vector.shape_cast %306 : vector<16x8xf32> to vector<1x16x8xf32>
    tpu.vector_store %arg17[%c0_139, %c0_140, %c0_141], %309 {strides = array<i32>} : memref<2x16x8xf32, #tpu.memory_space<vmem>>, vector<1x16x8xf32>,
    %310 = arith.truncf %289 : vector<16x128xf32> to vector<16x128xbf16>
    %c1_142 = arith.constant 1 : index
    %c0_143 = arith.constant 0 : index
    %c0_144 = arith.constant 0 : index
    %311 = vector.load %arg13[%c1_142, %c0_143, %c0_144] : memref<2x128x16xbf16, #tpu.memory_space<vmem>>, vector<1x128x16xbf16>
    %312 = vector.shape_cast %311 : vector<1x128x16xbf16> to vector<128x16xbf16>
    %cst_145 = arith.constant dense<0.000000e+00> : vector<16x16xf32>
    %313 = tpu.matmul %310, %312, %cst_145 {dimension_numbers = #tpu.dot_dimension_numbers<[1], [0], [0], [1], [0, 0, 1, 1], [], []>} : vector<16x128xbf16>, vector<128x16xbf16>, vector<16x16xf32> -> vector<16x16xf32>
    %c1_146 = arith.constant 1 : index
    %c0_147 = arith.constant 0 : index
    %c0_148 = arith.constant 0 : index
    %314 = vector.load %arg14[%c1_146, %c0_147, %c0_148] : memref<2x1x16xf32, #tpu.memory_space<vmem>>, vector<1x1x16xf32>
    %315 = vector.shape_cast %314 : vector<1x1x16xf32> to vector<1x16xf32>
    %316 = vector.broadcast %315 : vector<1x16xf32> to vector<16x16xf32>
    %317 = arith.addf %313, %316 : vector<16x16xf32>
    %318 = vector.extract_strided_slice %317 {offsets = [0, 0], sizes = [16, 8], strides = [1, 1]} : vector<16x16xf32> to vector<16x8xf32>
    %319 = tpu.transpose %318, [1, 0] : vector<16x8xf32> -> vector<8x16xf32>
    %c1_149 = arith.constant 1 : index
    %c0_150 = arith.constant 0 : index
    %c0_151 = arith.constant 0 : index
    %320 = vector.load %arg16[%c1_149, %c0_150, %c0_151] : memref<2x8x16xf32, #tpu.memory_space<vmem>>, vector<1x8x16xf32>
    %321 = vector.shape_cast %320 : vector<1x8x16xf32> to vector<8x16xf32>
    %322 = vector.shape_cast %319 : vector<8x16xf32> to vector<1x8x16xf32>
    tpu.vector_store %arg16[%c1_149, %c0_150, %c0_151], %322 {strides = array<i32>} : memref<2x8x16xf32, #tpu.memory_space<vmem>>, vector<1x8x16xf32>,
    %323 = vector.extract_strided_slice %317 {offsets = [0, 8], sizes = [16, 8], strides = [1, 1]} : vector<16x16xf32> to vector<16x8xf32>
    %c1_152 = arith.constant 1 : index
    %c0_153 = arith.constant 0 : index
    %c0_154 = arith.constant 0 : index
    %324 = vector.load %arg17[%c1_152, %c0_153, %c0_154] : memref<2x16x8xf32, #tpu.memory_space<vmem>>, vector<1x16x8xf32>
    %325 = vector.shape_cast %324 : vector<1x16x8xf32> to vector<16x8xf32>
    %326 = vector.shape_cast %323 : vector<16x8xf32> to vector<1x16x8xf32>
    tpu.vector_store %arg17[%c1_152, %c0_153, %c0_154], %326 {strides = array<i32>} : memref<2x16x8xf32, #tpu.memory_space<vmem>>, vector<1x16x8xf32>,
    return
  }
}

module attributes {stable_mosaic.version = 11 : i64} {
  func.func @_decoder_kernel(%arg0: i32, %arg1: memref<1x8x128xf32, #tpu.memory_space<vmem>>, %arg2: memref<2x8x16xf32, #tpu.memory_space<vmem>>, %arg3: memref<2x16x8xf32, #tpu.memory_space<vmem>>, %arg4: memref<2x128x24xbf16, #tpu.memory_space<vmem>>, %arg5: memref<2x1x24xf32, #tpu.memory_space<vmem>>, %arg6: memref<2x8x128xbf16, #tpu.memory_space<vmem>>, %arg7: memref<2x1x128xf32, #tpu.memory_space<vmem>>, %arg8: memref<2x1x128xf32, #tpu.memory_space<vmem>>, %arg9: memref<2x1x128xf32, #tpu.memory_space<vmem>>, %arg10: memref<2x128x8xbf16, #tpu.memory_space<vmem>>, %arg11: memref<2x1x8xf32, #tpu.memory_space<vmem>>, %arg12: memref<2x8x128xbf16, #tpu.memory_space<vmem>>, %arg13: memref<2x1x128xf32, #tpu.memory_space<vmem>>, %arg14: memref<2x1x128xf32, #tpu.memory_space<vmem>>, %arg15: memref<2x1x128xf32, #tpu.memory_space<vmem>>, %arg16: memref<2x128x32xbf16, #tpu.memory_space<vmem>>, %arg17: memref<2x1x32xf32, #tpu.memory_space<vmem>>, %arg18: memref<2x32x128xbf16, #tpu.memory_space<vmem>>, %arg19: memref<2x1x128xf32, #tpu.memory_space<vmem>>, %arg20: memref<2x1x128xf32, #tpu.memory_space<vmem>>, %arg21: memref<2x1x128xf32, #tpu.memory_space<vmem>>, %arg22: memref<1x8x128xf32, #tpu.memory_space<vmem>>) attributes {dimension_semantics = [#tpu.dimension_semantics<parallel>], iteration_bounds = array<i64: 2>, scalar_prefetch = 0 : i64, scratch_operands = 0 : i64, tpu.core_type = #tpu.core_type<tc>, window_params = [{transform_indices = @transform_0, window_bounds = array<i64: 1, 8, 128>}, {pipeline_mode = #tpu.pipeline_mode<synchronous>, transform_indices = @transform_1, window_bounds = array<i64: 2, 8, 16>}, {pipeline_mode = #tpu.pipeline_mode<synchronous>, transform_indices = @transform_2, window_bounds = array<i64: 2, 16, 8>}, {pipeline_mode = #tpu.pipeline_mode<synchronous>, transform_indices = @transform_3, window_bounds = array<i64: 2, 128, 24>}, {pipeline_mode = #tpu.pipeline_mode<synchronous>, transform_indices = @transform_4, window_bounds = array<i64: 2, 1, 24>}, {pipeline_mode = #tpu.pipeline_mode<synchronous>, transform_indices = @transform_5, window_bounds = array<i64: 2, 8, 128>}, {pipeline_mode = #tpu.pipeline_mode<synchronous>, transform_indices = @transform_6, window_bounds = array<i64: 2, 1, 128>}, {pipeline_mode = #tpu.pipeline_mode<synchronous>, transform_indices = @transform_7, window_bounds = array<i64: 2, 1, 128>}, {pipeline_mode = #tpu.pipeline_mode<synchronous>, transform_indices = @transform_8, window_bounds = array<i64: 2, 1, 128>}, {pipeline_mode = #tpu.pipeline_mode<synchronous>, transform_indices = @transform_9, window_bounds = array<i64: 2, 128, 8>}, {pipeline_mode = #tpu.pipeline_mode<synchronous>, transform_indices = @transform_10, window_bounds = array<i64: 2, 1, 8>}, {pipeline_mode = #tpu.pipeline_mode<synchronous>, transform_indices = @transform_11, window_bounds = array<i64: 2, 8, 128>}, {pipeline_mode = #tpu.pipeline_mode<synchronous>, transform_indices = @transform_12, window_bounds = array<i64: 2, 1, 128>}, {pipeline_mode = #tpu.pipeline_mode<synchronous>, transform_indices = @transform_13, window_bounds = array<i64: 2, 1, 128>}, {pipeline_mode = #tpu.pipeline_mode<synchronous>, transform_indices = @transform_14, window_bounds = array<i64: 2, 1, 128>}, {pipeline_mode = #tpu.pipeline_mode<synchronous>, transform_indices = @transform_15, window_bounds = array<i64: 2, 128, 32>}, {pipeline_mode = #tpu.pipeline_mode<synchronous>, transform_indices = @transform_16, window_bounds = array<i64: 2, 1, 32>}, {pipeline_mode = #tpu.pipeline_mode<synchronous>, transform_indices = @transform_17, window_bounds = array<i64: 2, 32, 128>}, {pipeline_mode = #tpu.pipeline_mode<synchronous>, transform_indices = @transform_18, window_bounds = array<i64: 2, 1, 128>}, {pipeline_mode = #tpu.pipeline_mode<synchronous>, transform_indices = @transform_19, window_bounds = array<i64: 2, 1, 128>}, {pipeline_mode = #tpu.pipeline_mode<synchronous>, transform_indices = @transform_20, window_bounds = array<i64: 2, 1, 128>}, {transform_indices = @transform_21, window_bounds = array<i64: 1, 8, 128>}]} {
    %0 = tpu.iota {dimensions = array<i32: 0>} : vector<8x8xi32>
    %1 = tpu.iota {dimensions = array<i32: 1>} : vector<8x8xi32>
    %2 = arith.cmpi sgt, %1, %0 : vector<8x8xi32>
    %cst = arith.constant -1.000000e+30 : f32
    %cst_0 = arith.constant 0.000000e+00 : f32
    %3 = vector.broadcast %cst : f32 to vector<8x8xf32>
    %4 = vector.broadcast %cst_0 : f32 to vector<8x8xf32>
    %5 = arith.select %2, %3, %4 : vector<8x8xi1>, vector<8x8xf32>
    %6 = tpu.iota {dimensions = array<i32: 1>} : vector<1x128xi32>
    %c8_i32 = arith.constant 8 : i32
    %7 = vector.broadcast %c8_i32 : i32 to vector<1x128xi32>
    %8 = arith.cmpi slt, %6, %7 : vector<1x128xi32>
    %9 = arith.extui %8 : vector<1x128xi1> to vector<1x128xi32>
    %10 = arith.sitofp %9 : vector<1x128xi32> to vector<1x128xf32>
    %11 = tpu.iota {dimensions = array<i32: 1>} : vector<1x8xi32>
    %c0_i32 = arith.constant 0 : i32
    %12 = vector.broadcast %c0_i32 : i32 to vector<1x8xi32>
    %13 = arith.cmpi sge, %11, %12 : vector<1x8xi32>
    %c4_i32 = arith.constant 4 : i32
    %14 = vector.broadcast %c4_i32 : i32 to vector<1x8xi32>
    %15 = arith.cmpi slt, %11, %14 : vector<1x8xi32>
    %16 = arith.andi %13, %15 : vector<1x8xi1>
    %17 = arith.extui %16 : vector<1x8xi1> to vector<1x8xi32>
    %18 = arith.sitofp %17 : vector<1x8xi32> to vector<1x8xf32>
    %c4_i32_1 = arith.constant 4 : i32
    %19 = vector.broadcast %c4_i32_1 : i32 to vector<1x8xi32>
    %20 = arith.cmpi sge, %11, %19 : vector<1x8xi32>
    %c8_i32_2 = arith.constant 8 : i32
    %21 = vector.broadcast %c8_i32_2 : i32 to vector<1x8xi32>
    %22 = arith.cmpi slt, %11, %21 : vector<1x8xi32>
    %23 = arith.andi %20, %22 : vector<1x8xi1>
    %24 = arith.extui %23 : vector<1x8xi1> to vector<1x8xi32>
    %25 = arith.sitofp %24 : vector<1x8xi32> to vector<1x8xf32>
    %c0 = arith.constant 0 : index
    %c0_3 = arith.constant 0 : index
    %c0_4 = arith.constant 0 : index
    %26 = vector.load %arg1[%c0, %c0_3, %c0_4] : memref<1x8x128xf32, #tpu.memory_space<vmem>>, vector<1x8x128xf32>
    %27 = vector.shape_cast %26 : vector<1x8x128xf32> to vector<8x128xf32>
    %c0_5 = arith.constant 0 : index
    %c0_6 = arith.constant 0 : index
    %c0_7 = arith.constant 0 : index
    %28 = vector.load %arg4[%c0_5, %c0_6, %c0_7] : memref<2x128x24xbf16, #tpu.memory_space<vmem>>, vector<1x128x24xbf16>
    %29 = vector.shape_cast %28 : vector<1x128x24xbf16> to vector<128x24xbf16>
    %c0_8 = arith.constant 0 : index
    %c0_9 = arith.constant 0 : index
    %c0_10 = arith.constant 0 : index
    %30 = vector.load %arg5[%c0_8, %c0_9, %c0_10] : memref<2x1x24xf32, #tpu.memory_space<vmem>>, vector<1x1x24xf32>
    %31 = vector.shape_cast %30 : vector<1x1x24xf32> to vector<1x24xf32>
    %c0_11 = arith.constant 0 : index
    %c0_12 = arith.constant 0 : index
    %c0_13 = arith.constant 0 : index
    %32 = vector.load %arg6[%c0_11, %c0_12, %c0_13] : memref<2x8x128xbf16, #tpu.memory_space<vmem>>, vector<1x8x128xbf16>
    %33 = vector.shape_cast %32 : vector<1x8x128xbf16> to vector<8x128xbf16>
    %c0_14 = arith.constant 0 : index
    %c0_15 = arith.constant 0 : index
    %c0_16 = arith.constant 0 : index
    %34 = vector.load %arg7[%c0_14, %c0_15, %c0_16] : memref<2x1x128xf32, #tpu.memory_space<vmem>>, vector<1x1x128xf32>
    %35 = vector.shape_cast %34 : vector<1x1x128xf32> to vector<1x128xf32>
    %c0_17 = arith.constant 0 : index
    %c0_18 = arith.constant 0 : index
    %c0_19 = arith.constant 0 : index
    %36 = vector.load %arg8[%c0_17, %c0_18, %c0_19] : memref<2x1x128xf32, #tpu.memory_space<vmem>>, vector<1x1x128xf32>
    %37 = vector.shape_cast %36 : vector<1x1x128xf32> to vector<1x128xf32>
    %c0_20 = arith.constant 0 : index
    %c0_21 = arith.constant 0 : index
    %c0_22 = arith.constant 0 : index
    %38 = vector.load %arg9[%c0_20, %c0_21, %c0_22] : memref<2x1x128xf32, #tpu.memory_space<vmem>>, vector<1x1x128xf32>
    %39 = vector.shape_cast %38 : vector<1x1x128xf32> to vector<1x128xf32>
    %c0_23 = arith.constant 0 : index
    %c0_24 = arith.constant 0 : index
    %c0_25 = arith.constant 0 : index
    %40 = vector.load %arg10[%c0_23, %c0_24, %c0_25] : memref<2x128x8xbf16, #tpu.memory_space<vmem>>, vector<1x128x8xbf16>
    %41 = vector.shape_cast %40 : vector<1x128x8xbf16> to vector<128x8xbf16>
    %c0_26 = arith.constant 0 : index
    %c0_27 = arith.constant 0 : index
    %c0_28 = arith.constant 0 : index
    %42 = vector.load %arg11[%c0_26, %c0_27, %c0_28] : memref<2x1x8xf32, #tpu.memory_space<vmem>>, vector<1x1x8xf32>
    %43 = vector.shape_cast %42 : vector<1x1x8xf32> to vector<1x8xf32>
    %c0_29 = arith.constant 0 : index
    %c0_30 = arith.constant 0 : index
    %c0_31 = arith.constant 0 : index
    %44 = vector.load %arg12[%c0_29, %c0_30, %c0_31] : memref<2x8x128xbf16, #tpu.memory_space<vmem>>, vector<1x8x128xbf16>
    %45 = vector.shape_cast %44 : vector<1x8x128xbf16> to vector<8x128xbf16>
    %c0_32 = arith.constant 0 : index
    %c0_33 = arith.constant 0 : index
    %c0_34 = arith.constant 0 : index
    %46 = vector.load %arg13[%c0_32, %c0_33, %c0_34] : memref<2x1x128xf32, #tpu.memory_space<vmem>>, vector<1x1x128xf32>
    %47 = vector.shape_cast %46 : vector<1x1x128xf32> to vector<1x128xf32>
    %c0_35 = arith.constant 0 : index
    %c0_36 = arith.constant 0 : index
    %c0_37 = arith.constant 0 : index
    %48 = vector.load %arg14[%c0_35, %c0_36, %c0_37] : memref<2x1x128xf32, #tpu.memory_space<vmem>>, vector<1x1x128xf32>
    %49 = vector.shape_cast %48 : vector<1x1x128xf32> to vector<1x128xf32>
    %c0_38 = arith.constant 0 : index
    %c0_39 = arith.constant 0 : index
    %c0_40 = arith.constant 0 : index
    %50 = vector.load %arg15[%c0_38, %c0_39, %c0_40] : memref<2x1x128xf32, #tpu.memory_space<vmem>>, vector<1x1x128xf32>
    %51 = vector.shape_cast %50 : vector<1x1x128xf32> to vector<1x128xf32>
    %c0_41 = arith.constant 0 : index
    %c0_42 = arith.constant 0 : index
    %c0_43 = arith.constant 0 : index
    %52 = vector.load %arg16[%c0_41, %c0_42, %c0_43] : memref<2x128x32xbf16, #tpu.memory_space<vmem>>, vector<1x128x32xbf16>
    %53 = vector.shape_cast %52 : vector<1x128x32xbf16> to vector<128x32xbf16>
    %c0_44 = arith.constant 0 : index
    %c0_45 = arith.constant 0 : index
    %c0_46 = arith.constant 0 : index
    %54 = vector.load %arg17[%c0_44, %c0_45, %c0_46] : memref<2x1x32xf32, #tpu.memory_space<vmem>>, vector<1x1x32xf32>
    %55 = vector.shape_cast %54 : vector<1x1x32xf32> to vector<1x32xf32>
    %c0_47 = arith.constant 0 : index
    %c0_48 = arith.constant 0 : index
    %c0_49 = arith.constant 0 : index
    %56 = vector.load %arg18[%c0_47, %c0_48, %c0_49] : memref<2x32x128xbf16, #tpu.memory_space<vmem>>, vector<1x32x128xbf16>
    %57 = vector.shape_cast %56 : vector<1x32x128xbf16> to vector<32x128xbf16>
    %c0_50 = arith.constant 0 : index
    %c0_51 = arith.constant 0 : index
    %c0_52 = arith.constant 0 : index
    %58 = vector.load %arg19[%c0_50, %c0_51, %c0_52] : memref<2x1x128xf32, #tpu.memory_space<vmem>>, vector<1x1x128xf32>
    %59 = vector.shape_cast %58 : vector<1x1x128xf32> to vector<1x128xf32>
    %c0_53 = arith.constant 0 : index
    %c0_54 = arith.constant 0 : index
    %c0_55 = arith.constant 0 : index
    %60 = vector.load %arg20[%c0_53, %c0_54, %c0_55] : memref<2x1x128xf32, #tpu.memory_space<vmem>>, vector<1x1x128xf32>
    %61 = vector.shape_cast %60 : vector<1x1x128xf32> to vector<1x128xf32>
    %c0_56 = arith.constant 0 : index
    %c0_57 = arith.constant 0 : index
    %c0_58 = arith.constant 0 : index
    %62 = vector.load %arg21[%c0_56, %c0_57, %c0_58] : memref<2x1x128xf32, #tpu.memory_space<vmem>>, vector<1x1x128xf32>
    %63 = vector.shape_cast %62 : vector<1x1x128xf32> to vector<1x128xf32>
    %c0_59 = arith.constant 0 : index
    %c0_60 = arith.constant 0 : index
    %c0_61 = arith.constant 0 : index
    %64 = vector.load %arg2[%c0_59, %c0_60, %c0_61] : memref<2x8x16xf32, #tpu.memory_space<vmem>>, vector<1x8x16xf32>
    %65 = vector.shape_cast %64 : vector<1x8x16xf32> to vector<8x16xf32>
    %c0_62 = arith.constant 0 : index
    %c0_63 = arith.constant 0 : index
    %c0_64 = arith.constant 0 : index
    %66 = vector.load %arg3[%c0_62, %c0_63, %c0_64] : memref<2x16x8xf32, #tpu.memory_space<vmem>>, vector<1x16x8xf32>
    %67 = vector.shape_cast %66 : vector<1x16x8xf32> to vector<16x8xf32>
    %68 = arith.truncf %27 : vector<8x128xf32> to vector<8x128xbf16>
    %cst_65 = arith.constant dense<0.000000e+00> : vector<8x24xf32>
    %69 = tpu.matmul %68, %29, %cst_65 {dimension_numbers = #tpu.dot_dimension_numbers<[1], [0], [0], [1], [0, 0, 1, 1], [], []>} : vector<8x128xbf16>, vector<128x24xbf16>, vector<8x24xf32> -> vector<8x24xf32>
    %70 = vector.broadcast %31 : vector<1x24xf32> to vector<8x24xf32>
    %71 = arith.addf %69, %70 : vector<8x24xf32>
    %72 = vector.extract_strided_slice %71 {offsets = [0, 0], sizes = [8, 8], strides = [1, 1]} : vector<8x24xf32> to vector<8x8xf32>
    %73 = vector.extract_strided_slice %71 {offsets = [0, 8], sizes = [8, 8], strides = [1, 1]} : vector<8x24xf32> to vector<8x8xf32>
    %74 = tpu.transpose %73, [1, 0] : vector<8x8xf32> -> vector<8x8xf32>
    %75 = vector.extract_strided_slice %71 {offsets = [0, 16], sizes = [8, 8], strides = [1, 1]} : vector<8x24xf32> to vector<8x8xf32>
    %cst_66 = arith.constant 5.000000e-01 : f32
    %76 = vector.broadcast %cst_66 : f32 to vector<8x8xf32>
    %77 = arith.mulf %72, %76 : vector<8x8xf32>
    %78 = vector.broadcast %18 : vector<1x8xf32> to vector<8x8xf32>
    %79 = arith.mulf %77, %78 : vector<8x8xf32>
    %cst_67 = arith.constant dense<0.000000e+00> : vector<8x8xf32>
    %80 = tpu.matmul %79, %74, %cst_67 {dimension_numbers = #tpu.dot_dimension_numbers<[1], [0], [0], [1], [0, 0, 1, 1], [], []>} : vector<8x8xf32>, vector<8x8xf32>, vector<8x8xf32> -> vector<8x8xf32>
    %81 = arith.addf %80, %5 : vector<8x8xf32>
    %cst_68 = arith.constant dense<0xFF800000> : vector<8xf32>
    %82 = vector.multi_reduction <maximumf>, %81, %cst_68 [1] : vector<8x8xf32> to vector<8xf32>
    %83 = vector.shape_cast %82 : vector<8xf32> to vector<8x1xf32>
    %84 = vector.broadcast %83 : vector<8x1xf32> to vector<8x8xf32>
    %85 = arith.subf %81, %84 : vector<8x8xf32>
    %86 = math.exp %85 : vector<8x8xf32>
    %cst_69 = arith.constant dense<0.000000e+00> : vector<8xf32>
    %87 = vector.multi_reduction <add>, %86, %cst_69 [1] : vector<8x8xf32> to vector<8xf32>
    %88 = vector.shape_cast %87 : vector<8xf32> to vector<8x1xf32>
    %89 = tpu.reciprocal %88 {approx = true} : vector<8x1xf32> -> vector<8x1xf32>
    %90 = vector.broadcast %89 : vector<8x1xf32> to vector<8x8xf32>
    %91 = arith.mulf %86, %90 : vector<8x8xf32>
    %cst_70 = arith.constant dense<0.000000e+00> : vector<8x8xf32>
    %92 = tpu.matmul %91, %75, %cst_70 {dimension_numbers = #tpu.dot_dimension_numbers<[1], [0], [0], [1], [0, 0, 1, 1], [], []>} : vector<8x8xf32>, vector<8x8xf32>, vector<8x8xf32> -> vector<8x8xf32>
    %93 = vector.broadcast %18 : vector<1x8xf32> to vector<8x8xf32>
    %94 = arith.mulf %92, %93 : vector<8x8xf32>
    %cst_71 = arith.constant 5.000000e-01 : f32
    %95 = vector.broadcast %cst_71 : f32 to vector<8x8xf32>
    %96 = arith.mulf %72, %95 : vector<8x8xf32>
    %97 = vector.broadcast %25 : vector<1x8xf32> to vector<8x8xf32>
    %98 = arith.mulf %96, %97 : vector<8x8xf32>
    %cst_72 = arith.constant dense<0.000000e+00> : vector<8x8xf32>
    %99 = tpu.matmul %98, %74, %cst_72 {dimension_numbers = #tpu.dot_dimension_numbers<[1], [0], [0], [1], [0, 0, 1, 1], [], []>} : vector<8x8xf32>, vector<8x8xf32>, vector<8x8xf32> -> vector<8x8xf32>
    %100 = arith.addf %99, %5 : vector<8x8xf32>
    %cst_73 = arith.constant dense<0xFF800000> : vector<8xf32>
    %101 = vector.multi_reduction <maximumf>, %100, %cst_73 [1] : vector<8x8xf32> to vector<8xf32>
    %102 = vector.shape_cast %101 : vector<8xf32> to vector<8x1xf32>
    %103 = vector.broadcast %102 : vector<8x1xf32> to vector<8x8xf32>
    %104 = arith.subf %100, %103 : vector<8x8xf32>
    %105 = math.exp %104 : vector<8x8xf32>
    %cst_74 = arith.constant dense<0.000000e+00> : vector<8xf32>
    %106 = vector.multi_reduction <add>, %105, %cst_74 [1] : vector<8x8xf32> to vector<8xf32>
    %107 = vector.shape_cast %106 : vector<8xf32> to vector<8x1xf32>
    %108 = tpu.reciprocal %107 {approx = true} : vector<8x1xf32> -> vector<8x1xf32>
    %109 = vector.broadcast %108 : vector<8x1xf32> to vector<8x8xf32>
    %110 = arith.mulf %105, %109 : vector<8x8xf32>
    %cst_75 = arith.constant dense<0.000000e+00> : vector<8x8xf32>
    %111 = tpu.matmul %110, %75, %cst_75 {dimension_numbers = #tpu.dot_dimension_numbers<[1], [0], [0], [1], [0, 0, 1, 1], [], []>} : vector<8x8xf32>, vector<8x8xf32>, vector<8x8xf32> -> vector<8x8xf32>
    %112 = vector.broadcast %25 : vector<1x8xf32> to vector<8x8xf32>
    %113 = arith.mulf %111, %112 : vector<8x8xf32>
    %114 = arith.addf %94, %113 : vector<8x8xf32>
    %115 = arith.truncf %114 : vector<8x8xf32> to vector<8x8xbf16>
    %cst_76 = arith.constant dense<0.000000e+00> : vector<8x128xf32>
    %116 = tpu.matmul %115, %33, %cst_76 {dimension_numbers = #tpu.dot_dimension_numbers<[1], [0], [0], [1], [0, 0, 1, 1], [], []>} : vector<8x8xbf16>, vector<8x128xbf16>, vector<8x128xf32> -> vector<8x128xf32>
    %117 = vector.broadcast %35 : vector<1x128xf32> to vector<8x128xf32>
    %118 = arith.addf %116, %117 : vector<8x128xf32>
    %119 = arith.addf %27, %118 : vector<8x128xf32>
    %cst_77 = arith.constant dense<0.000000e+00> : vector<8xf32>
    %120 = vector.multi_reduction <add>, %119, %cst_77 [1] : vector<8x128xf32> to vector<8xf32>
    %121 = vector.shape_cast %120 : vector<8xf32> to vector<8x1xf32>
    %cst_78 = arith.constant 1.250000e-01 : f32
    %122 = vector.broadcast %cst_78 : f32 to vector<8x1xf32>
    %123 = arith.mulf %121, %122 : vector<8x1xf32>
    %124 = vector.broadcast %123 : vector<8x1xf32> to vector<8x128xf32>
    %125 = arith.subf %119, %124 : vector<8x128xf32>
    %126 = vector.broadcast %10 : vector<1x128xf32> to vector<8x128xf32>
    %127 = arith.mulf %125, %126 : vector<8x128xf32>
    %128 = arith.mulf %127, %127 : vector<8x128xf32>
    %cst_79 = arith.constant dense<0.000000e+00> : vector<8xf32>
    %129 = vector.multi_reduction <add>, %128, %cst_79 [1] : vector<8x128xf32> to vector<8xf32>
    %130 = vector.shape_cast %129 : vector<8xf32> to vector<8x1xf32>
    %cst_80 = arith.constant 1.250000e-01 : f32
    %131 = vector.broadcast %cst_80 : f32 to vector<8x1xf32>
    %132 = arith.mulf %130, %131 : vector<8x1xf32>
    %cst_81 = arith.constant 9.99999974E-6 : f32
    %133 = vector.broadcast %cst_81 : f32 to vector<8x1xf32>
    %134 = arith.addf %132, %133 : vector<8x1xf32>
    %135 = math.rsqrt %134 : vector<8x1xf32>
    %136 = vector.broadcast %135 : vector<8x1xf32> to vector<8x128xf32>
    %137 = arith.mulf %127, %136 : vector<8x128xf32>
    %138 = vector.broadcast %37 : vector<1x128xf32> to vector<8x128xf32>
    %139 = arith.mulf %137, %138 : vector<8x128xf32>
    %140 = vector.broadcast %39 : vector<1x128xf32> to vector<8x128xf32>
    %141 = arith.addf %139, %140 : vector<8x128xf32>
    %142 = arith.truncf %141 : vector<8x128xf32> to vector<8x128xbf16>
    %cst_82 = arith.constant dense<0.000000e+00> : vector<8x8xf32>
    %143 = tpu.matmul %142, %41, %cst_82 {dimension_numbers = #tpu.dot_dimension_numbers<[1], [0], [0], [1], [0, 0, 1, 1], [], []>} : vector<8x128xbf16>, vector<128x8xbf16>, vector<8x8xf32> -> vector<8x8xf32>
    %144 = vector.broadcast %43 : vector<1x8xf32> to vector<8x8xf32>
    %145 = arith.addf %143, %144 : vector<8x8xf32>
    %cst_83 = arith.constant 5.000000e-01 : f32
    %146 = vector.broadcast %cst_83 : f32 to vector<8x8xf32>
    %147 = arith.mulf %145, %146 : vector<8x8xf32>
    %148 = vector.broadcast %18 : vector<1x8xf32> to vector<8x8xf32>
    %149 = arith.mulf %147, %148 : vector<8x8xf32>
    %cst_84 = arith.constant dense<0.000000e+00> : vector<8x16xf32>
    %150 = tpu.matmul %149, %65, %cst_84 {dimension_numbers = #tpu.dot_dimension_numbers<[1], [0], [0], [1], [0, 0, 1, 1], [], []>} : vector<8x8xf32>, vector<8x16xf32>, vector<8x16xf32> -> vector<8x16xf32>
    %cst_85 = arith.constant dense<0xFF800000> : vector<8xf32>
    %151 = vector.multi_reduction <maximumf>, %150, %cst_85 [1] : vector<8x16xf32> to vector<8xf32>
    %152 = vector.shape_cast %151 : vector<8xf32> to vector<8x1xf32>
    %153 = vector.broadcast %152 : vector<8x1xf32> to vector<8x16xf32>
    %154 = arith.subf %150, %153 : vector<8x16xf32>
    %155 = math.exp %154 : vector<8x16xf32>
    %cst_86 = arith.constant dense<0.000000e+00> : vector<8xf32>
    %156 = vector.multi_reduction <add>, %155, %cst_86 [1] : vector<8x16xf32> to vector<8xf32>
    %157 = vector.shape_cast %156 : vector<8xf32> to vector<8x1xf32>
    %158 = tpu.reciprocal %157 {approx = true} : vector<8x1xf32> -> vector<8x1xf32>
    %159 = vector.broadcast %158 : vector<8x1xf32> to vector<8x16xf32>
    %160 = arith.mulf %155, %159 : vector<8x16xf32>
    %cst_87 = arith.constant dense<0.000000e+00> : vector<8x8xf32>
    %161 = tpu.matmul %160, %67, %cst_87 {dimension_numbers = #tpu.dot_dimension_numbers<[1], [0], [0], [1], [0, 0, 1, 1], [], []>} : vector<8x16xf32>, vector<16x8xf32>, vector<8x8xf32> -> vector<8x8xf32>
    %162 = vector.broadcast %18 : vector<1x8xf32> to vector<8x8xf32>
    %163 = arith.mulf %161, %162 : vector<8x8xf32>
    %cst_88 = arith.constant 5.000000e-01 : f32
    %164 = vector.broadcast %cst_88 : f32 to vector<8x8xf32>
    %165 = arith.mulf %145, %164 : vector<8x8xf32>
    %166 = vector.broadcast %25 : vector<1x8xf32> to vector<8x8xf32>
    %167 = arith.mulf %165, %166 : vector<8x8xf32>
    %cst_89 = arith.constant dense<0.000000e+00> : vector<8x16xf32>
    %168 = tpu.matmul %167, %65, %cst_89 {dimension_numbers = #tpu.dot_dimension_numbers<[1], [0], [0], [1], [0, 0, 1, 1], [], []>} : vector<8x8xf32>, vector<8x16xf32>, vector<8x16xf32> -> vector<8x16xf32>
    %cst_90 = arith.constant dense<0xFF800000> : vector<8xf32>
    %169 = vector.multi_reduction <maximumf>, %168, %cst_90 [1] : vector<8x16xf32> to vector<8xf32>
    %170 = vector.shape_cast %169 : vector<8xf32> to vector<8x1xf32>
    %171 = vector.broadcast %170 : vector<8x1xf32> to vector<8x16xf32>
    %172 = arith.subf %168, %171 : vector<8x16xf32>
    %173 = math.exp %172 : vector<8x16xf32>
    %cst_91 = arith.constant dense<0.000000e+00> : vector<8xf32>
    %174 = vector.multi_reduction <add>, %173, %cst_91 [1] : vector<8x16xf32> to vector<8xf32>
    %175 = vector.shape_cast %174 : vector<8xf32> to vector<8x1xf32>
    %176 = tpu.reciprocal %175 {approx = true} : vector<8x1xf32> -> vector<8x1xf32>
    %177 = vector.broadcast %176 : vector<8x1xf32> to vector<8x16xf32>
    %178 = arith.mulf %173, %177 : vector<8x16xf32>
    %cst_92 = arith.constant dense<0.000000e+00> : vector<8x8xf32>
    %179 = tpu.matmul %178, %67, %cst_92 {dimension_numbers = #tpu.dot_dimension_numbers<[1], [0], [0], [1], [0, 0, 1, 1], [], []>} : vector<8x16xf32>, vector<16x8xf32>, vector<8x8xf32> -> vector<8x8xf32>
    %180 = vector.broadcast %25 : vector<1x8xf32> to vector<8x8xf32>
    %181 = arith.mulf %179, %180 : vector<8x8xf32>
    %182 = arith.addf %163, %181 : vector<8x8xf32>
    %183 = arith.truncf %182 : vector<8x8xf32> to vector<8x8xbf16>
    %cst_93 = arith.constant dense<0.000000e+00> : vector<8x128xf32>
    %184 = tpu.matmul %183, %45, %cst_93 {dimension_numbers = #tpu.dot_dimension_numbers<[1], [0], [0], [1], [0, 0, 1, 1], [], []>} : vector<8x8xbf16>, vector<8x128xbf16>, vector<8x128xf32> -> vector<8x128xf32>
    %185 = vector.broadcast %47 : vector<1x128xf32> to vector<8x128xf32>
    %186 = arith.addf %184, %185 : vector<8x128xf32>
    %187 = arith.addf %141, %186 : vector<8x128xf32>
    %cst_94 = arith.constant dense<0.000000e+00> : vector<8xf32>
    %188 = vector.multi_reduction <add>, %187, %cst_94 [1] : vector<8x128xf32> to vector<8xf32>
    %189 = vector.shape_cast %188 : vector<8xf32> to vector<8x1xf32>
    %cst_95 = arith.constant 1.250000e-01 : f32
    %190 = vector.broadcast %cst_95 : f32 to vector<8x1xf32>
    %191 = arith.mulf %189, %190 : vector<8x1xf32>
    %192 = vector.broadcast %191 : vector<8x1xf32> to vector<8x128xf32>
    %193 = arith.subf %187, %192 : vector<8x128xf32>
    %194 = vector.broadcast %10 : vector<1x128xf32> to vector<8x128xf32>
    %195 = arith.mulf %193, %194 : vector<8x128xf32>
    %196 = arith.mulf %195, %195 : vector<8x128xf32>
    %cst_96 = arith.constant dense<0.000000e+00> : vector<8xf32>
    %197 = vector.multi_reduction <add>, %196, %cst_96 [1] : vector<8x128xf32> to vector<8xf32>
    %198 = vector.shape_cast %197 : vector<8xf32> to vector<8x1xf32>
    %cst_97 = arith.constant 1.250000e-01 : f32
    %199 = vector.broadcast %cst_97 : f32 to vector<8x1xf32>
    %200 = arith.mulf %198, %199 : vector<8x1xf32>
    %cst_98 = arith.constant 9.99999974E-6 : f32
    %201 = vector.broadcast %cst_98 : f32 to vector<8x1xf32>
    %202 = arith.addf %200, %201 : vector<8x1xf32>
    %203 = math.rsqrt %202 : vector<8x1xf32>
    %204 = vector.broadcast %203 : vector<8x1xf32> to vector<8x128xf32>
    %205 = arith.mulf %195, %204 : vector<8x128xf32>
    %206 = vector.broadcast %49 : vector<1x128xf32> to vector<8x128xf32>
    %207 = arith.mulf %205, %206 : vector<8x128xf32>
    %208 = vector.broadcast %51 : vector<1x128xf32> to vector<8x128xf32>
    %209 = arith.addf %207, %208 : vector<8x128xf32>
    %210 = arith.truncf %209 : vector<8x128xf32> to vector<8x128xbf16>
    %cst_99 = arith.constant dense<0.000000e+00> : vector<8x32xf32>
    %211 = tpu.matmul %210, %53, %cst_99 {dimension_numbers = #tpu.dot_dimension_numbers<[1], [0], [0], [1], [0, 0, 1, 1], [], []>} : vector<8x128xbf16>, vector<128x32xbf16>, vector<8x32xf32> -> vector<8x32xf32>
    %212 = vector.broadcast %55 : vector<1x32xf32> to vector<8x32xf32>
    %213 = arith.addf %211, %212 : vector<8x32xf32>
    %cst_100 = arith.constant 0.000000e+00 : f32
    %214 = vector.broadcast %cst_100 : f32 to vector<8x32xf32>
    %215 = arith.maximumf %213, %214 : vector<8x32xf32>
    %216 = arith.truncf %215 : vector<8x32xf32> to vector<8x32xbf16>
    %cst_101 = arith.constant dense<0.000000e+00> : vector<8x128xf32>
    %217 = tpu.matmul %216, %57, %cst_101 {dimension_numbers = #tpu.dot_dimension_numbers<[1], [0], [0], [1], [0, 0, 1, 1], [], []>} : vector<8x32xbf16>, vector<32x128xbf16>, vector<8x128xf32> -> vector<8x128xf32>
    %218 = vector.broadcast %59 : vector<1x128xf32> to vector<8x128xf32>
    %219 = arith.addf %217, %218 : vector<8x128xf32>
    %220 = arith.addf %209, %219 : vector<8x128xf32>
    %cst_102 = arith.constant dense<0.000000e+00> : vector<8xf32>
    %221 = vector.multi_reduction <add>, %220, %cst_102 [1] : vector<8x128xf32> to vector<8xf32>
    %222 = vector.shape_cast %221 : vector<8xf32> to vector<8x1xf32>
    %cst_103 = arith.constant 1.250000e-01 : f32
    %223 = vector.broadcast %cst_103 : f32 to vector<8x1xf32>
    %224 = arith.mulf %222, %223 : vector<8x1xf32>
    %225 = vector.broadcast %224 : vector<8x1xf32> to vector<8x128xf32>
    %226 = arith.subf %220, %225 : vector<8x128xf32>
    %227 = vector.broadcast %10 : vector<1x128xf32> to vector<8x128xf32>
    %228 = arith.mulf %226, %227 : vector<8x128xf32>
    %229 = arith.mulf %228, %228 : vector<8x128xf32>
    %cst_104 = arith.constant dense<0.000000e+00> : vector<8xf32>
    %230 = vector.multi_reduction <add>, %229, %cst_104 [1] : vector<8x128xf32> to vector<8xf32>
    %231 = vector.shape_cast %230 : vector<8xf32> to vector<8x1xf32>
    %cst_105 = arith.constant 1.250000e-01 : f32
    %232 = vector.broadcast %cst_105 : f32 to vector<8x1xf32>
    %233 = arith.mulf %231, %232 : vector<8x1xf32>
    %cst_106 = arith.constant 9.99999974E-6 : f32
    %234 = vector.broadcast %cst_106 : f32 to vector<8x1xf32>
    %235 = arith.addf %233, %234 : vector<8x1xf32>
    %236 = math.rsqrt %235 : vector<8x1xf32>
    %237 = vector.broadcast %236 : vector<8x1xf32> to vector<8x128xf32>
    %238 = arith.mulf %228, %237 : vector<8x128xf32>
    %239 = vector.broadcast %61 : vector<1x128xf32> to vector<8x128xf32>
    %240 = arith.mulf %238, %239 : vector<8x128xf32>
    %241 = vector.broadcast %63 : vector<1x128xf32> to vector<8x128xf32>
    %242 = arith.addf %240, %241 : vector<8x128xf32>
    %c1 = arith.constant 1 : index
    %c0_107 = arith.constant 0 : index
    %c0_108 = arith.constant 0 : index
    %243 = vector.load %arg4[%c1, %c0_107, %c0_108] : memref<2x128x24xbf16, #tpu.memory_space<vmem>>, vector<1x128x24xbf16>
    %244 = vector.shape_cast %243 : vector<1x128x24xbf16> to vector<128x24xbf16>
    %c1_109 = arith.constant 1 : index
    %c0_110 = arith.constant 0 : index
    %c0_111 = arith.constant 0 : index
    %245 = vector.load %arg5[%c1_109, %c0_110, %c0_111] : memref<2x1x24xf32, #tpu.memory_space<vmem>>, vector<1x1x24xf32>
    %246 = vector.shape_cast %245 : vector<1x1x24xf32> to vector<1x24xf32>
    %c1_112 = arith.constant 1 : index
    %c0_113 = arith.constant 0 : index
    %c0_114 = arith.constant 0 : index
    %247 = vector.load %arg6[%c1_112, %c0_113, %c0_114] : memref<2x8x128xbf16, #tpu.memory_space<vmem>>, vector<1x8x128xbf16>
    %248 = vector.shape_cast %247 : vector<1x8x128xbf16> to vector<8x128xbf16>
    %c1_115 = arith.constant 1 : index
    %c0_116 = arith.constant 0 : index
    %c0_117 = arith.constant 0 : index
    %249 = vector.load %arg7[%c1_115, %c0_116, %c0_117] : memref<2x1x128xf32, #tpu.memory_space<vmem>>, vector<1x1x128xf32>
    %250 = vector.shape_cast %249 : vector<1x1x128xf32> to vector<1x128xf32>
    %c1_118 = arith.constant 1 : index
    %c0_119 = arith.constant 0 : index
    %c0_120 = arith.constant 0 : index
    %251 = vector.load %arg8[%c1_118, %c0_119, %c0_120] : memref<2x1x128xf32, #tpu.memory_space<vmem>>, vector<1x1x128xf32>
    %252 = vector.shape_cast %251 : vector<1x1x128xf32> to vector<1x128xf32>
    %c1_121 = arith.constant 1 : index
    %c0_122 = arith.constant 0 : index
    %c0_123 = arith.constant 0 : index
    %253 = vector.load %arg9[%c1_121, %c0_122, %c0_123] : memref<2x1x128xf32, #tpu.memory_space<vmem>>, vector<1x1x128xf32>
    %254 = vector.shape_cast %253 : vector<1x1x128xf32> to vector<1x128xf32>
    %c1_124 = arith.constant 1 : index
    %c0_125 = arith.constant 0 : index
    %c0_126 = arith.constant 0 : index
    %255 = vector.load %arg10[%c1_124, %c0_125, %c0_126] : memref<2x128x8xbf16, #tpu.memory_space<vmem>>, vector<1x128x8xbf16>
    %256 = vector.shape_cast %255 : vector<1x128x8xbf16> to vector<128x8xbf16>
    %c1_127 = arith.constant 1 : index
    %c0_128 = arith.constant 0 : index
    %c0_129 = arith.constant 0 : index
    %257 = vector.load %arg11[%c1_127, %c0_128, %c0_129] : memref<2x1x8xf32, #tpu.memory_space<vmem>>, vector<1x1x8xf32>
    %258 = vector.shape_cast %257 : vector<1x1x8xf32> to vector<1x8xf32>
    %c1_130 = arith.constant 1 : index
    %c0_131 = arith.constant 0 : index
    %c0_132 = arith.constant 0 : index
    %259 = vector.load %arg12[%c1_130, %c0_131, %c0_132] : memref<2x8x128xbf16, #tpu.memory_space<vmem>>, vector<1x8x128xbf16>
    %260 = vector.shape_cast %259 : vector<1x8x128xbf16> to vector<8x128xbf16>
    %c1_133 = arith.constant 1 : index
    %c0_134 = arith.constant 0 : index
    %c0_135 = arith.constant 0 : index
    %261 = vector.load %arg13[%c1_133, %c0_134, %c0_135] : memref<2x1x128xf32, #tpu.memory_space<vmem>>, vector<1x1x128xf32>
    %262 = vector.shape_cast %261 : vector<1x1x128xf32> to vector<1x128xf32>
    %c1_136 = arith.constant 1 : index
    %c0_137 = arith.constant 0 : index
    %c0_138 = arith.constant 0 : index
    %263 = vector.load %arg14[%c1_136, %c0_137, %c0_138] : memref<2x1x128xf32, #tpu.memory_space<vmem>>, vector<1x1x128xf32>
    %264 = vector.shape_cast %263 : vector<1x1x128xf32> to vector<1x128xf32>
    %c1_139 = arith.constant 1 : index
    %c0_140 = arith.constant 0 : index
    %c0_141 = arith.constant 0 : index
    %265 = vector.load %arg15[%c1_139, %c0_140, %c0_141] : memref<2x1x128xf32, #tpu.memory_space<vmem>>, vector<1x1x128xf32>
    %266 = vector.shape_cast %265 : vector<1x1x128xf32> to vector<1x128xf32>
    %c1_142 = arith.constant 1 : index
    %c0_143 = arith.constant 0 : index
    %c0_144 = arith.constant 0 : index
    %267 = vector.load %arg16[%c1_142, %c0_143, %c0_144] : memref<2x128x32xbf16, #tpu.memory_space<vmem>>, vector<1x128x32xbf16>
    %268 = vector.shape_cast %267 : vector<1x128x32xbf16> to vector<128x32xbf16>
    %c1_145 = arith.constant 1 : index
    %c0_146 = arith.constant 0 : index
    %c0_147 = arith.constant 0 : index
    %269 = vector.load %arg17[%c1_145, %c0_146, %c0_147] : memref<2x1x32xf32, #tpu.memory_space<vmem>>, vector<1x1x32xf32>
    %270 = vector.shape_cast %269 : vector<1x1x32xf32> to vector<1x32xf32>
    %c1_148 = arith.constant 1 : index
    %c0_149 = arith.constant 0 : index
    %c0_150 = arith.constant 0 : index
    %271 = vector.load %arg18[%c1_148, %c0_149, %c0_150] : memref<2x32x128xbf16, #tpu.memory_space<vmem>>, vector<1x32x128xbf16>
    %272 = vector.shape_cast %271 : vector<1x32x128xbf16> to vector<32x128xbf16>
    %c1_151 = arith.constant 1 : index
    %c0_152 = arith.constant 0 : index
    %c0_153 = arith.constant 0 : index
    %273 = vector.load %arg19[%c1_151, %c0_152, %c0_153] : memref<2x1x128xf32, #tpu.memory_space<vmem>>, vector<1x1x128xf32>
    %274 = vector.shape_cast %273 : vector<1x1x128xf32> to vector<1x128xf32>
    %c1_154 = arith.constant 1 : index
    %c0_155 = arith.constant 0 : index
    %c0_156 = arith.constant 0 : index
    %275 = vector.load %arg20[%c1_154, %c0_155, %c0_156] : memref<2x1x128xf32, #tpu.memory_space<vmem>>, vector<1x1x128xf32>
    %276 = vector.shape_cast %275 : vector<1x1x128xf32> to vector<1x128xf32>
    %c1_157 = arith.constant 1 : index
    %c0_158 = arith.constant 0 : index
    %c0_159 = arith.constant 0 : index
    %277 = vector.load %arg21[%c1_157, %c0_158, %c0_159] : memref<2x1x128xf32, #tpu.memory_space<vmem>>, vector<1x1x128xf32>
    %278 = vector.shape_cast %277 : vector<1x1x128xf32> to vector<1x128xf32>
    %c1_160 = arith.constant 1 : index
    %c0_161 = arith.constant 0 : index
    %c0_162 = arith.constant 0 : index
    %279 = vector.load %arg2[%c1_160, %c0_161, %c0_162] : memref<2x8x16xf32, #tpu.memory_space<vmem>>, vector<1x8x16xf32>
    %280 = vector.shape_cast %279 : vector<1x8x16xf32> to vector<8x16xf32>
    %c1_163 = arith.constant 1 : index
    %c0_164 = arith.constant 0 : index
    %c0_165 = arith.constant 0 : index
    %281 = vector.load %arg3[%c1_163, %c0_164, %c0_165] : memref<2x16x8xf32, #tpu.memory_space<vmem>>, vector<1x16x8xf32>
    %282 = vector.shape_cast %281 : vector<1x16x8xf32> to vector<16x8xf32>
    %283 = arith.truncf %242 : vector<8x128xf32> to vector<8x128xbf16>
    %cst_166 = arith.constant dense<0.000000e+00> : vector<8x24xf32>
    %284 = tpu.matmul %283, %244, %cst_166 {dimension_numbers = #tpu.dot_dimension_numbers<[1], [0], [0], [1], [0, 0, 1, 1], [], []>} : vector<8x128xbf16>, vector<128x24xbf16>, vector<8x24xf32> -> vector<8x24xf32>
    %285 = vector.broadcast %246 : vector<1x24xf32> to vector<8x24xf32>
    %286 = arith.addf %284, %285 : vector<8x24xf32>
    %287 = vector.extract_strided_slice %286 {offsets = [0, 0], sizes = [8, 8], strides = [1, 1]} : vector<8x24xf32> to vector<8x8xf32>
    %288 = vector.extract_strided_slice %286 {offsets = [0, 8], sizes = [8, 8], strides = [1, 1]} : vector<8x24xf32> to vector<8x8xf32>
    %289 = tpu.transpose %288, [1, 0] : vector<8x8xf32> -> vector<8x8xf32>
    %290 = vector.extract_strided_slice %286 {offsets = [0, 16], sizes = [8, 8], strides = [1, 1]} : vector<8x24xf32> to vector<8x8xf32>
    %cst_167 = arith.constant 5.000000e-01 : f32
    %291 = vector.broadcast %cst_167 : f32 to vector<8x8xf32>
    %292 = arith.mulf %287, %291 : vector<8x8xf32>
    %293 = vector.broadcast %18 : vector<1x8xf32> to vector<8x8xf32>
    %294 = arith.mulf %292, %293 : vector<8x8xf32>
    %cst_168 = arith.constant dense<0.000000e+00> : vector<8x8xf32>
    %295 = tpu.matmul %294, %289, %cst_168 {dimension_numbers = #tpu.dot_dimension_numbers<[1], [0], [0], [1], [0, 0, 1, 1], [], []>} : vector<8x8xf32>, vector<8x8xf32>, vector<8x8xf32> -> vector<8x8xf32>
    %296 = arith.addf %295, %5 : vector<8x8xf32>
    %cst_169 = arith.constant dense<0xFF800000> : vector<8xf32>
    %297 = vector.multi_reduction <maximumf>, %296, %cst_169 [1] : vector<8x8xf32> to vector<8xf32>
    %298 = vector.shape_cast %297 : vector<8xf32> to vector<8x1xf32>
    %299 = vector.broadcast %298 : vector<8x1xf32> to vector<8x8xf32>
    %300 = arith.subf %296, %299 : vector<8x8xf32>
    %301 = math.exp %300 : vector<8x8xf32>
    %cst_170 = arith.constant dense<0.000000e+00> : vector<8xf32>
    %302 = vector.multi_reduction <add>, %301, %cst_170 [1] : vector<8x8xf32> to vector<8xf32>
    %303 = vector.shape_cast %302 : vector<8xf32> to vector<8x1xf32>
    %304 = tpu.reciprocal %303 {approx = true} : vector<8x1xf32> -> vector<8x1xf32>
    %305 = vector.broadcast %304 : vector<8x1xf32> to vector<8x8xf32>
    %306 = arith.mulf %301, %305 : vector<8x8xf32>
    %cst_171 = arith.constant dense<0.000000e+00> : vector<8x8xf32>
    %307 = tpu.matmul %306, %290, %cst_171 {dimension_numbers = #tpu.dot_dimension_numbers<[1], [0], [0], [1], [0, 0, 1, 1], [], []>} : vector<8x8xf32>, vector<8x8xf32>, vector<8x8xf32> -> vector<8x8xf32>
    %308 = vector.broadcast %18 : vector<1x8xf32> to vector<8x8xf32>
    %309 = arith.mulf %307, %308 : vector<8x8xf32>
    %cst_172 = arith.constant 5.000000e-01 : f32
    %310 = vector.broadcast %cst_172 : f32 to vector<8x8xf32>
    %311 = arith.mulf %287, %310 : vector<8x8xf32>
    %312 = vector.broadcast %25 : vector<1x8xf32> to vector<8x8xf32>
    %313 = arith.mulf %311, %312 : vector<8x8xf32>
    %cst_173 = arith.constant dense<0.000000e+00> : vector<8x8xf32>
    %314 = tpu.matmul %313, %289, %cst_173 {dimension_numbers = #tpu.dot_dimension_numbers<[1], [0], [0], [1], [0, 0, 1, 1], [], []>} : vector<8x8xf32>, vector<8x8xf32>, vector<8x8xf32> -> vector<8x8xf32>
    %315 = arith.addf %314, %5 : vector<8x8xf32>
    %cst_174 = arith.constant dense<0xFF800000> : vector<8xf32>
    %316 = vector.multi_reduction <maximumf>, %315, %cst_174 [1] : vector<8x8xf32> to vector<8xf32>
    %317 = vector.shape_cast %316 : vector<8xf32> to vector<8x1xf32>
    %318 = vector.broadcast %317 : vector<8x1xf32> to vector<8x8xf32>
    %319 = arith.subf %315, %318 : vector<8x8xf32>
    %320 = math.exp %319 : vector<8x8xf32>
    %cst_175 = arith.constant dense<0.000000e+00> : vector<8xf32>
    %321 = vector.multi_reduction <add>, %320, %cst_175 [1] : vector<8x8xf32> to vector<8xf32>
    %322 = vector.shape_cast %321 : vector<8xf32> to vector<8x1xf32>
    %323 = tpu.reciprocal %322 {approx = true} : vector<8x1xf32> -> vector<8x1xf32>
    %324 = vector.broadcast %323 : vector<8x1xf32> to vector<8x8xf32>
    %325 = arith.mulf %320, %324 : vector<8x8xf32>
    %cst_176 = arith.constant dense<0.000000e+00> : vector<8x8xf32>
    %326 = tpu.matmul %325, %290, %cst_176 {dimension_numbers = #tpu.dot_dimension_numbers<[1], [0], [0], [1], [0, 0, 1, 1], [], []>} : vector<8x8xf32>, vector<8x8xf32>, vector<8x8xf32> -> vector<8x8xf32>
    %327 = vector.broadcast %25 : vector<1x8xf32> to vector<8x8xf32>
    %328 = arith.mulf %326, %327 : vector<8x8xf32>
    %329 = arith.addf %309, %328 : vector<8x8xf32>
    %330 = arith.truncf %329 : vector<8x8xf32> to vector<8x8xbf16>
    %cst_177 = arith.constant dense<0.000000e+00> : vector<8x128xf32>
    %331 = tpu.matmul %330, %248, %cst_177 {dimension_numbers = #tpu.dot_dimension_numbers<[1], [0], [0], [1], [0, 0, 1, 1], [], []>} : vector<8x8xbf16>, vector<8x128xbf16>, vector<8x128xf32> -> vector<8x128xf32>
    %332 = vector.broadcast %250 : vector<1x128xf32> to vector<8x128xf32>
    %333 = arith.addf %331, %332 : vector<8x128xf32>
    %334 = arith.addf %242, %333 : vector<8x128xf32>
    %cst_178 = arith.constant dense<0.000000e+00> : vector<8xf32>
    %335 = vector.multi_reduction <add>, %334, %cst_178 [1] : vector<8x128xf32> to vector<8xf32>
    %336 = vector.shape_cast %335 : vector<8xf32> to vector<8x1xf32>
    %cst_179 = arith.constant 1.250000e-01 : f32
    %337 = vector.broadcast %cst_179 : f32 to vector<8x1xf32>
    %338 = arith.mulf %336, %337 : vector<8x1xf32>
    %339 = vector.broadcast %338 : vector<8x1xf32> to vector<8x128xf32>
    %340 = arith.subf %334, %339 : vector<8x128xf32>
    %341 = vector.broadcast %10 : vector<1x128xf32> to vector<8x128xf32>
    %342 = arith.mulf %340, %341 : vector<8x128xf32>
    %343 = arith.mulf %342, %342 : vector<8x128xf32>
    %cst_180 = arith.constant dense<0.000000e+00> : vector<8xf32>
    %344 = vector.multi_reduction <add>, %343, %cst_180 [1] : vector<8x128xf32> to vector<8xf32>
    %345 = vector.shape_cast %344 : vector<8xf32> to vector<8x1xf32>
    %cst_181 = arith.constant 1.250000e-01 : f32
    %346 = vector.broadcast %cst_181 : f32 to vector<8x1xf32>
    %347 = arith.mulf %345, %346 : vector<8x1xf32>
    %cst_182 = arith.constant 9.99999974E-6 : f32
    %348 = vector.broadcast %cst_182 : f32 to vector<8x1xf32>
    %349 = arith.addf %347, %348 : vector<8x1xf32>
    %350 = math.rsqrt %349 : vector<8x1xf32>
    %351 = vector.broadcast %350 : vector<8x1xf32> to vector<8x128xf32>
    %352 = arith.mulf %342, %351 : vector<8x128xf32>
    %353 = vector.broadcast %252 : vector<1x128xf32> to vector<8x128xf32>
    %354 = arith.mulf %352, %353 : vector<8x128xf32>
    %355 = vector.broadcast %254 : vector<1x128xf32> to vector<8x128xf32>
    %356 = arith.addf %354, %355 : vector<8x128xf32>
    %357 = arith.truncf %356 : vector<8x128xf32> to vector<8x128xbf16>
    %cst_183 = arith.constant dense<0.000000e+00> : vector<8x8xf32>
    %358 = tpu.matmul %357, %256, %cst_183 {dimension_numbers = #tpu.dot_dimension_numbers<[1], [0], [0], [1], [0, 0, 1, 1], [], []>} : vector<8x128xbf16>, vector<128x8xbf16>, vector<8x8xf32> -> vector<8x8xf32>
    %359 = vector.broadcast %258 : vector<1x8xf32> to vector<8x8xf32>
    %360 = arith.addf %358, %359 : vector<8x8xf32>
    %cst_184 = arith.constant 5.000000e-01 : f32
    %361 = vector.broadcast %cst_184 : f32 to vector<8x8xf32>
    %362 = arith.mulf %360, %361 : vector<8x8xf32>
    %363 = vector.broadcast %18 : vector<1x8xf32> to vector<8x8xf32>
    %364 = arith.mulf %362, %363 : vector<8x8xf32>
    %cst_185 = arith.constant dense<0.000000e+00> : vector<8x16xf32>
    %365 = tpu.matmul %364, %280, %cst_185 {dimension_numbers = #tpu.dot_dimension_numbers<[1], [0], [0], [1], [0, 0, 1, 1], [], []>} : vector<8x8xf32>, vector<8x16xf32>, vector<8x16xf32> -> vector<8x16xf32>
    %cst_186 = arith.constant dense<0xFF800000> : vector<8xf32>
    %366 = vector.multi_reduction <maximumf>, %365, %cst_186 [1] : vector<8x16xf32> to vector<8xf32>
    %367 = vector.shape_cast %366 : vector<8xf32> to vector<8x1xf32>
    %368 = vector.broadcast %367 : vector<8x1xf32> to vector<8x16xf32>
    %369 = arith.subf %365, %368 : vector<8x16xf32>
    %370 = math.exp %369 : vector<8x16xf32>
    %cst_187 = arith.constant dense<0.000000e+00> : vector<8xf32>
    %371 = vector.multi_reduction <add>, %370, %cst_187 [1] : vector<8x16xf32> to vector<8xf32>
    %372 = vector.shape_cast %371 : vector<8xf32> to vector<8x1xf32>
    %373 = tpu.reciprocal %372 {approx = true} : vector<8x1xf32> -> vector<8x1xf32>
    %374 = vector.broadcast %373 : vector<8x1xf32> to vector<8x16xf32>
    %375 = arith.mulf %370, %374 : vector<8x16xf32>
    %cst_188 = arith.constant dense<0.000000e+00> : vector<8x8xf32>
    %376 = tpu.matmul %375, %282, %cst_188 {dimension_numbers = #tpu.dot_dimension_numbers<[1], [0], [0], [1], [0, 0, 1, 1], [], []>} : vector<8x16xf32>, vector<16x8xf32>, vector<8x8xf32> -> vector<8x8xf32>
    %377 = vector.broadcast %18 : vector<1x8xf32> to vector<8x8xf32>
    %378 = arith.mulf %376, %377 : vector<8x8xf32>
    %cst_189 = arith.constant 5.000000e-01 : f32
    %379 = vector.broadcast %cst_189 : f32 to vector<8x8xf32>
    %380 = arith.mulf %360, %379 : vector<8x8xf32>
    %381 = vector.broadcast %25 : vector<1x8xf32> to vector<8x8xf32>
    %382 = arith.mulf %380, %381 : vector<8x8xf32>
    %cst_190 = arith.constant dense<0.000000e+00> : vector<8x16xf32>
    %383 = tpu.matmul %382, %280, %cst_190 {dimension_numbers = #tpu.dot_dimension_numbers<[1], [0], [0], [1], [0, 0, 1, 1], [], []>} : vector<8x8xf32>, vector<8x16xf32>, vector<8x16xf32> -> vector<8x16xf32>
    %cst_191 = arith.constant dense<0xFF800000> : vector<8xf32>
    %384 = vector.multi_reduction <maximumf>, %383, %cst_191 [1] : vector<8x16xf32> to vector<8xf32>
    %385 = vector.shape_cast %384 : vector<8xf32> to vector<8x1xf32>
    %386 = vector.broadcast %385 : vector<8x1xf32> to vector<8x16xf32>
    %387 = arith.subf %383, %386 : vector<8x16xf32>
    %388 = math.exp %387 : vector<8x16xf32>
    %cst_192 = arith.constant dense<0.000000e+00> : vector<8xf32>
    %389 = vector.multi_reduction <add>, %388, %cst_192 [1] : vector<8x16xf32> to vector<8xf32>
    %390 = vector.shape_cast %389 : vector<8xf32> to vector<8x1xf32>
    %391 = tpu.reciprocal %390 {approx = true} : vector<8x1xf32> -> vector<8x1xf32>
    %392 = vector.broadcast %391 : vector<8x1xf32> to vector<8x16xf32>
    %393 = arith.mulf %388, %392 : vector<8x16xf32>
    %cst_193 = arith.constant dense<0.000000e+00> : vector<8x8xf32>
    %394 = tpu.matmul %393, %282, %cst_193 {dimension_numbers = #tpu.dot_dimension_numbers<[1], [0], [0], [1], [0, 0, 1, 1], [], []>} : vector<8x16xf32>, vector<16x8xf32>, vector<8x8xf32> -> vector<8x8xf32>
    %395 = vector.broadcast %25 : vector<1x8xf32> to vector<8x8xf32>
    %396 = arith.mulf %394, %395 : vector<8x8xf32>
    %397 = arith.addf %378, %396 : vector<8x8xf32>
    %398 = arith.truncf %397 : vector<8x8xf32> to vector<8x8xbf16>
    %cst_194 = arith.constant dense<0.000000e+00> : vector<8x128xf32>
    %399 = tpu.matmul %398, %260, %cst_194 {dimension_numbers = #tpu.dot_dimension_numbers<[1], [0], [0], [1], [0, 0, 1, 1], [], []>} : vector<8x8xbf16>, vector<8x128xbf16>, vector<8x128xf32> -> vector<8x128xf32>
    %400 = vector.broadcast %262 : vector<1x128xf32> to vector<8x128xf32>
    %401 = arith.addf %399, %400 : vector<8x128xf32>
    %402 = arith.addf %356, %401 : vector<8x128xf32>
    %cst_195 = arith.constant dense<0.000000e+00> : vector<8xf32>
    %403 = vector.multi_reduction <add>, %402, %cst_195 [1] : vector<8x128xf32> to vector<8xf32>
    %404 = vector.shape_cast %403 : vector<8xf32> to vector<8x1xf32>
    %cst_196 = arith.constant 1.250000e-01 : f32
    %405 = vector.broadcast %cst_196 : f32 to vector<8x1xf32>
    %406 = arith.mulf %404, %405 : vector<8x1xf32>
    %407 = vector.broadcast %406 : vector<8x1xf32> to vector<8x128xf32>
    %408 = arith.subf %402, %407 : vector<8x128xf32>
    %409 = vector.broadcast %10 : vector<1x128xf32> to vector<8x128xf32>
    %410 = arith.mulf %408, %409 : vector<8x128xf32>
    %411 = arith.mulf %410, %410 : vector<8x128xf32>
    %cst_197 = arith.constant dense<0.000000e+00> : vector<8xf32>
    %412 = vector.multi_reduction <add>, %411, %cst_197 [1] : vector<8x128xf32> to vector<8xf32>
    %413 = vector.shape_cast %412 : vector<8xf32> to vector<8x1xf32>
    %cst_198 = arith.constant 1.250000e-01 : f32
    %414 = vector.broadcast %cst_198 : f32 to vector<8x1xf32>
    %415 = arith.mulf %413, %414 : vector<8x1xf32>
    %cst_199 = arith.constant 9.99999974E-6 : f32
    %416 = vector.broadcast %cst_199 : f32 to vector<8x1xf32>
    %417 = arith.addf %415, %416 : vector<8x1xf32>
    %418 = math.rsqrt %417 : vector<8x1xf32>
    %419 = vector.broadcast %418 : vector<8x1xf32> to vector<8x128xf32>
    %420 = arith.mulf %410, %419 : vector<8x128xf32>
    %421 = vector.broadcast %264 : vector<1x128xf32> to vector<8x128xf32>
    %422 = arith.mulf %420, %421 : vector<8x128xf32>
    %423 = vector.broadcast %266 : vector<1x128xf32> to vector<8x128xf32>
    %424 = arith.addf %422, %423 : vector<8x128xf32>
    %425 = arith.truncf %424 : vector<8x128xf32> to vector<8x128xbf16>
    %cst_200 = arith.constant dense<0.000000e+00> : vector<8x32xf32>
    %426 = tpu.matmul %425, %268, %cst_200 {dimension_numbers = #tpu.dot_dimension_numbers<[1], [0], [0], [1], [0, 0, 1, 1], [], []>} : vector<8x128xbf16>, vector<128x32xbf16>, vector<8x32xf32> -> vector<8x32xf32>
    %427 = vector.broadcast %270 : vector<1x32xf32> to vector<8x32xf32>
    %428 = arith.addf %426, %427 : vector<8x32xf32>
    %cst_201 = arith.constant 0.000000e+00 : f32
    %429 = vector.broadcast %cst_201 : f32 to vector<8x32xf32>
    %430 = arith.maximumf %428, %429 : vector<8x32xf32>
    %431 = arith.truncf %430 : vector<8x32xf32> to vector<8x32xbf16>
    %cst_202 = arith.constant dense<0.000000e+00> : vector<8x128xf32>
    %432 = tpu.matmul %431, %272, %cst_202 {dimension_numbers = #tpu.dot_dimension_numbers<[1], [0], [0], [1], [0, 0, 1, 1], [], []>} : vector<8x32xbf16>, vector<32x128xbf16>, vector<8x128xf32> -> vector<8x128xf32>
    %433 = vector.broadcast %274 : vector<1x128xf32> to vector<8x128xf32>
    %434 = arith.addf %432, %433 : vector<8x128xf32>
    %435 = arith.addf %424, %434 : vector<8x128xf32>
    %cst_203 = arith.constant dense<0.000000e+00> : vector<8xf32>
    %436 = vector.multi_reduction <add>, %435, %cst_203 [1] : vector<8x128xf32> to vector<8xf32>
    %437 = vector.shape_cast %436 : vector<8xf32> to vector<8x1xf32>
    %cst_204 = arith.constant 1.250000e-01 : f32
    %438 = vector.broadcast %cst_204 : f32 to vector<8x1xf32>
    %439 = arith.mulf %437, %438 : vector<8x1xf32>
    %440 = vector.broadcast %439 : vector<8x1xf32> to vector<8x128xf32>
    %441 = arith.subf %435, %440 : vector<8x128xf32>
    %442 = vector.broadcast %10 : vector<1x128xf32> to vector<8x128xf32>
    %443 = arith.mulf %441, %442 : vector<8x128xf32>
    %444 = arith.mulf %443, %443 : vector<8x128xf32>
    %cst_205 = arith.constant dense<0.000000e+00> : vector<8xf32>
    %445 = vector.multi_reduction <add>, %444, %cst_205 [1] : vector<8x128xf32> to vector<8xf32>
    %446 = vector.shape_cast %445 : vector<8xf32> to vector<8x1xf32>
    %cst_206 = arith.constant 1.250000e-01 : f32
    %447 = vector.broadcast %cst_206 : f32 to vector<8x1xf32>
    %448 = arith.mulf %446, %447 : vector<8x1xf32>
    %cst_207 = arith.constant 9.99999974E-6 : f32
    %449 = vector.broadcast %cst_207 : f32 to vector<8x1xf32>
    %450 = arith.addf %448, %449 : vector<8x1xf32>
    %451 = math.rsqrt %450 : vector<8x1xf32>
    %452 = vector.broadcast %451 : vector<8x1xf32> to vector<8x128xf32>
    %453 = arith.mulf %443, %452 : vector<8x128xf32>
    %454 = vector.broadcast %276 : vector<1x128xf32> to vector<8x128xf32>
    %455 = arith.mulf %453, %454 : vector<8x128xf32>
    %456 = vector.broadcast %278 : vector<1x128xf32> to vector<8x128xf32>
    %457 = arith.addf %455, %456 : vector<8x128xf32>
    %458 = arith.addf %27, %457 : vector<8x128xf32>
    %c0_208 = arith.constant 0 : index
    %c0_209 = arith.constant 0 : index
    %c0_210 = arith.constant 0 : index
    %459 = vector.load %arg22[%c0_208, %c0_209, %c0_210] : memref<1x8x128xf32, #tpu.memory_space<vmem>>, vector<1x8x128xf32>
    %460 = vector.shape_cast %459 : vector<1x8x128xf32> to vector<8x128xf32>
    %461 = vector.shape_cast %458 : vector<8x128xf32> to vector<1x8x128xf32>
    tpu.vector_store %arg22[%c0_208, %c0_209, %c0_210], %461 {strides = array<i32>} : memref<1x8x128xf32, #tpu.memory_space<vmem>>, vector<1x8x128xf32>,
    return
  }
  func.func @transform_0(%arg0: i32) -> (i32, i32, i32) {
    %c0_i32 = arith.constant 0 : i32
    %c0_i32_0 = arith.constant 0 : i32
    %c0_i32_1 = arith.constant 0 : i32
    return %arg0, %c0_i32, %c0_i32_0 : i32, i32, i32
  }
  func.func @transform_1(%arg0: i32) -> (i32, i32, i32) {
    %c0_i32 = arith.constant 0 : i32
    %c0_i32_0 = arith.constant 0 : i32
    %c0_i32_1 = arith.constant 0 : i32
    %c0_i32_2 = arith.constant 0 : i32
    return %c0_i32, %c0_i32_0, %c0_i32_1 : i32, i32, i32
  }
  func.func @transform_2(%arg0: i32) -> (i32, i32, i32) {
    %c0_i32 = arith.constant 0 : i32
    %c0_i32_0 = arith.constant 0 : i32
    %c0_i32_1 = arith.constant 0 : i32
    %c0_i32_2 = arith.constant 0 : i32
    return %c0_i32, %c0_i32_0, %c0_i32_1 : i32, i32, i32
  }
  func.func @transform_3(%arg0: i32) -> (i32, i32, i32) {
    %c0_i32 = arith.constant 0 : i32
    %c0_i32_0 = arith.constant 0 : i32
    %c0_i32_1 = arith.constant 0 : i32
    %c0_i32_2 = arith.constant 0 : i32
    return %c0_i32, %c0_i32_0, %c0_i32_1 : i32, i32, i32
  }
  func.func @transform_4(%arg0: i32) -> (i32, i32, i32) {
    %c0_i32 = arith.constant 0 : i32
    %c0_i32_0 = arith.constant 0 : i32
    %c0_i32_1 = arith.constant 0 : i32
    %c0_i32_2 = arith.constant 0 : i32
    return %c0_i32, %c0_i32_0, %c0_i32_1 : i32, i32, i32
  }
  func.func @transform_5(%arg0: i32) -> (i32, i32, i32) {
    %c0_i32 = arith.constant 0 : i32
    %c0_i32_0 = arith.constant 0 : i32
    %c0_i32_1 = arith.constant 0 : i32
    %c0_i32_2 = arith.constant 0 : i32
    return %c0_i32, %c0_i32_0, %c0_i32_1 : i32, i32, i32
  }
  func.func @transform_6(%arg0: i32) -> (i32, i32, i32) {
    %c0_i32 = arith.constant 0 : i32
    %c0_i32_0 = arith.constant 0 : i32
    %c0_i32_1 = arith.constant 0 : i32
    %c0_i32_2 = arith.constant 0 : i32
    return %c0_i32, %c0_i32_0, %c0_i32_1 : i32, i32, i32
  }
  func.func @transform_7(%arg0: i32) -> (i32, i32, i32) {
    %c0_i32 = arith.constant 0 : i32
    %c0_i32_0 = arith.constant 0 : i32
    %c0_i32_1 = arith.constant 0 : i32
    %c0_i32_2 = arith.constant 0 : i32
    return %c0_i32, %c0_i32_0, %c0_i32_1 : i32, i32, i32
  }
  func.func @transform_8(%arg0: i32) -> (i32, i32, i32) {
    %c0_i32 = arith.constant 0 : i32
    %c0_i32_0 = arith.constant 0 : i32
    %c0_i32_1 = arith.constant 0 : i32
    %c0_i32_2 = arith.constant 0 : i32
    return %c0_i32, %c0_i32_0, %c0_i32_1 : i32, i32, i32
  }
  func.func @transform_9(%arg0: i32) -> (i32, i32, i32) {
    %c0_i32 = arith.constant 0 : i32
    %c0_i32_0 = arith.constant 0 : i32
    %c0_i32_1 = arith.constant 0 : i32
    %c0_i32_2 = arith.constant 0 : i32
    return %c0_i32, %c0_i32_0, %c0_i32_1 : i32, i32, i32
  }
  func.func @transform_10(%arg0: i32) -> (i32, i32, i32) {
    %c0_i32 = arith.constant 0 : i32
    %c0_i32_0 = arith.constant 0 : i32
    %c0_i32_1 = arith.constant 0 : i32
    %c0_i32_2 = arith.constant 0 : i32
    return %c0_i32, %c0_i32_0, %c0_i32_1 : i32, i32, i32
  }
  func.func @transform_11(%arg0: i32) -> (i32, i32, i32) {
    %c0_i32 = arith.constant 0 : i32
    %c0_i32_0 = arith.constant 0 : i32
    %c0_i32_1 = arith.constant 0 : i32
    %c0_i32_2 = arith.constant 0 : i32
    return %c0_i32, %c0_i32_0, %c0_i32_1 : i32, i32, i32
  }
  func.func @transform_12(%arg0: i32) -> (i32, i32, i32) {
    %c0_i32 = arith.constant 0 : i32
    %c0_i32_0 = arith.constant 0 : i32
    %c0_i32_1 = arith.constant 0 : i32
    %c0_i32_2 = arith.constant 0 : i32
    return %c0_i32, %c0_i32_0, %c0_i32_1 : i32, i32, i32
  }
  func.func @transform_13(%arg0: i32) -> (i32, i32, i32) {
    %c0_i32 = arith.constant 0 : i32
    %c0_i32_0 = arith.constant 0 : i32
    %c0_i32_1 = arith.constant 0 : i32
    %c0_i32_2 = arith.constant 0 : i32
    return %c0_i32, %c0_i32_0, %c0_i32_1 : i32, i32, i32
  }
  func.func @transform_14(%arg0: i32) -> (i32, i32, i32) {
    %c0_i32 = arith.constant 0 : i32
    %c0_i32_0 = arith.constant 0 : i32
    %c0_i32_1 = arith.constant 0 : i32
    %c0_i32_2 = arith.constant 0 : i32
    return %c0_i32, %c0_i32_0, %c0_i32_1 : i32, i32, i32
  }
  func.func @transform_15(%arg0: i32) -> (i32, i32, i32) {
    %c0_i32 = arith.constant 0 : i32
    %c0_i32_0 = arith.constant 0 : i32
    %c0_i32_1 = arith.constant 0 : i32
    %c0_i32_2 = arith.constant 0 : i32
    return %c0_i32, %c0_i32_0, %c0_i32_1 : i32, i32, i32
  }
  func.func @transform_16(%arg0: i32) -> (i32, i32, i32) {
    %c0_i32 = arith.constant 0 : i32
    %c0_i32_0 = arith.constant 0 : i32
    %c0_i32_1 = arith.constant 0 : i32
    %c0_i32_2 = arith.constant 0 : i32
    return %c0_i32, %c0_i32_0, %c0_i32_1 : i32, i32, i32
  }
  func.func @transform_17(%arg0: i32) -> (i32, i32, i32) {
    %c0_i32 = arith.constant 0 : i32
    %c0_i32_0 = arith.constant 0 : i32
    %c0_i32_1 = arith.constant 0 : i32
    %c0_i32_2 = arith.constant 0 : i32
    return %c0_i32, %c0_i32_0, %c0_i32_1 : i32, i32, i32
  }
  func.func @transform_18(%arg0: i32) -> (i32, i32, i32) {
    %c0_i32 = arith.constant 0 : i32
    %c0_i32_0 = arith.constant 0 : i32
    %c0_i32_1 = arith.constant 0 : i32
    %c0_i32_2 = arith.constant 0 : i32
    return %c0_i32, %c0_i32_0, %c0_i32_1 : i32, i32, i32
  }
  func.func @transform_19(%arg0: i32) -> (i32, i32, i32) {
    %c0_i32 = arith.constant 0 : i32
    %c0_i32_0 = arith.constant 0 : i32
    %c0_i32_1 = arith.constant 0 : i32
    %c0_i32_2 = arith.constant 0 : i32
    return %c0_i32, %c0_i32_0, %c0_i32_1 : i32, i32, i32
  }
  func.func @transform_20(%arg0: i32) -> (i32, i32, i32) {
    %c0_i32 = arith.constant 0 : i32
    %c0_i32_0 = arith.constant 0 : i32
    %c0_i32_1 = arith.constant 0 : i32
    %c0_i32_2 = arith.constant 0 : i32
    return %c0_i32, %c0_i32_0, %c0_i32_1 : i32, i32, i32
  }
  func.func @transform_21(%arg0: i32) -> (i32, i32, i32) {
    %c0_i32 = arith.constant 0 : i32
    %c0_i32_0 = arith.constant 0 : i32
    %c0_i32_1 = arith.constant 0 : i32
    return %arg0, %c0_i32, %c0_i32_0 : i32, i32, i32
  }
}

</mosaic_0001>

<bundles_post_ra>
// kernel: transformer_forward.2
= control target key start
LH: loop header
LB: loop body
LE: loop exit
PB: predicated region body
PF: predicated region fallthrough
CT: control target
= control target key end

     0   :  { %v54_v17 = vlaneseq  ;;  %vm255_vm0 = vcmask 64512   ;;  %v1864_v21 = vmov 0.0   ;;  %vm289_vm3 = vcmask 130048   ;;  %s2355_s1 = inlined_call_operand.vmem [shape: bf16[2,128,24], index: 1, kind: input, shape index: {}]   ;;  %s2356_s2 = inlined_call_operand.vmem [shape: f32[2,1,24], index: 2, kind: input, shape index: {}]   ;;  %s2357_s0 = inlined_call_operand.vmem [shape: f32[1,16,128], index: 0, kind: input, shape index: {}]   ;;  %s2358_s4 = inlined_call_operand.vmem [shape: f32[2,1,128], index: 4, kind: input, shape index: {}]   ;;  %s2359_s3 = inlined_call_operand.vmem [shape: bf16[2,8,128], index: 3, kind: input, shape index: {}]   ;;  %s2360_s5 = inlined_call_operand.vmem [shape: f32[2,1,128], index: 5, kind: input, shape index: {}]   ;;  %s2361_s6 = inlined_call_operand.vmem [shape: f32[2,1,128], index: 6, kind: input, shape index: {}]   ;;  %s2362_s8 = inlined_call_operand.vmem [shape: f32[2,1,32], index: 8, kind: input, shape index: {}]   ;;  %s2363_s7 = inlined_call_operand.vmem [shape: bf16[2,128,32], index: 7, kind: input, shape index: {}]   ;;  %s2364_s10 = inlined_call_operand.vmem [shape: f32[2,1,128], index: 10, kind: input, shape index: {}]   ;;  %s2365_s9 = inlined_call_operand.vmem [shape: bf16[2,32,128], index: 9, kind: input, shape index: {}]   ;;  %s2366_s11 = inlined_call_operand.vmem [shape: f32[2,1,128], index: 11, kind: input, shape index: {}]   ;;  %s2367_s12 = inlined_call_operand.vmem [shape: f32[2,1,128], index: 12, kind: input, shape index: {}]   ;;  %s2368_s14 = inlined_call_operand.vmem [shape: f32[2,1,16], index: 14, kind: input, shape index: {}]   ;;  %s2369_s13 = inlined_call_operand.vmem [shape: bf16[2,128,16], index: 13, kind: input, shape index: {}]   ;;  %s2370_s15 = inlined_call_operand.vmem [shape: f32[1,16,128], index: 15, kind: output, shape index: {0}]   ;;  %s2371_s17 = inlined_call_operand.vmem [shape: f32[2,16,8], index: 17, kind: output, shape index: {2}]   ;;  %s2372_s16 = inlined_call_operand.vmem [shape: f32[2,8,16], index: 16, kind: output, shape index: {1}]  }
   0x1   :  { %2375 = sst [smem:[#allocation2_spill]] %s2355_s1  ;;  %v1983_v8 = vld [vmem:[%s2357_s0] sm:$0xff]  ;;  %v1988_v9 = vld [vmem:[%s2357_s0 + $0x8] sm:$0xff]  ;;  %s1865_s0 = smov 112   ;;  %vm442_vm8 = vcmask 1043456   ;;  %vm598_vm15 = vcmask 261120  }
   0x2   :  { %2376 = sst [smem:[#allocation3_spill]] %s2356_s2  ;;  %v179_v10 = vpack.c.bf16 %v1988_v9, %v1983_v8  ;;  %s1863_s2 = smov 120   ;;  %v1997_v18 = vand.u32 127, %v54_v17  ;;  %v55_v27 = vshrl.u32 %v54_v17, 7 }
   0x3   :  { %s2377_s26 = sld [smem:[#allocation2_spill]] }
   0x4   :  { %s2378_s19 = sld [smem:[#allocation3_spill]]  ;;  %vm67_vm1 = vcmp.lt.s32.totalorder %v1997_v18, 4  ;;  %vm59_vm2 = vcmp.gt.s32.totalorder %v1997_v18, %v55_v27  ;;  %v56_v29 = vadd.s32 8, %v55_v27  ;;  %vm63_vm5 = vcmp.lt.s32.totalorder %v1997_v18, 8 }
   0x5   :  { %v2004_v22 = vsel %vm67_vm1, 1.0, %v1864_v21  ;;  %v2014_v28 = vsel %vm59_vm2, -1e+30, %v1864_v21  ;;  %vm71_vm6 = vcmp.ge.s32.totalorder %v1997_v18, 4 }
   0x6   :  { %vm60_vm4 = vcmp.gt.s32.totalorder %v1997_v18, %v56_v29  ;;  %vm72_vm7 = vmand %vm71_vm6, %vm63_vm5  ;;  %v1744_v18 = vld [vmem:[%s2363_s7 + $0x30] sm:$0xff] }
   0x7   :  { %v2020_v33 = vsel %vm60_vm4, -1e+30, %v1864_v21  ;;  %v2036_v56 = vsel %vm72_vm7, 1.0, %v1864_v21 }
   0x9   :  { %v1737_v0 = vld [vmem:[%s2377_s26 + $0x38] sm:$0xff]  ;;  %v1736_v1 = vld [vmem:[%s2377_s26 + $0x30] sm:$0xff]  ;;  %v1735_v2 = vld [vmem:[%s2377_s26 + $0x28] sm:$0xff] }
   0xa   :  { %231 = vmatpush.bf16.msra.mxu0 %v1737_v0  ;;  %v1734_v3 = vld [vmem:[%s2377_s26 + $0x20] sm:$0xff]  ;;  %v1733_v4 = vld [vmem:[%s2377_s26 + $0x18] sm:$0xff]  ;;  %v1732_v5 = vld [vmem:[%s2377_s26 + $0x10] sm:$0xff] }
   0xb   :  { %v1731_v6 = vld [vmem:[%s2377_s26 + $0x8] sm:$0xff]  ;;  %v1730_v7 = vld [vmem:[%s2377_s26] sm:$0xff] }
   0xc   :  { %v1797_v12 = vld [vmem:[%s2378_s19] ss:$0 sm:$0xff] }
   0xe   :  { %232 = vmatpush.bf16.msra.mxu0 %v1736_v1 }
  0x12   :  { %233 = vmatpush.bf16.msra.mxu0 %v1735_v2 }
  0x16   :  { %234 = vmatpush.bf16.msra.mxu0 %v1734_v3 }
  0x1a   :  { %235 = vmatpush.bf16.msra.mxu0 %v1733_v4 }
  0x1e   :  { %236 = vmatpush.bf16.msra.mxu0 %v1732_v5 }
  0x22   :  { %237 = vmatpush.bf16.msra.mxu0 %v1731_v6 }
  0x26   :  { %238 = vmatpush.bf16.msra.mxu0 %v1730_v7 }
  0x29   :  { %239 = vmatmul.bf16.vlgmr.msra.gmra.mxu0 %v179_v10 }
  0xa6   :  { %v240_v11 = vpop.f32.mrf.mxu0 }
  0xa7   :  { %v241_v14 = vadd.f32 %v1797_v12, %v240_v11 }
  0xa9   :  { %v2001_v20 = vmul.f32 0.5, %v241_v14 }
  0xab   :  { %v247_v24 = vmul.f32 %v2004_v22, %v2001_v20  ;;  %v349_v57 = vmul.f32 %v2036_v56, %v2001_v20 }
  0xae   :  { %v242_v13 = vpop.f32.mrf.mxu0 }
  0xaf   :  { %v243_v15 = vadd.f32 %v1797_v12, %v242_v13 }
  0xb1   :  { %253 = vrot.lane.b32.xlu0 %v243_v15, %s1863_s2  ;;  %v1787_v16 = vpack.i.bf16 %v241_v14, %v243_v15  ;;  %v246_v25 = vmul.f32 0.5, %v243_v15 }
  0xb3   :  { %v248_v26 = vmul.f32 %v2004_v22, %v246_v25  ;;  %v350_v58 = vmul.f32 %v2036_v56, %v246_v25 }
  0xb9   :  { %251 = vrot.lane.b32.xlu0 %v241_v14, %s1863_s2 }
 0x123   :  { %v254_v19 = vpop.permute.xlu0 %253 }
 0x124   :  { %1506 = vmatpush.xpose.msk.msra.mxu1 %vm255_vm0, %v254_v19 }
 0x12b   :  { %v252_v23 = vpop.permute.xlu0 %251 }
 0x12c   :  { %1507 = vmatpush.xpose.msk.msra.mxu1 %vm255_vm0, %v252_v23 }
 0x12f   :  { %1508 = vmatmul.msk.f32.vlgmr.msra.gmra.mxu1 %vm255_vm0, %v247_v24  ;;  %v92_v24 = vld [vmem:[%s2359_s3] sm:$0xf] }
 0x130   :  { %v444_v25 = vsel %vm442_vm8, %v92_v24, 0 }
 0x131   :  { %453 = vmatpush.bf16.msrb.mxu1 %v444_v25 }
 0x137   :  { %1509 = vmatmul.msk.f32.gmra.mxu1 %vm255_vm0, %v248_v26  ;;  %v1446_v26 = vld [vmem:[%s2359_s3 + $0x4] sm:$0xf] }
 0x138   :  { %v2057_v27 = vsel %vm442_vm8, %v1446_v26, 0 }
 0x1ac   :  { %v283_v30 = vpop.f32.mrf.mxu1 }
 0x1ad   :  { %v284_v31 = vadd.f32 %v283_v30, %v2014_v28 }
 0x1af   :  { %v290_v32 = vsel %vm289_vm3, %v284_v31, -inf }
 0x1b0   :  { %291 = vmax.xlane.f32.xlu1 %v290_v32 }
 0x1b4   :  { %v286_v34 = vpop.f32.mrf.mxu1 }
 0x1b5   :  { %v287_v35 = vadd.f32 %v286_v34, %v2020_v33 }
 0x1b7   :  { %v293_v36 = vsel %vm289_vm3, %v287_v35, -inf }
 0x1b8   :  { %294 = vmax.xlane.f32.xlu1 %v293_v36 }
 0x223   :  { %v292_v37 = vpop.xlane.xlu1 %291 }
 0x224   :  { %v296_v38 = vsub.f32 %v284_v31, %v292_v37 }
 0x226   :  { %v298_v39 = vmul.f32 1.442695, %v296_v38 }
 0x228   :  { %1815 = vpow2.f32 %v298_v39  ;;  %v1798_v39 = vld [vmem:[%s2358_s4] ss:$0 sm:$0xff] }
 0x22b   :  { %v295_v40 = vpop.xlane.xlu1 %294 }
 0x22c   :  { %v297_v41 = vsub.f32 %v287_v35, %v295_v40 }
 0x22e   :  { %v1816_v42 = vpop.eup %1815  ;;  %v300_v43 = vmul.f32 1.442695, %v297_v41 }
 0x22f   :  { %v302_v44 = vsel %vm289_vm3, %v1816_v42, 0.0 }
 0x230   :  { %1817 = vpow2.f32 %v300_v43  ;;  %303 = vadd.xlane.f32.xlu2 %v302_v44 }
 0x236   :  { %v1818_v45 = vpop.eup %1817 }
 0x237   :  { %v305_v46 = vsel %vm289_vm3, %v1818_v45, 0.0 }
 0x238   :  { %306 = vadd.xlane.f32.xlu0 %v305_v46 }
 0x248   :  { %1788 = vrot.lane.b32.xlu2 %v1787_v16, %s1865_s0 }
 0x2a3   :  { %v304_v47 = vpop.xlane.xlu2 %303 }
 0x2a4   :  { %1819 = vrcp.f32 %v304_v47 }
 0x2aa   :  { %v1820_v50 = vpop.eup %1819 }
 0x2ab   :  { %v1789_v48 = vpop.permute.xlu2 %1788  ;;  %v307_v49 = vpop.xlane.xlu0 %306  ;;  %v310_v53 = vmul.f32 %v1820_v50, %v1816_v42 }
 0x2ac   :  { %v1790_v51 = vunpack.i.l.bf16 %v1789_v48  ;;  %1821 = vrcp.f32 %v307_v49  ;;  %v1791_v52 = vunpack.i.h.bf16 %v1789_v48  ;;  %v2072_v48 = vsel %vm63_vm5, 1.0, %v1864_v21  ;;  %v1743_v21 = vld [vmem:[%s2363_s7 + $0x28] sm:$0xff] }
 0x2ae   :  { %338 = vmatpush.msra.mxu3 %v1790_v51  ;;  %422 = vmatpush.msra.mxu2 %v1790_v51 }
 0x2b0   :  { %339 = vmatpush.msra.mxu3 %v1791_v52  ;;  %423 = vmatpush.msra.mxu2 %v1791_v52 }
 0x2b1   :  { %1510 = vmatmul.msk.f32.vlgmr.msra.gmra.mxu3 %vm289_vm3, %v310_v53 }
 0x2b2   :  { %1512 = vmatpush.xpose.msk.msrb.mxu3 %vm255_vm0, %v254_v19  ;;  %v1822_v54 = vpop.eup %1821 }
 0x2b3   :  { %v311_v55 = vmul.f32 %v1822_v54, %v1818_v45 }
 0x2b6   :  { %1513 = vmatpush.xpose.msk.msrb.mxu3 %vm255_vm0, %v252_v23 }
 0x2b9   :  { %1511 = vmatmul.msk.f32.gmra.mxu3 %vm289_vm3, %v311_v55 }
 0x2c1   :  { %1514 = vmatmul.msk.f32.vlgmr.msrb.gmra.mxu3 %vm255_vm0, %v349_v57  ;;  %v1742_v57 = vld [vmem:[%s2363_s7 + $0x20] sm:$0xff] }
 0x2c9   :  { %1515 = vmatmul.msk.f32.gmra.mxu3 %vm255_vm0, %v350_v58  ;;  %v1741_v58 = vld [vmem:[%s2363_s7 + $0x18] sm:$0xff] }
 0x334   :  { %v341_v59 = vpop.f32.mrf.mxu3 }
 0x335   :  { %v347_v32 = vmul.f32 %v2004_v22, %v341_v59  ;;  %v1740_v59 = vld [vmem:[%s2363_s7 + $0x10] sm:$0xff] }
 0x33c   :  { %v344_v60 = vpop.f32.mrf.mxu3 }
 0x33d   :  { %v348_v34 = vmul.f32 %v2004_v22, %v344_v60  ;;  %v1739_v60 = vld [vmem:[%s2363_s7 + $0x8] sm:$0xff] }
 0x344   :  { %v374_v61 = vpop.f32.mrf.mxu3 }
 0x345   :  { %v375_v62 = vadd.f32 %v374_v61, %v2014_v28 }
 0x347   :  { %v380_v63 = vsel %vm289_vm3, %v375_v62, -inf }
 0x348   :  { %381 = vmax.xlane.f32.xlu1 %v380_v63  ;;  %v1738_v63 = vld [vmem:[%s2363_s7] sm:$0xff] }
 0x34c   :  { %v377_v0 = vpop.f32.mrf.mxu3 }
 0x34d   :  { %v378_v1 = vadd.f32 %v377_v0, %v2020_v33 }
 0x34f   :  { %v383_v2 = vsel %vm289_vm3, %v378_v1, -inf }
 0x350   :  { %384 = vmax.xlane.f32.xlu1 %v383_v2 }
 0x3bb   :  { %v382_v3 = vpop.xlane.xlu1 %381 }
 0x3bc   :  { %v386_v4 = vsub.f32 %v375_v62, %v382_v3 }
 0x3be   :  { %v388_v5 = vmul.f32 1.442695, %v386_v4 }
 0x3c0   :  { %1823 = vpow2.f32 %v388_v5 }
 0x3c3   :  { %v385_v6 = vpop.xlane.xlu1 %384 }
 0x3c4   :  { %v387_v7 = vsub.f32 %v378_v1, %v385_v6 }
 0x3c6   :  { %v1824_v10 = vpop.eup %1823  ;;  %v390_v11 = vmul.f32 1.442695, %v387_v7 }
 0x3c7   :  { %v392_v12 = vsel %vm289_vm3, %v1824_v10, 0.0 }
 0x3c8   :  { %1825 = vpow2.f32 %v390_v11  ;;  %393 = vadd.xlane.f32.xlu1 %v392_v12 }
 0x3ce   :  { %v1826_v13 = vpop.eup %1825 }
 0x3cf   :  { %v395_v14 = vsel %vm289_vm3, %v1826_v13, 0.0 }
 0x3d0   :  { %396 = vadd.xlane.f32.xlu2 %v395_v14 }
 0x43b   :  { %v394_v15 = vpop.xlane.xlu1 %393 }
 0x43c   :  { %1827 = vrcp.f32 %v394_v15 }
 0x442   :  { %v1828_v16 = vpop.eup %1827 }
 0x443   :  { %v397_v17 = vpop.xlane.xlu2 %396  ;;  %v400_v19 = vmul.f32 %v1828_v16, %v1824_v10 }
 0x444   :  { %1829 = vrcp.f32 %v397_v17 }
 0x445   :  { %1516 = vmatmul.msk.f32.vlgmr.msra.gmra.mxu2 %vm289_vm3, %v400_v19 }
 0x44a   :  { %v1830_v20 = vpop.eup %1829 }
 0x44b   :  { %v401_v23 = vmul.f32 %v1830_v20, %v1826_v13  ;;  %v1799_v20 = vld [vmem:[%s2360_s5] ss:$0 sm:$0xff] }
 0x44d   :  { %1517 = vmatmul.msk.f32.gmra.mxu2 %vm289_vm3, %v401_v23 }
 0x4c8   :  { %v425_v29 = vpop.f32.mrf.mxu2 }
 0x4c9   :  { %v431_v30 = vmul.f32 %v2036_v56, %v425_v29  ;;  %v1800_v29 = vld [vmem:[%s2361_s6] ss:$0 sm:$0xff] }
 0x4cb   :  { %v433_v36 = vadd.f32 %v431_v30, %v347_v32 }
 0x4d0   :  { %v428_v31 = vpop.f32.mrf.mxu2 }
 0x4d1   :  { %v432_v35 = vmul.f32 %v2036_v56, %v428_v31 }
 0x4d3   :  { %v434_v37 = vadd.f32 %v432_v35, %v348_v34  ;;  %v1747_v35 = vld [vmem:[%s2365_s9 + $0x8] sm:$0xff] }
 0x4d4   :  { %608 = vmatpush.bf16.msrb.mxu2 %v1747_v35 }
 0x4d5   :  { %v435_v38 = vpack.c.bf16 %v434_v37, %v433_v36  ;;  %v1746_v36 = vld [vmem:[%s2365_s9] sm:$0xff] }
 0x4d7   :  { %1518 = vmatmul.msk.bf16.vlgmr.msrb.gmra.mxu1 %vm255_vm0, %v435_v38  ;;  %v1801_v38 = vld [vmem:[%s2362_s8] ss:$0 sm:$0xff] }
 0x4d8   :  { %609 = vmatpush.bf16.msrb.mxu2 %v1746_v36  ;;  %v1804_v36 = vld [vmem:[%s2367_s12] ss:$0 sm:$0xff] }
 0x554   :  { %v455_v40 = vpop.f32.mrf.mxu1 }
 0x555   :  { %v456_v41 = vadd.f32 %v1798_v39, %v455_v40 }
 0x557   :  { %v460_v42 = vadd.f32 %v456_v41, %v1983_v8 }
 0x559   :  { %462 = vadd.xlane.f32.xlu1 %v460_v42 }
 0x55c   :  { %v457_v43 = vpop.f32.mrf.mxu1 }
 0x55d   :  { %v458_v44 = vadd.f32 %v1798_v39, %v457_v43 }
 0x55f   :  { %v461_v45 = vadd.f32 %v458_v44, %v1988_v9  ;;  %v1745_v9 = vld [vmem:[%s2363_s7 + $0x38] sm:$0xff] }
 0x560   :  { %566 = vmatpush.bf16.msra.mxu3 %v1745_v9 }
 0x561   :  { %464 = vadd.xlane.f32.xlu1 %v461_v45 }
 0x564   :  { %567 = vmatpush.bf16.msra.mxu3 %v1744_v18 }
 0x568   :  { %568 = vmatpush.bf16.msra.mxu3 %v1743_v21 }
 0x56c   :  { %569 = vmatpush.bf16.msra.mxu3 %v1742_v57 }
 0x570   :  { %570 = vmatpush.bf16.msra.mxu3 %v1741_v58 }
 0x574   :  { %571 = vmatpush.bf16.msra.mxu3 %v1740_v59 }
 0x578   :  { %572 = vmatpush.bf16.msra.mxu3 %v1739_v60  ;;  %v1755_v60 = vld [vmem:[%s2377_s26 + $0x78] sm:$0xff] }
 0x579   :  { %722 = vmatpush.bf16.msra.mxu1 %v1755_v60 }
 0x57c   :  { %573 = vmatpush.bf16.msra.mxu3 %v1738_v63  ;;  %v1752_v63 = vld [vmem:[%s2377_s26 + $0x60] sm:$0xff] }
 0x5cc   :  { %v463_v46 = vpop.xlane.xlu1 %462 }
 0x5cd   :  { %v466_v47 = vmul.f32 0.125, %v463_v46 }
 0x5cf   :  { %v468_v49 = vsub.f32 %v460_v42, %v466_v47 }
 0x5d1   :  { %v470_v50 = vmul.f32 %v2072_v48, %v468_v49 }
 0x5d3   :  { %v472_v51 = vmul.f32 %v470_v50, %v470_v50 }
 0x5d4   :  { %v465_v52 = vpop.xlane.xlu1 %464 }
 0x5d5   :  { %v467_v53 = vmul.f32 0.125, %v465_v52  ;;  %474 = vadd.xlane.f32.xlu1 %v472_v51 }
 0x5d7   :  { %v469_v8 = vsub.f32 %v461_v45, %v467_v53  ;;  %v1802_v45 = vld [vmem:[%s2364_s10] ss:$0 sm:$0xff] }
 0x5d9   :  { %v471_v54 = vmul.f32 %v2072_v48, %v469_v8 }
 0x5db   :  { %v473_v55 = vmul.f32 %v471_v54, %v471_v54 }
 0x5dd   :  { %476 = vadd.xlane.f32.xlu0 %v473_v55 }
 0x648   :  { %v475_v61 = vpop.xlane.xlu1 %474 }
 0x649   :  { %v478_v62 = vmul.f32 0.125, %v475_v61  ;;  %v1754_v61 = vld [vmem:[%s2377_s26 + $0x70] sm:$0xff] }
 0x64a   :  { %723 = vmatpush.bf16.msra.mxu1 %v1754_v61 }
 0x64b   :  { %v480_v0 = vadd.f32 1e-05, %v478_v62  ;;  %v1753_v62 = vld [vmem:[%s2377_s26 + $0x68] sm:$0xff] }
 0x64d   :  { %1831 = vrsqrt.f32 %v480_v0  ;;  %vm488_vm10 = vweird.f32 %v480_v0 }
 0x64e   :  { %724 = vmatpush.bf16.msra.mxu1 %v1753_v62 }
 0x650   :  { %v477_v1 = vpop.xlane.xlu0 %476 }
 0x651   :  { %v479_v2 = vmul.f32 0.125, %v477_v1  ;;  %v1750_v1 = vld [vmem:[%s2377_s26 + $0x50] sm:$0xff] }
 0x652   :  { %725 = vmatpush.bf16.msra.mxu1 %v1752_v63 }
 0x653   :  { %v1832_v3 = vpop.eup %1831  ;;  %v481_v4 = vadd.f32 1e-05, %v479_v2  ;;  %v1749_v2 = vld [vmem:[%s2377_s26 + $0x48] sm:$0xff] }
 0x654   :  { %v483_v5 = vmul.f32 %v1832_v3, %v480_v0  ;;  %vm489_vm9 = vweird.f32 %v1832_v3  ;;  %v1751_v0 = vld [vmem:[%s2377_s26 + $0x58] sm:$0xff] }
 0x655   :  { %1833 = vrsqrt.f32 %v481_v4  ;;  %vm490_vm11 = vmor %vm488_vm10, %vm489_vm9  ;;  %vm498_vm13 = vweird.f32 %v481_v4 }
 0x656   :  { %v484_v6 = vmul.f32 %v1832_v3, %v483_v5  ;;  %726 = vmatpush.bf16.msra.mxu1 %v1751_v0  ;;  %v1748_v5 = vld [vmem:[%s2377_s26 + $0x40] sm:$0xff] }
 0x658   :  { %v485_v7 = vmul.f32 0.5, %v484_v6 }
 0x65a   :  { %v486_v10 = vsub.f32 1.5, %v485_v7  ;;  %727 = vmatpush.bf16.msra.mxu1 %v1750_v1 }
 0x65b   :  { %v1834_v11 = vpop.eup %1833 }
 0x65c   :  { %v487_v12 = vmul.f32 %v1832_v3, %v486_v10  ;;  %v493_v13 = vmul.f32 %v1834_v11, %v481_v4  ;;  %vm499_vm12 = vweird.f32 %v1834_v11 }
 0x65d   :  { %vm500_vm14 = vmor %vm498_vm13, %vm499_vm12 }
 0x65e   :  { %v494_v14 = vmul.f32 %v1834_v11, %v493_v13  ;;  %v491_v15 = vsel %vm490_vm11, %v1832_v3, %v487_v12  ;;  %728 = vmatpush.bf16.msra.mxu1 %v1749_v2 }
 0x65f   :  { %v502_v19 = vmul.f32 %v491_v15, %v470_v50 }
 0x660   :  { %v495_v16 = vmul.f32 0.5, %v494_v14 }
 0x661   :  { %v507_v26 = vmul.f32 %v1799_v20, %v502_v19 }
 0x662   :  { %v496_v17 = vsub.f32 1.5, %v495_v16  ;;  %729 = vmatpush.bf16.msra.mxu1 %v1748_v5 }
 0x663   :  { %v512_v31 = vadd.f32 %v1800_v29, %v507_v26 }
 0x664   :  { %v497_v23 = vmul.f32 %v1834_v11, %v496_v17 }
 0x666   :  { %v501_v24 = vsel %vm500_vm14, %v1834_v11, %v497_v23 }
 0x667   :  { %v503_v25 = vmul.f32 %v501_v24, %v471_v54 }
 0x669   :  { %v508_v30 = vmul.f32 %v1799_v20, %v503_v25 }
 0x66b   :  { %v513_v32 = vadd.f32 %v1800_v29, %v508_v30  ;;  %v1803_v30 = vld [vmem:[%s2366_s11] ss:$0 sm:$0xff] }
 0x66d   :  { %v514_v34 = vpack.c.bf16 %v513_v32, %v512_v31 }
 0x66f   :  { %574 = vmatmul.bf16.vlgmr.msra.gmra.mxu3 %v514_v34 }
 0x6f2   :  { %v575_v37 = vpop.f32.mrf.mxu3 }
 0x6f3   :  { %v576_v39 = vadd.f32 %v1801_v38, %v575_v37 }
 0x6f5   :  { %v580_v42 = vmax.f32 %v576_v39, 0.0 }
 0x6fa   :  { %v577_v40 = vpop.f32.mrf.mxu3 }
 0x6fb   :  { %v578_v41 = vadd.f32 %v1801_v38, %v577_v40 }
 0x6fd   :  { %v581_v43 = vmax.f32 %v578_v41, 0.0  ;;  %v1805_v41 = vld [vmem:[%s2378_s19 + $0x1] ss:$0 sm:$0xff] }
 0x6ff   :  { %v582_v44 = vpack.c.bf16 %v581_v43, %v580_v42 }
 0x701   :  { %1559 = vmatmul.msk.bf16.vlgmr.msrb.gmra.mxu2 %vm598_vm15, %v582_v44 }
 0x784   :  { %v611_v46 = vpop.f32.mrf.mxu2 }
 0x785   :  { %v612_v47 = vadd.f32 %v1802_v45, %v611_v46 }
 0x787   :  { %v616_v49 = vadd.f32 %v612_v47, %v512_v31 }
 0x789   :  { %618 = vadd.xlane.f32.xlu1 %v616_v49 }
 0x78c   :  { %v613_v50 = vpop.f32.mrf.mxu2 }
 0x78d   :  { %v614_v51 = vadd.f32 %v1802_v45, %v613_v50 }
 0x78f   :  { %v617_v52 = vadd.f32 %v614_v51, %v513_v32 }
 0x791   :  { %620 = vadd.xlane.f32.xlu0 %v617_v52 }
 0x7fc   :  { %v619_v53 = vpop.xlane.xlu1 %618 }
 0x7fd   :  { %v622_v8 = vmul.f32 0.125, %v619_v53 }
 0x7ff   :  { %v624_v54 = vsub.f32 %v616_v49, %v622_v8 }
 0x801   :  { %v626_v55 = vmul.f32 %v2072_v48, %v624_v54 }
 0x803   :  { %v628_v9 = vmul.f32 %v626_v55, %v626_v55 }
 0x804   :  { %v621_v18 = vpop.xlane.xlu0 %620 }
 0x805   :  { %v623_v21 = vmul.f32 0.125, %v621_v18  ;;  %630 = vadd.xlane.f32.xlu1 %v628_v9 }
 0x807   :  { %v625_v57 = vsub.f32 %v617_v52, %v623_v21 }
 0x809   :  { %v627_v58 = vmul.f32 %v2072_v48, %v625_v57 }
 0x80b   :  { %v629_v59 = vmul.f32 %v627_v58, %v627_v58 }
 0x80d   :  { %632 = vadd.xlane.f32.xlu2 %v629_v59 }
 0x878   :  { %v631_v3 = vpop.xlane.xlu1 %630 }
 0x879   :  { %v634_v4 = vmul.f32 0.125, %v631_v3 }
 0x87b   :  { %v636_v6 = vadd.f32 1e-05, %v634_v4 }
 0x87d   :  { %1835 = vrsqrt.f32 %v636_v6  ;;  %vm644_vm2 = vweird.f32 %v636_v6 }
 0x880   :  { %v633_v7 = vpop.xlane.xlu2 %632 }
 0x881   :  { %v635_v10 = vmul.f32 0.125, %v633_v7 }
 0x883   :  { %v1836_v11 = vpop.eup %1835  ;;  %v637_v12 = vadd.f32 1e-05, %v635_v10 }
 0x884   :  { %v639_v13 = vmul.f32 %v1836_v11, %v636_v6  ;;  %vm645_vm1 = vweird.f32 %v1836_v11 }
 0x885   :  { %1837 = vrsqrt.f32 %v637_v12  ;;  %vm646_vm4 = vmor %vm644_vm2, %vm645_vm1  ;;  %vm654_vm6 = vweird.f32 %v637_v12 }
 0x886   :  { %v640_v14 = vmul.f32 %v1836_v11, %v639_v13 }
 0x888   :  { %v641_v15 = vmul.f32 0.5, %v640_v14 }
 0x88a   :  { %v642_v16 = vsub.f32 1.5, %v641_v15 }
 0x88b   :  { %v1838_v17 = vpop.eup %1837 }
 0x88c   :  { %v643_v19 = vmul.f32 %v1836_v11, %v642_v16  ;;  %v649_v20 = vmul.f32 %v1838_v17, %v637_v12  ;;  %vm655_vm5 = vweird.f32 %v1838_v17 }
 0x88d   :  { %vm656_vm7 = vmor %vm654_vm6, %vm655_vm5 }
 0x88e   :  { %v650_v23 = vmul.f32 %v1838_v17, %v649_v20  ;;  %v647_v24 = vsel %vm646_vm4, %v1836_v11, %v643_v19 }
 0x88f   :  { %v658_v29 = vmul.f32 %v647_v24, %v626_v55 }
 0x890   :  { %v651_v25 = vmul.f32 0.5, %v650_v23 }
 0x891   :  { %v663_v35 = vmul.f32 %v1803_v30, %v658_v29 }
 0x892   :  { %v652_v26 = vsub.f32 1.5, %v651_v25 }
 0x893   :  { %v2151_v38 = vadd.f32 %v1804_v36, %v663_v35 }
 0x894   :  { %v653_v31 = vmul.f32 %v1838_v17, %v652_v26 }
 0x896   :  { %v657_v32 = vsel %vm656_vm7, %v1838_v17, %v653_v31 }
 0x897   :  { %v659_v34 = vmul.f32 %v657_v32, %v627_v58 }
 0x899   :  { %v664_v37 = vmul.f32 %v1803_v30, %v659_v34 }
 0x89b   :  { %v2153_v39 = vadd.f32 %v1804_v36, %v664_v37 }
 0x89d   :  { %v670_v40 = vpack.c.bf16 %v2153_v39, %v2151_v38 }
 0x89f   :  { %730 = vmatmul.bf16.vlgmr.msra.gmra.mxu1 %v670_v40 }
 0x91c   :  { %v731_v42 = vpop.f32.mrf.mxu1 }
 0x91d   :  { %v732_v43 = vadd.f32 %v1805_v41, %v731_v42 }
 0x91f   :  { %742 = vrot.lane.b32.xlu1 %v732_v43, %s1863_s2  ;;  %v736_v49 = vmul.f32 0.5, %v732_v43 }
 0x921   :  { %v738_v52 = vmul.f32 %v2004_v22, %v736_v49  ;;  %v838_v8 = vmul.f32 %v2036_v56, %v736_v49 }
 0x924   :  { %v733_v44 = vpop.f32.mrf.mxu1 }
 0x925   :  { %v734_v45 = vadd.f32 %v1805_v41, %v733_v44 }
 0x927   :  { %744 = vrot.lane.b32.xlu0 %v734_v45, %s1863_s2  ;;  %v1792_v46 = vpack.i.bf16 %v732_v43, %v734_v45  ;;  %v737_v50 = vmul.f32 0.5, %v734_v45 }
 0x929   :  { %v739_v53 = vmul.f32 %v2004_v22, %v737_v50  ;;  %v839_v54 = vmul.f32 %v2036_v56, %v737_v50 }
 0x991   :  { %v743_v51 = vpop.permute.xlu1 %742 }
 0x999   :  { %v745_v47 = vpop.permute.xlu0 %744 }
 0x99a   :  { %1592 = vmatpush.xpose.msk.msrb.mxu0 %vm255_vm0, %v745_v47  ;;  %1782 = vmatpush.xpose.msk.msra.mxu2 %vm255_vm0, %v745_v47 }
 0x99b   :  { %1598 = vmatpush.xpose.msk.msrb.mxu3 %vm255_vm0, %v745_v47 }
 0x99e   :  { %1593 = vmatpush.xpose.msk.msrb.mxu0 %vm255_vm0, %v743_v51  ;;  %1783 = vmatpush.xpose.msk.msra.mxu2 %vm255_vm0, %v743_v51 }
 0x99f   :  { %1599 = vmatpush.xpose.msk.msrb.mxu3 %vm255_vm0, %v743_v51 }
 0x9a1   :  { %1594 = vmatmul.msk.f32.vlgmr.msrb.gmra.mxu0 %vm255_vm0, %v738_v52  ;;  %1595 = vmatmul.msk.f32.vlgmr.msra.gmra.mxu2 %vm255_vm0, %v739_v53 }
 0x9a2   :  { %1600 = vmatmul.msk.f32.vlgmr.msrb.gmra.mxu3 %vm255_vm0, %v838_v8 }
 0x9aa   :  { %1601 = vmatmul.msk.f32.gmra.mxu3 %vm255_vm0, %v839_v54  ;;  %v1806_v54 = vld [vmem:[%s2358_s4 + $0x1] ss:$0 sm:$0xff] }
 0xa1e   :  { %v773_v55 = vpop.f32.mrf.mxu0 }
 0xa1f   :  { %v774_v9 = vadd.f32 %v773_v55, %v2014_v28 }
 0xa21   :  { %v779_v18 = vsel %vm289_vm3, %v774_v9, -inf }
 0xa22   :  { %780 = vmax.xlane.f32.xlu2 %v779_v18 }
 0xa24   :  { %v776_v21 = vpop.f32.mrf.mxu2 }
 0xa25   :  { %v777_v57 = vadd.f32 %v776_v21, %v2020_v33  ;;  %v863_v58 = vpop.f32.mrf.mxu3 }
 0xa26   :  { %v864_v59 = vadd.f32 %v863_v58, %v2014_v28 }
 0xa27   :  { %v782_v60 = vsel %vm289_vm3, %v777_v57, -inf }
 0xa28   :  { %783 = vmax.xlane.f32.xlu0 %v782_v60  ;;  %v869_v61 = vsel %vm289_vm3, %v864_v59, -inf }
 0xa2a   :  { %870 = vmax.xlane.f32.xlu2 %v869_v61 }
 0xa2d   :  { %v866_v62 = vpop.f32.mrf.mxu3 }
 0xa2e   :  { %v867_v63 = vadd.f32 %v866_v62, %v2020_v33 }
 0xa30   :  { %v872_v0 = vsel %vm289_vm3, %v867_v63, -inf }
 0xa32   :  { %873 = vmax.xlane.f32.xlu2 %v872_v0 }
 0xa4a   :  { %1793 = vrot.lane.b32.xlu2 %v1792_v46, %s1865_s0 }
 0xa95   :  { %v781_v1 = vpop.xlane.xlu2 %780 }
 0xa96   :  { %v785_v2 = vsub.f32 %v774_v9, %v781_v1 }
 0xa98   :  { %v787_v3 = vmul.f32 1.442695, %v785_v2 }
 0xa9a   :  { %1839 = vpow2.f32 %v787_v3  ;;  %v1761_v3 = vld [vmem:[%s2363_s7 + $0x68] sm:$0xff] }
 0xa9b   :  { %v784_v4 = vpop.xlane.xlu0 %783 }
 0xa9c   :  { %v786_v28 = vsub.f32 %v777_v57, %v784_v4  ;;  %v1760_v4 = vld [vmem:[%s2363_s7 + $0x60] sm:$0xff] }
 0xa9d   :  { %v871_v5 = vpop.xlane.xlu2 %870 }
 0xa9e   :  { %v789_v6 = vmul.f32 1.442695, %v786_v28  ;;  %v875_v7 = vsub.f32 %v864_v59, %v871_v5  ;;  %v1759_v28 = vld [vmem:[%s2363_s7 + $0x58] sm:$0xff]  ;;  %v1758_v5 = vld [vmem:[%s2363_s7 + $0x50] sm:$0xff] }
 0xaa0   :  { %v1840_v10 = vpop.eup %1839  ;;  %1841 = vpow2.f32 %v789_v6  ;;  %v877_v11 = vmul.f32 1.442695, %v875_v7  ;;  %v1757_v6 = vld [vmem:[%s2363_s7 + $0x48] sm:$0xff] }
 0xaa1   :  { %v791_v12 = vsel %vm289_vm3, %v1840_v10, 0.0 }
 0xaa2   :  { %1843 = vpow2.f32 %v877_v11  ;;  %792 = vadd.xlane.f32.xlu1 %v791_v12  ;;  %v1756_v11 = vld [vmem:[%s2363_s7 + $0x40] sm:$0xff] }
 0xaa5   :  { %v874_v33 = vpop.xlane.xlu2 %873 }
 0xaa6   :  { %v1842_v13 = vpop.eup %1841  ;;  %v876_v14 = vsub.f32 %v867_v63, %v874_v33 }
 0xaa7   :  { %v794_v15 = vsel %vm289_vm3, %v1842_v13, 0.0 }
 0xaa8   :  { %v1844_v16 = vpop.eup %1843  ;;  %v879_v17 = vmul.f32 1.442695, %v876_v14  ;;  %795 = vadd.xlane.f32.xlu0 %v794_v15 }
 0xaa9   :  { %v881_v19 = vsel %vm289_vm3, %v1844_v16, 0.0 }
 0xaaa   :  { %1845 = vpow2.f32 %v879_v17  ;;  %882 = vadd.xlane.f32.xlu2 %v881_v19 }
 0xaad   :  { %v1794_v20 = vpop.permute.xlu2 %1793 }
 0xaae   :  { %v1795_v23 = vunpack.i.l.bf16 %v1794_v20  ;;  %v1796_v25 = vunpack.i.h.bf16 %v1794_v20 }
 0xab0   :  { %v1846_v24 = vpop.eup %1845  ;;  %827 = vmatpush.msrb.mxu2 %v1795_v23  ;;  %911 = vmatpush.msra.mxu0 %v1795_v23 }
 0xab1   :  { %v884_v26 = vsel %vm289_vm3, %v1846_v24, 0.0 }
 0xab2   :  { %885 = vadd.xlane.f32.xlu2 %v884_v26  ;;  %828 = vmatpush.msrb.mxu2 %v1796_v25 }
 0xab3   :  { %912 = vmatpush.msra.mxu0 %v1796_v25 }
 0xab4   :  { %941 = vmatpush.bf16.msra.mxu2 %v2057_v27 }
 0xb15   :  { %v793_v29 = vpop.xlane.xlu1 %792 }
 0xb16   :  { %1847 = vrcp.f32 %v793_v29 }
 0xb1b   :  { %v796_v30 = vpop.xlane.xlu0 %795 }
 0xb1c   :  { %v1848_v31 = vpop.eup %1847  ;;  %1849 = vrcp.f32 %v796_v30 }
 0xb1d   :  { %v799_v32 = vmul.f32 %v1848_v31, %v1840_v10  ;;  %v883_v34 = vpop.xlane.xlu2 %882 }
 0xb1e   :  { %1851 = vrcp.f32 %v883_v34  ;;  %v1807_v34 = vld [vmem:[%s2360_s5 + $0x1] ss:$0 sm:$0xff] }
 0xb1f   :  { %1596 = vmatmul.msk.f32.vlgmr.msrb.gmra.mxu2 %vm289_vm3, %v799_v32 }
 0xb22   :  { %v1850_v35 = vpop.eup %1849 }
 0xb23   :  { %v800_v41 = vmul.f32 %v1850_v35, %v1842_v13 }
 0xb24   :  { %v1852_v36 = vpop.eup %1851 }
 0xb25   :  { %v889_v37 = vmul.f32 %v1852_v36, %v1844_v16  ;;  %v886_v40 = vpop.xlane.xlu2 %885 }
 0xb26   :  { %1853 = vrcp.f32 %v886_v40 }
 0xb27   :  { %1597 = vmatmul.msk.f32.gmra.mxu2 %vm289_vm3, %v800_v41  ;;  %1602 = vmatmul.msk.f32.vlgmr.msra.gmra.mxu0 %vm289_vm3, %v889_v37  ;;  %v1808_v41 = vld [vmem:[%s2361_s6 + $0x1] ss:$0 sm:$0xff] }
 0xb2c   :  { %v1854_v27 = vpop.eup %1853 }
 0xb2d   :  { %v890_v42 = vmul.f32 %v1854_v27, %v1846_v24 }
 0xb2f   :  { %1603 = vmatmul.msk.f32.gmra.mxu0 %vm289_vm3, %v890_v42 }
 0xba2   :  { %v830_v43 = vpop.f32.mrf.mxu2 }
 0xba3   :  { %v836_v49 = vmul.f32 %v2004_v22, %v830_v43 }
 0xba4   :  { %v914_v44 = vpop.f32.mrf.mxu0 }
 0xba5   :  { %v920_v46 = vmul.f32 %v2036_v56, %v914_v44 }
 0xba7   :  { %v922_v52 = vadd.f32 %v920_v46, %v836_v49  ;;  %v1764_v46 = vld [vmem:[%s2365_s9 + $0x10] sm:$0xff]  ;;  %v1809_v49 = vld [vmem:[%s2362_s8 + $0x1] ss:$0 sm:$0xff] }
 0xbaa   :  { %v833_v45 = vpop.f32.mrf.mxu2 }
 0xbab   :  { %v837_v50 = vmul.f32 %v2004_v22, %v833_v45  ;;  %v1765_v45 = vld [vmem:[%s2365_s9 + $0x18] sm:$0xff] }
 0xbac   :  { %v917_v47 = vpop.f32.mrf.mxu0  ;;  %1095 = vmatpush.bf16.msra.mxu3 %v1765_v45 }
 0xbad   :  { %v921_v51 = vmul.f32 %v2036_v56, %v917_v47 }
 0xbaf   :  { %v923_v53 = vadd.f32 %v921_v51, %v837_v50 }
 0xbb0   :  { %1096 = vmatpush.bf16.msra.mxu3 %v1764_v46 }
 0xbb1   :  { %v924_v8 = vpack.c.bf16 %v923_v53, %v922_v52 }
 0xbb3   :  { %1604 = vmatmul.msk.bf16.vlgmr.msra.gmra.mxu2 %vm255_vm0, %v924_v8 }
 0xc36   :  { %v943_v55 = vpop.f32.mrf.mxu2 }
 0xc37   :  { %v944_v9 = vadd.f32 %v1806_v54, %v943_v55  ;;  %v1810_v55 = vld [vmem:[%s2364_s10 + $0x1] ss:$0 sm:$0xff] }
 0xc39   :  { %v948_v18 = vadd.f32 %v944_v9, %v2151_v38  ;;  %v1763_v38 = vld [vmem:[%s2363_s7 + $0x78] sm:$0xff] }
 0xc3a   :  { %1054 = vmatpush.bf16.msrb.mxu1 %v1763_v38 }
 0xc3b   :  { %950 = vadd.xlane.f32.xlu0 %v948_v18 }
 0xc3e   :  { %v945_v21 = vpop.f32.mrf.mxu2 }
 0xc3f   :  { %v946_v57 = vadd.f32 %v1806_v54, %v945_v21 }
 0xc41   :  { %v949_v22 = vadd.f32 %v946_v57, %v2153_v39  ;;  %v1762_v39 = vld [vmem:[%s2363_s7 + $0x70] sm:$0xff] }
 0xc42   :  { %1055 = vmatpush.bf16.msrb.mxu1 %v1762_v39  ;;  %v1773_v39 = vld [vmem:[%s2369_s13 + $0x38] sm:$0xff] }
 0xc43   :  { %952 = vadd.xlane.f32.xlu1 %v949_v22  ;;  %1228 = vmatpush.bf16.msrb.mxu0 %v1773_v39 }
 0xc46   :  { %1056 = vmatpush.bf16.msrb.mxu1 %v1761_v3  ;;  %v1781_v3 = vld [vmem:[%s2369_s13 + $0x78] sm:$0xff] }
 0xc47   :  { %1355 = vmatpush.bf16.msrb.mxu2 %v1781_v3 }
 0xc4a   :  { %1057 = vmatpush.bf16.msrb.mxu1 %v1760_v4  ;;  %v1772_v4 = vld [vmem:[%s2369_s13 + $0x30] sm:$0xff] }
 0xc4b   :  { %1229 = vmatpush.bf16.msrb.mxu0 %v1772_v4 }
 0xc4e   :  { %1058 = vmatpush.bf16.msrb.mxu1 %v1759_v28  ;;  %v1771_v28 = vld [vmem:[%s2369_s13 + $0x28] sm:$0xff] }
 0xc4f   :  { %1230 = vmatpush.bf16.msrb.mxu0 %v1771_v28 }
 0xc52   :  { %1059 = vmatpush.bf16.msrb.mxu1 %v1758_v5  ;;  %v1779_v5 = vld [vmem:[%s2369_s13 + $0x68] sm:$0xff] }
 0xc56   :  { %1060 = vmatpush.bf16.msrb.mxu1 %v1757_v6  ;;  %v1770_v6 = vld [vmem:[%s2369_s13 + $0x20] sm:$0xff] }
 0xc57   :  { %1231 = vmatpush.bf16.msrb.mxu0 %v1770_v6 }
 0xc5a   :  { %1061 = vmatpush.bf16.msrb.mxu1 %v1756_v11  ;;  %v1777_v11 = vld [vmem:[%s2369_s13 + $0x58] sm:$0xff] }
 0xcae   :  { %v951_v56 = vpop.xlane.xlu0 %950 }
 0xcaf   :  { %v954_v58 = vmul.f32 0.125, %v951_v56 }
 0xcb1   :  { %v956_v59 = vsub.f32 %v948_v18, %v954_v58 }
 0xcb3   :  { %v958_v60 = vmul.f32 %v2072_v48, %v956_v59 }
 0xcb5   :  { %v960_v61 = vmul.f32 %v958_v60, %v958_v60 }
 0xcb6   :  { %v953_v62 = vpop.xlane.xlu1 %952 }
 0xcb7   :  { %v955_v63 = vmul.f32 0.125, %v953_v62  ;;  %962 = vadd.xlane.f32.xlu0 %v960_v61 }
 0xcb9   :  { %v957_v0 = vsub.f32 %v949_v22, %v955_v63 }
 0xcbb   :  { %v959_v1 = vmul.f32 %v2072_v48, %v957_v0 }
 0xcbd   :  { %v961_v2 = vmul.f32 %v959_v1, %v959_v1 }
 0xcbf   :  { %964 = vadd.xlane.f32.xlu1 %v961_v2 }
 0xd2a   :  { %v963_v7 = vpop.xlane.xlu0 %962 }
 0xd2b   :  { %v966_v10 = vmul.f32 0.125, %v963_v7  ;;  %v1778_v7 = vld [vmem:[%s2369_s13 + $0x60] sm:$0xff] }
 0xd2d   :  { %v968_v12 = vadd.f32 1e-05, %v966_v10  ;;  %v1769_v10 = vld [vmem:[%s2369_s13 + $0x18] sm:$0xff] }
 0xd2e   :  { %1232 = vmatpush.bf16.msrb.mxu0 %v1769_v10 }
 0xd2f   :  { %1855 = vrsqrt.f32 %v968_v12  ;;  %vm976_vm9 = vweird.f32 %v968_v12 }
 0xd32   :  { %v965_v33 = vpop.xlane.xlu1 %964 }
 0xd33   :  { %v967_v13 = vmul.f32 0.125, %v965_v33  ;;  %v1776_v33 = vld [vmem:[%s2369_s13 + $0x50] sm:$0xff] }
 0xd35   :  { %v1856_v14 = vpop.eup %1855  ;;  %v969_v15 = vadd.f32 1e-05, %v967_v13  ;;  %v1767_v13 = vld [vmem:[%s2369_s13 + $0x8] sm:$0xff] }
 0xd36   :  { %v971_v16 = vmul.f32 %v1856_v14, %v968_v12  ;;  %vm977_vm8 = vweird.f32 %v1856_v14  ;;  %v1768_v12 = vld [vmem:[%s2369_s13 + $0x10] sm:$0xff] }
 0xd37   :  { %1857 = vrsqrt.f32 %v969_v15  ;;  %vm978_vm10 = vmor %vm976_vm9, %vm977_vm8  ;;  %vm986_vm12 = vweird.f32 %v969_v15  ;;  %1233 = vmatpush.bf16.msrb.mxu0 %v1768_v12 }
 0xd38   :  { %v972_v17 = vmul.f32 %v1856_v14, %v971_v16 }
 0xd3a   :  { %v973_v19 = vmul.f32 0.5, %v972_v17  ;;  %v1766_v17 = vld [vmem:[%s2369_s13] sm:$0xff] }
 0xd3b   :  { %1234 = vmatpush.bf16.msrb.mxu0 %v1767_v13 }
 0xd3c   :  { %v974_v20 = vsub.f32 1.5, %v973_v19  ;;  %v1774_v19 = vld [vmem:[%s2369_s13 + $0x40] sm:$0xff] }
 0xd3d   :  { %v1858_v23 = vpop.eup %1857 }
 0xd3e   :  { %v975_v24 = vmul.f32 %v1856_v14, %v974_v20  ;;  %v981_v25 = vmul.f32 %v1858_v23, %v969_v15  ;;  %vm987_vm11 = vweird.f32 %v1858_v23 }
 0xd3f   :  { %vm988_vm13 = vmor %vm986_vm12, %vm987_vm11  ;;  %1235 = vmatpush.bf16.msrb.mxu0 %v1766_v17 }
 0xd40   :  { %v982_v26 = vmul.f32 %v1858_v23, %v981_v25  ;;  %v979_v29 = vsel %vm978_vm10, %v1856_v14, %v975_v24  ;;  %v1775_v14 = vld [vmem:[%s2369_s13 + $0x48] sm:$0xff] }
 0xd41   :  { %v990_v32 = vmul.f32 %v979_v29, %v958_v60 }
 0xd42   :  { %v983_v30 = vmul.f32 0.5, %v982_v26 }
 0xd43   :  { %v995_v40 = vmul.f32 %v1807_v34, %v990_v32 }
 0xd44   :  { %v984_v31 = vsub.f32 1.5, %v983_v30 }
 0xd45   :  { %v1000_v42 = vadd.f32 %v1808_v41, %v995_v40 }
 0xd46   :  { %v985_v35 = vmul.f32 %v1858_v23, %v984_v31 }
 0xd48   :  { %v989_v36 = vsel %vm988_vm13, %v1858_v23, %v985_v35 }
 0xd49   :  { %v991_v37 = vmul.f32 %v989_v36, %v959_v1 }
 0xd4b   :  { %v996_v27 = vmul.f32 %v1807_v34, %v991_v37  ;;  %v1811_v37 = vld [vmem:[%s2366_s11 + $0x1] ss:$0 sm:$0xff] }
 0xd4d   :  { %v1001_v43 = vadd.f32 %v1808_v41, %v996_v27 }
 0xd4f   :  { %v1002_v44 = vpack.c.bf16 %v1001_v43, %v1000_v42 }
 0xd51   :  { %1062 = vmatmul.bf16.vlgmr.msrb.gmra.mxu1 %v1002_v44 }
 0xdce   :  { %v1063_v47 = vpop.f32.mrf.mxu1 }
 0xdcf   :  { %v1064_v50 = vadd.f32 %v1809_v49, %v1063_v47 }
 0xdd1   :  { %v1068_v53 = vmax.f32 %v1064_v50, 0.0 }
 0xdd6   :  { %v1065_v51 = vpop.f32.mrf.mxu1 }
 0xdd7   :  { %v1066_v52 = vadd.f32 %v1809_v49, %v1065_v51 }
 0xdd9   :  { %v1069_v8 = vmax.f32 %v1066_v52, 0.0 }
 0xddb   :  { %v1070_v54 = vpack.c.bf16 %v1069_v8, %v1068_v53  ;;  %v1813_v8 = vld [vmem:[%s2368_s14] ss:$0 sm:$0xff] }
 0xddd   :  { %1645 = vmatmul.msk.bf16.vlgmr.msra.gmra.mxu3 %vm598_vm15, %v1070_v54 }
 0xe60   :  { %v1098_v9 = vpop.f32.mrf.mxu3 }
 0xe61   :  { %v1099_v18 = vadd.f32 %v1810_v55, %v1098_v9  ;;  %v1814_v9 = vld [vmem:[%s2368_s14 + $0x1] ss:$0 sm:$0xff] }
 0xe63   :  { %v1103_v21 = vadd.f32 %v1099_v18, %v1000_v42  ;;  %v1812_v42 = vld [vmem:[%s2367_s12 + $0x1] ss:$0 sm:$0xff] }
 0xe65   :  { %1105 = vadd.xlane.f32.xlu0 %v1103_v21 }
 0xe68   :  { %v1100_v57 = vpop.f32.mrf.mxu3 }
 0xe69   :  { %v1101_v22 = vadd.f32 %v1810_v55, %v1100_v57 }
 0xe6b   :  { %v1104_v56 = vadd.f32 %v1101_v22, %v1001_v43 }
 0xe6d   :  { %1107 = vadd.xlane.f32.xlu1 %v1104_v56 }
 0xed8   :  { %v1106_v58 = vpop.xlane.xlu0 %1105 }
 0xed9   :  { %v1109_v59 = vmul.f32 0.125, %v1106_v58 }
 0xedb   :  { %v1111_v60 = vsub.f32 %v1103_v21, %v1109_v59 }
 0xedd   :  { %v2250_v61 = vmul.f32 %v2072_v48, %v1111_v60 }
 0xedf   :  { %v1115_v62 = vmul.f32 %v2250_v61, %v2250_v61 }
 0xee0   :  { %v1108_v63 = vpop.xlane.xlu1 %1107 }
 0xee1   :  { %v1110_v0 = vmul.f32 0.125, %v1108_v63  ;;  %1117 = vadd.xlane.f32.xlu0 %v1115_v62 }
 0xee3   :  { %v1112_v1 = vsub.f32 %v1104_v56, %v1110_v0 }
 0xee5   :  { %v2255_v2 = vmul.f32 %v2072_v48, %v1112_v1  ;;  %v1780_v48 = vld [vmem:[%s2369_s13 + $0x70] sm:$0xff] }
 0xee6   :  { %1356 = vmatpush.bf16.msrb.mxu2 %v1780_v48 }
 0xee7   :  { %v1116_v38 = vmul.f32 %v2255_v2, %v2255_v2 }
 0xee9   :  { %1119 = vadd.xlane.f32.xlu1 %v1116_v38 }
 0xeea   :  { %1357 = vmatpush.bf16.msrb.mxu2 %v1779_v5 }
 0xeee   :  { %1358 = vmatpush.bf16.msrb.mxu2 %v1778_v7 }
 0xef2   :  { %1359 = vmatpush.bf16.msrb.mxu2 %v1777_v11 }
 0xef6   :  { %1360 = vmatpush.bf16.msrb.mxu2 %v1776_v33 }
 0xefa   :  { %1361 = vmatpush.bf16.msrb.mxu2 %v1775_v14 }
 0xefe   :  { %1362 = vmatpush.bf16.msrb.mxu2 %v1774_v19 }
 0xf54   :  { %v1118_v15 = vpop.xlane.xlu0 %1117 }
 0xf55   :  { %v1121_v16 = vmul.f32 0.125, %v1118_v15 }
 0xf57   :  { %v1123_v20 = vadd.f32 1e-05, %v1121_v16 }
 0xf59   :  { %1859 = vrsqrt.f32 %v1123_v20  ;;  %vm1131_vm15 = vweird.f32 %v1123_v20 }
 0xf5c   :  { %v1120_v23 = vpop.xlane.xlu1 %1119 }
 0xf5d   :  { %v1122_v24 = vmul.f32 0.125, %v1120_v23 }
 0xf5f   :  { %v1860_v25 = vpop.eup %1859  ;;  %v1124_v26 = vadd.f32 1e-05, %v1122_v24 }
 0xf60   :  { %v1126_v29 = vmul.f32 %v1860_v25, %v1123_v20  ;;  %vm1132_vm14 = vweird.f32 %v1860_v25 }
 0xf61   :  { %1861 = vrsqrt.f32 %v1124_v26  ;;  %vm1133_vm1 = vmor %vm1131_vm15, %vm1132_vm14  ;;  %vm1141_vm4 = vweird.f32 %v1124_v26 }
 0xf62   :  { %v1127_v30 = vmul.f32 %v1860_v25, %v1126_v29 }
 0xf64   :  { %v1128_v31 = vmul.f32 0.5, %v1127_v30 }
 0xf66   :  { %v1129_v32 = vsub.f32 1.5, %v1128_v31 }
 0xf67   :  { %v1862_v34 = vpop.eup %1861 }
 0xf68   :  { %v1130_v35 = vmul.f32 %v1860_v25, %v1129_v32  ;;  %v1136_v36 = vmul.f32 %v1862_v34, %v1124_v26  ;;  %vm1142_vm2 = vweird.f32 %v1862_v34 }
 0xf69   :  { %vm1143_vm5 = vmor %vm1141_vm4, %vm1142_vm2 }
 0xf6a   :  { %v1134_v40 = vsel %vm1133_vm1, %v1860_v25, %v1130_v35  ;;  %v1137_v41 = vmul.f32 %v1862_v34, %v1136_v36 }
 0xf6b   :  { %v1145_v27 = vmul.f32 %v1134_v40, %v2250_v61 }
 0xf6c   :  { %v1138_v43 = vmul.f32 0.5, %v1137_v41 }
 0xf6d   :  { %v1150_v44 = vmul.f32 %v1811_v37, %v1145_v27 }
 0xf6e   :  { %v1139_v45 = vsub.f32 1.5, %v1138_v43 }
 0xf6f   :  { %v1155_v46 = vadd.f32 %v1812_v42, %v1150_v44 }
 0xf70   :  { %v1140_v47 = vmul.f32 %v1862_v34, %v1139_v45 }
 0xf71   :  { %1157 = vst [vmem:[%s2370_s15] sm:$0xff] %v1155_v46 }
 0xf72   :  { %v1144_v49 = vsel %vm1143_vm5, %v1862_v34, %v1140_v47 }
 0xf73   :  { %v1146_v50 = vmul.f32 %v1144_v49, %v2255_v2 }
 0xf75   :  { %v1151_v51 = vmul.f32 %v1811_v37, %v1146_v50 }
 0xf77   :  { %v1156_v52 = vadd.f32 %v1812_v42, %v1151_v51 }
 0xf79   :  { %1158 = vst [vmem:[%s2370_s15 + $0x8] sm:$0xff] %v1156_v52  ;;  %v1159_v53 = vpack.c.bf16 %v1156_v52, %v1155_v46 }
 0xf7b   :  { %1236 = vmatmul.bf16.vlgmr.msrb.gmra.mxu0 %v1159_v53  ;;  %1363 = vmatmul.bf16.vlgmr.msrb.gmra.mxu2 %v1159_v53 }
 0xff8   :  { %v1237_v54 = vpop.f32.mrf.mxu0 }
 0xff9   :  { %v1238_v55 = vadd.f32 %v1813_v8, %v1237_v54 }
 0xffb   :  { %1277 = vrot.lane.b32.xlu2 %v1238_v55, %s1863_s2  ;;  %1242 = vxpose.xlu0.b32.start [1/2] (short) (narrow) %v1238_v55, 8 }
 0xffe   :  { %v1364_v18 = vpop.f32.mrf.mxu2 }
 0xfff   :  { %v1365_v57 = vadd.f32 %v1814_v9, %v1364_v18 }
0x1000   :  { %v1239_v21 = vpop.f32.mrf.mxu0 }
0x1001   :  { %v1240_v22 = vadd.f32 %v1813_v8, %v1239_v21 }
0x1003   :  { %1279 = vrot.lane.b32.xlu1 %v1240_v22, %s1863_s2  ;;  %1405 = vrot.lane.b32.xlu2 %v1365_v57, %s1863_s2 }
0x1004   :  { %1243 = vxpose.xlu0.b32.end [2/2] (short) (narrow) %v1240_v22, 8 }
0x1006   :  { %v1366_v56 = vpop.f32.mrf.mxu2 }
0x1007   :  { %v1367_v58 = vadd.f32 %v1814_v9, %v1366_v56 }
0x100b   :  { %1407 = vrot.lane.b32.xlu1 %v1367_v58, %s1863_s2 }
0x1029   :  { %1369 = vxpose.xlu2.b32.start [1/2] (short) (narrow) %v1365_v57, 8 }
0x1031   :  { %1370 = vxpose.xlu2.b32.end [2/2] (short) (narrow) %v1367_v58, 8 }
0x1055   :  { %v1278_v59 = vpop.permute.xlu2 %1277 }
0x1056   :  { %1283 = vst.msk [vmem:[%s2371_s17] sm:$0xff] %vm255_vm0, %v1278_v59 }
0x105d   :  { %v1406_v60 = vpop.permute.xlu2 %1405 }
0x105e   :  { %1728 = vst.msk [vmem:[%s2371_s17 + $0x10] sm:$0xff] %vm255_vm0, %v1406_v60 }
0x1075   :  { %v1280_v61 = vpop.permute.xlu1 %1279 }
0x1076   :  { %1284 = vst.msk [vmem:[%s2371_s17 + $0x8] sm:$0xff] %vm255_vm0, %v1280_v61 }
0x107d   :  { %v1408_v62 = vpop.permute.xlu1 %1407 }
0x107e   :  { %1729 = vst.msk [vmem:[%s2371_s17 + $0x18] sm:$0xff] %vm255_vm0, %v1408_v62 }
0x10a0   :  { %v1258_v63 = vpop.trf.xlu0 }
0x10a1   :  { %1274 = vst.msk [vmem:[%s2372_s16] sm:$0xff] %vm289_vm3, %v1258_v63 }
0x10c2   :  { %v1385_v0 = vpop.trf.xlu2 }
0x10c3   :  { %1727 = vst.msk [vmem:[%s2372_s16 + $0x8] sm:$0xff] %vm289_vm3, %v1385_v0 }

// kernel: transformer_forward.3
= control target key start
LH: loop header
LB: loop body
LE: loop exit
PB: predicated region body
PF: predicated region fallthrough
CT: control target
= control target key end

     0   :  { %s3256_s0 = inlined_call_operand.vmem [shape: f32[2,8,128], index: 0, kind: input, shape index: {}]   ;;  %s3257_s1 = inlined_call_operand.vmem [shape: f32[2,8,16], index: 1, kind: input, shape index: {}]   ;;  %s3258_s2 = inlined_call_operand.vmem [shape: f32[2,16,8], index: 2, kind: input, shape index: {}]   ;;  %s3259_s3 = inlined_call_operand.vmem [shape: bf16[2,128,24], index: 3, kind: input, shape index: {}]   ;;  %s3260_s4 = inlined_call_operand.vmem [shape: f32[2,1,24], index: 4, kind: input, shape index: {}]   ;;  %s3261_s5 = inlined_call_operand.vmem [shape: bf16[2,8,128], index: 5, kind: input, shape index: {}]   ;;  %s3262_s6 = inlined_call_operand.vmem [shape: f32[2,1,128], index: 6, kind: input, shape index: {}]   ;;  %s3263_s7 = inlined_call_operand.vmem [shape: f32[2,1,128], index: 7, kind: input, shape index: {}]   ;;  %s3264_s8 = inlined_call_operand.vmem [shape: f32[2,1,128], index: 8, kind: input, shape index: {}]   ;;  %s3265_s9 = inlined_call_operand.vmem [shape: bf16[2,128,8], index: 9, kind: input, shape index: {}]   ;;  %s3266_s10 = inlined_call_operand.vmem [shape: f32[2,1,8], index: 10, kind: input, shape index: {}]   ;;  %s3267_s11 = inlined_call_operand.vmem [shape: bf16[2,8,128], index: 11, kind: input, shape index: {}]   ;;  %s3268_s12 = inlined_call_operand.vmem [shape: f32[2,1,128], index: 12, kind: input, shape index: {}]   ;;  %s3269_s13 = inlined_call_operand.vmem [shape: f32[2,1,128], index: 13, kind: input, shape index: {}]   ;;  %s3270_s14 = inlined_call_operand.vmem [shape: f32[2,1,128], index: 14, kind: input, shape index: {}]   ;;  %s3271_s15 = inlined_call_operand.vmem [shape: bf16[2,128,32], index: 15, kind: input, shape index: {}]   ;;  %s3272_s16 = inlined_call_operand.vmem [shape: f32[2,1,32], index: 16, kind: input, shape index: {}]   ;;  %s3273_s17 = inlined_call_operand.vmem [shape: bf16[2,32,128], index: 17, kind: input, shape index: {}]   ;;  %s3274_s18 = inlined_call_operand.vmem [shape: f32[2,1,128], index: 18, kind: input, shape index: {}]   ;;  %s3275_s19 = inlined_call_operand.vmem [shape: f32[2,1,128], index: 19, kind: input, shape index: {}]   ;;  %s3276_s20 = inlined_call_operand.vmem [shape: f32[2,1,128], index: 20, kind: input, shape index: {}]   ;;  %s3277_s21 = inlined_call_operand.hbm [shape: f32[2,8,128], index: 21, kind: output, shape index: {}]  }
   0x1   :  { %3298 = sst [smem:[#allocation14_spill]] %s3256_s0 }
   0x2   :  { %3299 = sst [smem:[#allocation15_spill]] %s3257_s1 }
   0x3   :  { %3300 = sst [smem:[#allocation16_spill]] %s3258_s2 }
   0x4   :  { %3301 = sst [smem:[#allocation17_spill]] %s3259_s3 }
   0x5   :  { %3302 = sst [smem:[#allocation18_spill]] %s3260_s4 }
   0x6   :  { %3303 = sst [smem:[#allocation19_spill]] %s3261_s5 }
   0x7   :  { %3304 = sst [smem:[#allocation20_spill]] %s3262_s6 }
   0x8   :  { %3305 = sst [smem:[#allocation21_spill]] %s3263_s7 }
   0x9   :  { %3306 = sst [smem:[#allocation22_spill]] %s3264_s8 }
   0xa   :  { %3307 = sst [smem:[#allocation23_spill]] %s3265_s9 }
   0xb   :  { %3308 = sst [smem:[#allocation24_spill]] %s3277_s21 }
   0xc   :  { %26 = vsyncpa [#allocation3], 0 }
   0xd   :  { %28 = vsyncpa [#allocation3 + $0x1], 0  ;;  %s2791_s2 = smov 0   ;;  %s2793_s25 = smov 0  }
   0xe   :  { %s2795_s26 = smov 0   ;;  %s2797_s27 = smov 0  }
   0xf LB: > { %3309 = sst [smem:[#allocation5_spill]] %s2664_s2  ;;  %s2812_s3 = sadd.s32 4294967295, %s2676_s27   ;;  %s2676_s27 = sphi %s2797_s27, %s3341_s27   ;;  %s2672_s26 = sphi %s2795_s26, %s3343_s26   ;;  %s2668_s25 = sphi %s2793_s25, %s3345_s25   ;;  %s2664_s2 = sphi %s2791_s2, %s3344_s2  }
  0x10   : > { %3310 = sst [smem:[#allocation6_spill]] %s2672_s26  ;;  %s2135_s28 = sadd.s32 4294967294, %s2676_s27  }
  0x11   : > { %3311 = sst [smem:[#allocation7_spill]] %s2676_s27  ;;  %s2816_s29 = sadd.s32 1, %s2676_s27  }
  0x12   : > { %3312 = sst [smem:[#allocation8_spill]] %s2812_s3  ;;  %s487_s0 = sadd.s32 1, %s2672_s26 }
  0x13   : > { %3313 = sst [smem:[#allocation9_spill]] %s2816_s29  ;;  %s484_s4 = ssub.s32 %s2676_s27, %s2816_s29 }
  0x14   : > { %p497_p0 = scmp.ne.s32.totalorder %s2672_s26, %s2668_s25  ;;  %p485_p1 = scmp.eq.s32.totalorder %s484_s4, 0 }
  0x15   : > { %p498_p2 = scmp.eq.s32.totalorder %s2812_s3, 1  ;;  %p503_p3 = scmp.ne.s32.totalorder %s2668_s25, %s2664_s2 }
  0x16   : > { %p504_p4 = scmp.eq.s32.totalorder %s2135_s28, 1  ;;  %p2138_p7 = scmp.ge.s32.totalorder %s2676_s27, 1 }
  0x17   : > { %s2827_s30 = scalar_select %p485_p1, %s2672_s26, %s487_s0  }
  0x18   : > { %p2829_p5 = por %p498_p2, %p497_p0  ;;  %p2833_p6 = por %p504_p4, %p503_p3 }
  0x19   : > { %3314 = sst [smem:[#allocation10_spill]] %s2827_s30  ;;  %p589_p8 = scmp.lt.s32.totalorder %s2676_s27, 3 }
  0x1a   : > { %s3315_s5 = scalar_select %p2829_p5, 1, 0 }
  0x1b   : > { %s3317_s22 = scalar_select %p2833_p6, 1, 0 }
  0x1c   : > { %3316 = sst [smem:[#allocation11_spill]] %s3315_s5  ;;  %p590_p9 = pnand %p2138_p7, %p589_p8 }
  0x1d   : > { %3318 = sst [smem:[#allocation12_spill]] %s3317_s22 }
  0x1e   : > { %593 = sbr.rel (%p590_p9) target bundleno = 6044 (0x179c), region = 104 }
  0x23   : > { %s3319_s24 = sld [smem:[#allocation17_spill]]  ;;  %p648_p10 = scmp.lt.s32.totalorder %s2812_s3, 1  ;;  %v653_v14 = vlaneseq  ;;  %vm811_vm4 = vcmask 64512   ;;  %v2679_v17 = vmov 0.0   ;;  %vm942_vm6 = vcmask 1043456  }
  0x24   : > { %s3320_s27 = sld [smem:[#allocation14_spill]]  ;;  %vm1079_vm10 = vcmask 130048   ;;  %vm1310_vm14 = vcmask 261120   ;;  %s3332_s21 = smov 120  }
  0x25   : > { %s649_s22 = scalar_select %p648_p10, %s2812_s3, 1  ;;  %v2879_v15 = vand.u32 127, %v653_v14  ;;  %v654_v23 = vshrl.u32 %v653_v14, 7 }
  0x26   : > { %s3322_s0 = sld [smem:[#allocation18_spill]] }
  0x27   : > { %s2140_s2 = sshll.u32 %s649_s22, 3  ;;  %vm659_vm0 = vcmp.lt.s32.totalorder %v2879_v15, 8  ;;  %vm667_vm1 = vcmp.ge.s32.totalorder %v2879_v15, 4  ;;  %vm663_vm2 = vcmp.lt.s32.totalorder %v2879_v15, 4  ;;  %vm657_vm5 = vcmp.gt.s32.totalorder %v2879_v15, %v654_v23  ;;  %s3323_s26 = sld [smem:[#allocation19_spill]] }
  0x28   : > { %vm668_vm3 = vmand %vm667_vm1, %vm659_vm0  ;;  %v2887_v18 = vsel %vm663_vm2, 1.0, %v2679_v17  ;;  %v2900_v24 = vsel %vm657_vm5, -1e+30, %v2679_v17  ;;  %s3325_s6 = sld [smem:[#allocation20_spill]] }
  0x29   : > { %v2458_v0 = vld [vmem:[%s3319_s24 + $0x38] sm:$0xff]  ;;  %v2457_v1 = vld [vmem:[%s3319_s24 + $0x30] sm:$0xff]  ;;  %v2456_v2 = vld [vmem:[%s3319_s24 + $0x28] sm:$0xff]  ;;  %v2890_v19 = vsel %vm668_vm3, 1.0, %v2679_v17  ;;  %s3326_s9 = sld [smem:[#allocation23_spill]] }
  0x2a   : > { %793 = vmatpush.bf16.msra.mxu0 %v2458_v0  ;;  %v2455_v3 = vld [vmem:[%s3319_s24 + $0x20] sm:$0xff]  ;;  %v2454_v4 = vld [vmem:[%s3319_s24 + $0x18] sm:$0xff]  ;;  %v2453_v5 = vld [vmem:[%s3319_s24 + $0x10] sm:$0xff]  ;;  %s2865_s5 = scalar_lea.vmem %s3320_s27, %s2140_s2  ;;  %s3292_s2 = smov 120   ;;  %v2928_v0 = vsel %vm659_vm0, 1.0, %v2679_v17 }
  0x2b   : > { %v2452_v6 = vld [vmem:[%s3319_s24 + $0x8] sm:$0xff]  ;;  %3321 = sst [smem:[#allocation13_spill]] %s2865_s5  ;;  %v2451_v7 = vld [vmem:[%s3319_s24] sm:$0xff]  ;;  %s3291_s27 = smov 112  }
  0x2c   : > { %v2871_v8 = vld [vmem:[%s2865_s5] sm:$0xff]  ;;  %s3327_s7 = sld [smem:[#allocation21_spill]]  ;;  %s645_s5 = sand.u32 1, %s2668_s25  }
  0x2d   : > { %v741_v9 = vpack.c.bf16 %v2871_v8, %v2871_v8  ;;  %v2545_v10 = vld [vmem:[%s3322_s0] ss:$0 sm:$0xff]  ;;  %s3324_s29 = smov %s3323_s26  ;;  %s3328_s8 = sld [smem:[#allocation22_spill]] }
  0x2e   : > { %794 = vmatpush.bf16.msra.mxu0 %v2457_v1  ;;  %v689_v48 = vld [vmem:[%s3323_s26] sm:$0xf]  ;;  %s3329_s30 = sld [smem:[#allocation15_spill]]  ;;  %s2139_s23 = sshll.u32 %s645_s5, 3 }
  0x2f   : > { %v944_v49 = vsel %vm942_vm6, %v689_v48, 0  ;;  %v2546_v56 = vld [vmem:[%s3325_s6] ss:$0 sm:$0xff]  ;;  %v2466_v61 = vld [vmem:[%s3326_s9 + $0x38] sm:$0xff]  ;;  %s3334_s3 = sld [smem:[#allocation8_spill]] }
  0x30   : > { %s3335_s26 = sld [smem:[#allocation13_spill]] }
  0x32   : > { %795 = vmatpush.bf16.msra.mxu0 %v2456_v2 }
  0x36   : > { %796 = vmatpush.bf16.msra.mxu0 %v2455_v3 }
  0x3a   : > { %797 = vmatpush.bf16.msra.mxu0 %v2454_v4  ;;  %v2465_v4 = vld [vmem:[%s3326_s9 + $0x30] sm:$0xff] }
  0x3e   : > { %798 = vmatpush.bf16.msra.mxu0 %v2453_v5  ;;  %v2464_v5 = vld [vmem:[%s3326_s9 + $0x28] sm:$0xff] }
  0x42   : > { %799 = vmatpush.bf16.msra.mxu0 %v2452_v6  ;;  %v2463_v6 = vld [vmem:[%s3326_s9 + $0x20] sm:$0xff] }
  0x46   : > { %800 = vmatpush.bf16.msra.mxu0 %v2451_v7  ;;  %v2462_v7 = vld [vmem:[%s3326_s9 + $0x18] sm:$0xff] }
  0x49   : > { %801 = vmatmul.bf16.vlgmr.msra.gmra.mxu0 %v741_v9  ;;  %v2460_v9 = vld [vmem:[%s3326_s9 + $0x8] sm:$0xff] }
  0xc6   : > { %v802_v11 = vpop.f32.mrf.mxu0 }
  0xc7   : > { %v803_v12 = vadd.f32 %v2545_v10, %v802_v11  ;;  %v2459_v10 = vld [vmem:[%s3326_s9] sm:$0xff] }
  0xc9   : > { %809 = vrot.lane.b32.xlu0 %v803_v12, %s3292_s2  ;;  %v806_v16 = vmul.f32 0.5, %v803_v12  ;;  %s3330_s2 = sld [smem:[#allocation16_spill]] }
  0xcb   : > { %v807_v21 = vmul.f32 %v2887_v18, %v806_v16  ;;  %v875_v22 = vmul.f32 %v2890_v19, %v806_v16 }
  0xce   : > { %v804_v13 = vpop.f32.mrf.mxu0 }
  0xcf   : > { %s3331_s1 = smov %s3330_s2 }
 0x13b   : > { %v810_v20 = vpop.permute.xlu0 %809 }
 0x13c   : > { %2176 = vmatpush.xpose.msk.msra.mxu1 %vm811_vm4, %v810_v20  ;;  %2179 = vmatpush.xpose.msk.msra.mxu3 %vm811_vm4, %v810_v20 }
 0x13f   : > { %2177 = vmatmul.msk.f32.vlgmr.msra.gmra.mxu1 %vm811_vm4, %v807_v21  ;;  %2180 = vmatmul.msk.f32.vlgmr.msra.gmra.mxu3 %vm811_vm4, %v875_v22  ;;  %v2547_v22 = vld [vmem:[%s3327_s7] ss:$0 sm:$0xff] }
 0x140   : > { %953 = vmatpush.bf16.msrb.mxu1 %v944_v49  ;;  %1041 = vmatpush.bf16.msrb.mxu3 %v2466_v61 }
 0x144   : > { %1042 = vmatpush.bf16.msrb.mxu3 %v2465_v4 }
 0x148   : > { %1043 = vmatpush.bf16.msrb.mxu3 %v2464_v5  ;;  %v2550_v5 = vld [vmem:[%s3268_s12] ss:$0 sm:$0xff] }
 0x14c   : > { %1044 = vmatpush.bf16.msrb.mxu3 %v2463_v6 }
 0x150   : > { %1045 = vmatpush.bf16.msrb.mxu3 %v2462_v7 }
 0x1bc   : > { %v834_v25 = vpop.f32.mrf.mxu1 }
 0x1bd   : > { %v835_v26 = vadd.f32 %v834_v25, %v2900_v24 }
 0x1bf   : > { %v837_v27 = vsel %vm811_vm4, %v835_v26, -inf }
 0x1c0   : > { %838 = vmax.xlane.f32.xlu0 %v837_v27 }
 0x1c2   : > { %v896_v28 = vpop.f32.mrf.mxu3 }
 0x1c3   : > { %v897_v29 = vadd.f32 %v896_v28, %v2900_v24 }
 0x1c5   : > { %v899_v30 = vsel %vm811_vm4, %v897_v29, -inf }
 0x1c6   : > { %900 = vmax.xlane.f32.xlu1 %v899_v30  ;;  %v738_v30 = vld [vmem:[%s3329_s30] sm:$0xff] }
 0x1c7   : > { %1134 = vmatpush.msra.mxu1 %v738_v30 }
 0x233   : > { %v839_v31 = vpop.xlane.xlu0 %838 }
 0x234   : > { %v840_v32 = vsub.f32 %v835_v26, %v839_v31  ;;  %v2548_v26 = vld [vmem:[%s3328_s8] ss:$0 sm:$0xff] }
 0x235   : > { %v2549_v31 = vld [vmem:[%s3266_s10] ss:$0 sm:$0xff] }
 0x236   : > { %v841_v33 = vmul.f32 1.442695, %v840_v32 }
 0x238   : > { %2569 = vpow2.f32 %v841_v33 }
 0x239   : > { %v901_v34 = vpop.xlane.xlu1 %900 }
 0x23a   : > { %v902_v35 = vsub.f32 %v897_v29, %v901_v34 }
 0x23c   : > { %v903_v36 = vmul.f32 1.442695, %v902_v35 }
 0x23e   : > { %v2570_v37 = vpop.eup %2569  ;;  %2571 = vpow2.f32 %v903_v36 }
 0x23f   : > { %v843_v38 = vsel %vm811_vm4, %v2570_v37, 0.0 }
 0x240   : > { %844 = vadd.xlane.f32.xlu1 %v843_v38 }
 0x244   : > { %v2572_v39 = vpop.eup %2571 }
 0x245   : > { %v905_v40 = vsel %vm811_vm4, %v2572_v39, 0.0 }
 0x246   : > { %906 = vadd.xlane.f32.xlu2 %v905_v40 }
 0x25e   : > { %848 = vrot.lane.b32.xlu2 %v803_v12, %s3291_s27 }
 0x2b3   : > { %v845_v41 = vpop.xlane.xlu1 %844 }
 0x2b4   : > { %2573 = vrcp.f32 %v845_v41 }
 0x2b9   : > { %v907_v42 = vpop.xlane.xlu2 %906 }
 0x2ba   : > { %v2574_v43 = vpop.eup %2573  ;;  %2575 = vrcp.f32 %v907_v42 }
 0x2bb   : > { %v847_v45 = vmul.f32 %v2574_v43, %v2570_v37 }
 0x2c0   : > { %v2576_v46 = vpop.eup %2575 }
 0x2c1   : > { %v849_v44 = vpop.permute.xlu2 %848  ;;  %v909_v47 = vmul.f32 %v2576_v46, %v2572_v39 }
 0x2c2   : > { %869 = vmatpush.msra.mxu2 %v849_v44 }
 0x2c3   : > { %2178 = vmatmul.msk.f32.vlgmr.msra.gmra.mxu2 %vm811_vm4, %v847_v45 }
 0x2c4   : > { %928 = vmatpush.msrb.mxu2 %v849_v44 }
 0x2c6   : > { %1074 = vmatpush.msra.mxu2 %v738_v30 }
 0x2cb   : > { %2181 = vmatmul.msk.f32.vlgmr.msrb.gmra.mxu2 %vm811_vm4, %v909_v47 }
 0x346   : > { %v871_v50 = vpop.f32.mrf.mxu2 }
 0x347   : > { %v874_v52 = vmul.f32 %v2887_v18, %v871_v50 }
 0x34e   : > { %v930_v51 = vpop.f32.mrf.mxu2 }
 0x34f   : > { %v933_v53 = vmul.f32 %v2890_v19, %v930_v51 }
 0x351   : > { %v934_v54 = vadd.f32 %v933_v53, %v874_v52  ;;  %v740_v52 = vld [vmem:[%s3330_s2 + $0x8] sm:$0xff]  ;;  %v739_v53 = vld [vmem:[%s3331_s1] sm:$0xff]  ;;  %s3333_s2 = smov 112  }
 0x352   : > { %1108 = vmatpush.msrb.mxu2 %v740_v52 }
 0x353   : > { %v935_v55 = vpack.c.bf16 %v934_v54, %v934_v54 }
 0x354   : > { %1109 = vmatpush.msrb.mxu2 %v739_v53 }
 0x355   : > { %2182 = vmatmul.msk.bf16.vlgmr.msrb.gmra.mxu1 %vm811_vm4, %v935_v55 }
 0x3d2   : > { %v955_v57 = vpop.f32.mrf.mxu1 }
 0x3d3   : > { %v956_v58 = vadd.f32 %v2546_v56, %v955_v57 }
 0x3d5   : > { %v959_v59 = vadd.f32 %v956_v58, %v2871_v8  ;;  %v2461_v8 = vld [vmem:[%s3326_s9 + $0x10] sm:$0xff] }
 0x3d6   : > { %1046 = vmatpush.bf16.msrb.mxu3 %v2461_v8 }
 0x3d7   : > { %960 = vadd.xlane.f32.xlu1 %v959_v59 }
 0x3da   : > { %v957_v60 = vpop.f32.mrf.mxu1  ;;  %1047 = vmatpush.bf16.msrb.mxu3 %v2460_v9 }
 0x3db   : > { %v710_v60 = vld [vmem:[%s3267_s11] sm:$0xf] }
 0x3dc   : > { %v1183_v61 = vsel %vm942_vm6, %v710_v60, 0 }
 0x3dd   : > { %1192 = vmatpush.bf16.msrb.mxu1 %v1183_v61  ;;  %v2483_v61 = vld [vmem:[%s3319_s24 + $0x70] sm:$0xff] }
 0x3de   : > { %1048 = vmatpush.bf16.msrb.mxu3 %v2459_v10  ;;  %v2474_v10 = vld [vmem:[%s3271_s15 + $0x38] sm:$0xff] }
 0x3df   : > { %1280 = vmatpush.bf16.msrb.mxu0 %v2474_v10 }
 0x44a   : > { %v961_v62 = vpop.xlane.xlu1 %960 }
 0x44b   : > { %v962_v63 = vmul.f32 0.125, %v961_v62 }
 0x44d   : > { %v963_v1 = vsub.f32 %v959_v59, %v962_v63 }
 0x44f   : > { %v964_v2 = vmul.f32 %v2928_v0, %v963_v1 }
 0x451   : > { %v965_v3 = vmul.f32 %v964_v2, %v964_v2 }
 0x453   : > { %966 = vadd.xlane.f32.xlu1 %v965_v3 }
 0x4c6   : > { %v967_v11 = vpop.xlane.xlu1 %966 }
 0x4c7   : > { %v968_v12 = vmul.f32 0.125, %v967_v11 }
 0x4c9   : > { %v969_v13 = vadd.f32 1e-05, %v968_v12 }
 0x4cb   : > { %2577 = vrsqrt.f32 %v969_v13  ;;  %vm976_vm8 = vweird.f32 %v969_v13 }
 0x4d1   : > { %v2578_v14 = vpop.eup %2577 }
 0x4d2   : > { %v971_v15 = vmul.f32 %v2578_v14, %v969_v13  ;;  %vm977_vm7 = vweird.f32 %v2578_v14 }
 0x4d3   : > { %vm978_vm9 = vmor %vm976_vm8, %vm977_vm7 }
 0x4d4   : > { %v972_v16 = vmul.f32 %v2578_v14, %v971_v15 }
 0x4d6   : > { %v973_v17 = vmul.f32 0.5, %v972_v16  ;;  %v2473_v16 = vld [vmem:[%s3271_s15 + $0x30] sm:$0xff] }
 0x4d7   : > { %1281 = vmatpush.bf16.msrb.mxu0 %v2473_v16 }
 0x4d8   : > { %v974_v20 = vsub.f32 1.5, %v973_v17  ;;  %v2472_v17 = vld [vmem:[%s3271_s15 + $0x28] sm:$0xff] }
 0x4da   : > { %v975_v21 = vmul.f32 %v2578_v14, %v974_v20  ;;  %v2471_v20 = vld [vmem:[%s3271_s15 + $0x20] sm:$0xff] }
 0x4db   : > { %1282 = vmatpush.bf16.msrb.mxu0 %v2472_v17  ;;  %v2556_v17 = vld [vmem:[%s3276_s20] ss:$0 sm:$0xff] }
 0x4dc   : > { %v979_v23 = vsel %vm978_vm9, %v2578_v14, %v975_v21  ;;  %v2470_v21 = vld [vmem:[%s3271_s15 + $0x18] sm:$0xff] }
 0x4dd   : > { %v980_v25 = vmul.f32 %v979_v23, %v964_v2  ;;  %v2468_v23 = vld [vmem:[%s3271_s15 + $0x8] sm:$0xff] }
 0x4df   : > { %v984_v27 = vmul.f32 %v2547_v22, %v980_v25  ;;  %1283 = vmatpush.bf16.msrb.mxu0 %v2471_v20  ;;  %v2469_v22 = vld [vmem:[%s3271_s15 + $0x10] sm:$0xff]  ;;  %v2467_v25 = vld [vmem:[%s3271_s15] sm:$0xff] }
 0x4e1   : > { %v2958_v28 = vadd.f32 %v2548_v26, %v984_v27 }
 0x4e3   : > { %v989_v29 = vpack.c.bf16 %v2958_v28, %v2958_v28  ;;  %1284 = vmatpush.bf16.msrb.mxu0 %v2470_v21 }
 0x4e5   : > { %1049 = vmatmul.bf16.vlgmr.msrb.gmra.mxu3 %v989_v29 }
 0x4e7   : > { %1285 = vmatpush.bf16.msrb.mxu0 %v2469_v22 }
 0x4eb   : > { %1286 = vmatpush.bf16.msrb.mxu0 %v2468_v23  ;;  %v2557_v23 = vld [vmem:[%s3322_s0 + $0x1] ss:$0 sm:$0xff] }
 0x4ef   : > { %1287 = vmatpush.bf16.msrb.mxu0 %v2467_v25 }
 0x568   : > { %v1050_v32 = vpop.f32.mrf.mxu3 }
 0x569   : > { %v1051_v33 = vadd.f32 %v2549_v31, %v1050_v32 }
 0x56b   : > { %v1054_v34 = vmul.f32 0.5, %v1051_v33 }
 0x56d   : > { %v1055_v35 = vmul.f32 %v2887_v18, %v1054_v34  ;;  %v1115_v36 = vmul.f32 %v2890_v19, %v1054_v34 }
 0x56f   : > { %2215 = vmatmul.msk.f32.vlgmr.msra.gmra.mxu2 %vm811_vm4, %v1055_v35  ;;  %2217 = vmatmul.msk.f32.vlgmr.msra.gmra.mxu1 %vm811_vm4, %v1115_v36  ;;  %v2551_v35 = vld [vmem:[%s3269_s13] ss:$0 sm:$0xff] }
 0x570   : > { %v1052_v37 = vpop.f32.mrf.mxu3  ;;  %1167 = vmatpush.msra.mxu2 %v740_v52 }
 0x572   : > { %1168 = vmatpush.msra.mxu2 %v739_v53 }
 0x5ec   : > { %v1136_v38 = vpop.f32.mrf.mxu1 }
 0x5ed   : > { %v1139_v39 = vsel %vm1079_vm10, %v1136_v38, -inf }
 0x5ee   : > { %1140 = vmax.xlane.f32.xlu2 %v1139_v39 }
 0x5f2   : > { %v1076_v40 = vpop.f32.mrf.mxu2 }
 0x5f3   : > { %v1080_v41 = vsel %vm1079_vm10, %v1076_v40, -inf }
 0x5f4   : > { %1081 = vmax.xlane.f32.xlu1 %v1080_v41 }
 0x661   : > { %v1141_v42 = vpop.xlane.xlu2 %1140 }
 0x662   : > { %v1142_v45 = vsub.f32 %v1136_v38, %v1141_v42  ;;  %v2552_v38 = vld [vmem:[%s3270_s14] ss:$0 sm:$0xff]  ;;  %v2476_v42 = vld [vmem:[%s3273_s17 + $0x8] sm:$0xff] }
 0x664   : > { %v1143_v47 = vmul.f32 1.442695, %v1142_v45 }
 0x667   : > { %v1082_v43 = vpop.xlane.xlu1 %1081 }
 0x668   : > { %v1083_v44 = vsub.f32 %v1076_v40, %v1082_v43  ;;  %v2475_v43 = vld [vmem:[%s3273_s17] sm:$0xff] }
 0x66a   : > { %v1084_v46 = vmul.f32 1.442695, %v1083_v44  ;;  %v2553_v44 = vld [vmem:[%s3272_s16] ss:$0 sm:$0xff] }
 0x66c   : > { %2579 = vpow2.f32 %v1084_v46 }
 0x66d   : > { %2581 = vpow2.f32 %v1143_v47 }
 0x672   : > { %v2580_v48 = vpop.eup %2579 }
 0x673   : > { %v1086_v49 = vsel %vm1079_vm10, %v2580_v48, 0.0  ;;  %v2582_v50 = vpop.eup %2581 }
 0x674   : > { %1087 = vadd.xlane.f32.xlu1 %v1086_v49  ;;  %v1145_v51 = vsel %vm1079_vm10, %v2582_v50, 0.0 }
 0x67c   : > { %1146 = vadd.xlane.f32.xlu1 %v1145_v51 }
 0x6e7   : > { %v1088_v54 = vpop.xlane.xlu1 %1087 }
 0x6e8   : > { %2583 = vrcp.f32 %v1088_v54 }
 0x6ee   : > { %v2584_v55 = vpop.eup %2583 }
 0x6ef   : > { %v1090_v56 = vmul.f32 %v2584_v55, %v2580_v48  ;;  %v1147_v57 = vpop.xlane.xlu1 %1146  ;;  %v2484_v55 = vld [vmem:[%s3319_s24 + $0x78] sm:$0xff] }
 0x6f0   : > { %2585 = vrcp.f32 %v1147_v57  ;;  %1498 = vmatpush.bf16.msra.mxu1 %v2484_v55 }
 0x6f1   : > { %2216 = vmatmul.msk.f32.vlgmr.msrb.gmra.mxu2 %vm1079_vm10, %v1090_v56 }
 0x6f2   : > { %1320 = vmatpush.bf16.msrb.mxu2 %v2476_v42 }
 0x6f4   : > { %1499 = vmatpush.bf16.msra.mxu1 %v2483_v61 }
 0x6f6   : > { %v2586_v58 = vpop.eup %2585  ;;  %1321 = vmatpush.bf16.msrb.mxu2 %v2475_v43 }
 0x6f7   : > { %v1149_v59 = vmul.f32 %v2586_v58, %v2582_v50  ;;  %v2554_v50 = vld [vmem:[%s3274_s18] ss:$0 sm:$0xff] }
 0x6f9   : > { %2218 = vmatmul.msk.f32.vlgmr.msra.gmra.mxu2 %vm1079_vm10, %v1149_v59 }
 0x774   : > { %v1111_v62 = vpop.f32.mrf.mxu2 }
 0x775   : > { %v1114_v1 = vmul.f32 %v2887_v18, %v1111_v62  ;;  %v2482_v62 = vld [vmem:[%s3319_s24 + $0x68] sm:$0xff] }
 0x776   : > { %1500 = vmatpush.bf16.msra.mxu1 %v2482_v62  ;;  %v2558_v62 = vld [vmem:[%s3325_s6 + $0x1] ss:$0 sm:$0xff] }
 0x77c   : > { %v1170_v63 = vpop.f32.mrf.mxu2 }
 0x77d   : > { %v1173_v2 = vmul.f32 %v2890_v19, %v1170_v63  ;;  %v2481_v63 = vld [vmem:[%s3319_s24 + $0x60] sm:$0xff] }
 0x77e   : > { %1501 = vmatpush.bf16.msra.mxu1 %v2481_v63 }
 0x77f   : > { %v1174_v3 = vadd.f32 %v1173_v2, %v1114_v1  ;;  %v2480_v1 = vld [vmem:[%s3319_s24 + $0x58] sm:$0xff]  ;;  %v2479_v2 = vld [vmem:[%s3319_s24 + $0x50] sm:$0xff] }
 0x781   : > { %v1175_v4 = vpack.c.bf16 %v1174_v3, %v1174_v3  ;;  %v2478_v3 = vld [vmem:[%s3319_s24 + $0x48] sm:$0xff] }
 0x782   : > { %1502 = vmatpush.bf16.msra.mxu1 %v2480_v1 }
 0x783   : > { %2219 = vmatmul.msk.bf16.vlgmr.msrb.gmra.mxu1 %vm811_vm4, %v1175_v4  ;;  %v2477_v4 = vld [vmem:[%s3319_s24 + $0x40] sm:$0xff] }
 0x786   : > { %1503 = vmatpush.bf16.msra.mxu1 %v2479_v2 }
 0x78a   : > { %1504 = vmatpush.bf16.msra.mxu1 %v2478_v3 }
 0x78e   : > { %1505 = vmatpush.bf16.msra.mxu1 %v2477_v4  ;;  %v2492_v4 = vld [vmem:[%s3326_s9 + $0x78] sm:$0xff] }
 0x78f   : > { %1744 = vmatpush.bf16.msra.mxu0 %v2492_v4 }
 0x800   : > { %v1194_v6 = vpop.f32.mrf.mxu1 }
 0x801   : > { %v1195_v7 = vadd.f32 %v2550_v5, %v1194_v6 }
 0x803   : > { %v1198_v8 = vadd.f32 %v1195_v7, %v2958_v28 }
 0x805   : > { %1199 = vadd.xlane.f32.xlu0 %v1198_v8 }
 0x808   : > { %v1196_v9 = vpop.f32.mrf.mxu1 }
 0x878   : > { %v1200_v11 = vpop.xlane.xlu0 %1199 }
 0x879   : > { %v1201_v12 = vmul.f32 0.125, %v1200_v11 }
 0x87b   : > { %v1202_v13 = vsub.f32 %v1198_v8, %v1201_v12 }
 0x87d   : > { %v1203_v14 = vmul.f32 %v2928_v0, %v1202_v13 }
 0x87f   : > { %v1204_v15 = vmul.f32 %v1203_v14, %v1203_v14 }
 0x881   : > { %1205 = vadd.xlane.f32.xlu1 %v1204_v15 }
 0x8f4   : > { %v1206_v26 = vpop.xlane.xlu1 %1205 }
 0x8f5   : > { %v1207_v27 = vmul.f32 0.125, %v1206_v26 }
 0x8f7   : > { %v1208_v28 = vadd.f32 1e-05, %v1207_v27 }
 0x8f9   : > { %2587 = vrsqrt.f32 %v1208_v28  ;;  %vm1215_vm12 = vweird.f32 %v1208_v28 }
 0x8ff   : > { %v2588_v29 = vpop.eup %2587 }
 0x900   : > { %v1210_v30 = vmul.f32 %v2588_v29, %v1208_v28  ;;  %vm1216_vm11 = vweird.f32 %v2588_v29 }
 0x901   : > { %vm1217_vm13 = vmor %vm1215_vm12, %vm1216_vm11 }
 0x902   : > { %v1211_v31 = vmul.f32 %v2588_v29, %v1210_v30 }
 0x904   : > { %v1212_v32 = vmul.f32 0.5, %v1211_v31 }
 0x906   : > { %v1213_v33 = vsub.f32 1.5, %v1212_v32 }
 0x908   : > { %v1214_v34 = vmul.f32 %v2588_v29, %v1213_v33 }
 0x90a   : > { %v1218_v36 = vsel %vm1217_vm13, %v2588_v29, %v1214_v34 }
 0x90b   : > { %v1219_v37 = vmul.f32 %v1218_v36, %v1203_v14  ;;  %v2555_v14 = vld [vmem:[%s3275_s19] ss:$0 sm:$0xff] }
 0x90d   : > { %v1223_v39 = vmul.f32 %v2551_v35, %v1219_v37 }
 0x90f   : > { %v1227_v40 = vadd.f32 %v2552_v38, %v1223_v39 }
 0x911   : > { %v1228_v41 = vpack.c.bf16 %v1227_v40, %v1227_v40 }
 0x913   : > { %1288 = vmatmul.bf16.vlgmr.msrb.gmra.mxu0 %v1228_v41 }
 0x990   : > { %v1289_v45 = vpop.f32.mrf.mxu0 }
 0x991   : > { %v1290_v46 = vadd.f32 %v2553_v44, %v1289_v45 }
 0x993   : > { %v1293_v47 = vmax.f32 %v1290_v46, 0.0 }
 0x995   : > { %v1294_v48 = vpack.c.bf16 %v1293_v47, %v1293_v47 }
 0x997   : > { %2260 = vmatmul.msk.bf16.vlgmr.msrb.gmra.mxu2 %vm1310_vm14, %v1294_v48 }
 0x998   : > { %v1291_v49 = vpop.f32.mrf.mxu0 }
 0xa1a   : > { %v1323_v51 = vpop.f32.mrf.mxu2 }
 0xa1b   : > { %v1324_v52 = vadd.f32 %v2554_v50, %v1323_v51 }
 0xa1d   : > { %v1327_v53 = vadd.f32 %v1324_v52, %v1227_v40 }
 0xa1f   : > { %1328 = vadd.xlane.f32.xlu0 %v1327_v53 }
 0xa22   : > { %v1325_v54 = vpop.f32.mrf.mxu2 }
 0xa23   : > { %v2278_v54 = vld [vmem:[%s3324_s29 + $0x4] sm:$0xf] }
 0xa24   : > { %v1647_v55 = vsel %vm942_vm6, %v2278_v54, 0 }
 0xa92   : > { %v1329_v56 = vpop.xlane.xlu0 %1328 }
 0xa93   : > { %v1330_v57 = vmul.f32 0.125, %v1329_v56 }
 0xa95   : > { %v1331_v58 = vsub.f32 %v1327_v53, %v1330_v57 }
 0xa97   : > { %v1332_v59 = vmul.f32 %v2928_v0, %v1331_v58 }
 0xa99   : > { %v1333_v60 = vmul.f32 %v1332_v59, %v1332_v59 }
 0xa9b   : > { %1334 = vadd.xlane.f32.xlu1 %v1333_v60 }
 0xb0e   : > { %v1335_v5 = vpop.xlane.xlu1 %1334 }
 0xb0f   : > { %v1336_v6 = vmul.f32 0.125, %v1335_v5 }
 0xb11   : > { %v1337_v7 = vadd.f32 1e-05, %v1336_v6 }
 0xb13   : > { %2589 = vrsqrt.f32 %v1337_v7  ;;  %vm1344_vm0 = vweird.f32 %v1337_v7 }
 0xb19   : > { %v2590_v8 = vpop.eup %2589 }
 0xb1a   : > { %v1339_v9 = vmul.f32 %v2590_v8, %v1337_v7  ;;  %vm1345_vm15 = vweird.f32 %v2590_v8 }
 0xb1b   : > { %vm1346_vm1 = vmor %vm1344_vm0, %vm1345_vm15 }
 0xb1c   : > { %v1340_v10 = vmul.f32 %v2590_v8, %v1339_v9 }
 0xb1e   : > { %v1341_v11 = vmul.f32 0.5, %v1340_v10  ;;  %v2491_v10 = vld [vmem:[%s3326_s9 + $0x70] sm:$0xff] }
 0xb1f   : > { %1745 = vmatpush.bf16.msra.mxu0 %v2491_v10  ;;  %v2562_v10 = vld [vmem:[%s3268_s12 + $0x1] ss:$0 sm:$0xff] }
 0xb20   : > { %v1342_v12 = vsub.f32 1.5, %v1341_v11  ;;  %v2490_v11 = vld [vmem:[%s3326_s9 + $0x68] sm:$0xff] }
 0xb22   : > { %v1343_v13 = vmul.f32 %v2590_v8, %v1342_v12  ;;  %v2489_v12 = vld [vmem:[%s3326_s9 + $0x60] sm:$0xff] }
 0xb23   : > { %1746 = vmatpush.bf16.msra.mxu0 %v2490_v11 }
 0xb24   : > { %v1347_v15 = vsel %vm1346_vm1, %v2590_v8, %v1343_v13  ;;  %v2488_v13 = vld [vmem:[%s3326_s9 + $0x58] sm:$0xff] }
 0xb25   : > { %v1348_v16 = vmul.f32 %v1347_v15, %v1332_v59  ;;  %v2486_v15 = vld [vmem:[%s3326_s9 + $0x48] sm:$0xff] }
 0xb27   : > { %v1352_v20 = vmul.f32 %v2555_v14, %v1348_v16  ;;  %1747 = vmatpush.bf16.msra.mxu0 %v2489_v12  ;;  %v2487_v14 = vld [vmem:[%s3326_s9 + $0x50] sm:$0xff]  ;;  %v2485_v16 = vld [vmem:[%s3326_s9 + $0x40] sm:$0xff] }
 0xb29   : > { %v3070_v21 = vadd.f32 %v2556_v17, %v1352_v20 }
 0xb2b   : > { %v1446_v22 = vpack.c.bf16 %v3070_v21, %v3070_v21  ;;  %1748 = vmatpush.bf16.msra.mxu0 %v2488_v13 }
 0xb2d   : > { %1506 = vmatmul.bf16.vlgmr.msra.gmra.mxu1 %v1446_v22 }
 0xb2f   : > { %1749 = vmatpush.bf16.msra.mxu0 %v2487_v14 }
 0xb33   : > { %1750 = vmatpush.bf16.msra.mxu0 %v2486_v15 }
 0xb37   : > { %1751 = vmatpush.bf16.msra.mxu0 %v2485_v16 }
 0xbaa   : > { %v1507_v25 = vpop.f32.mrf.mxu1 }
 0xbab   : > { %v1508_v26 = vadd.f32 %v2557_v23, %v1507_v25 }
 0xbad   : > { %1514 = vrot.lane.b32.xlu0 %v1508_v26, %s3332_s21  ;;  %v1511_v28 = vmul.f32 0.5, %v1508_v26  ;;  %s2448_s21 = sshll.u32 %s3334_s3, 3 }
 0xbaf   : > { %v1512_v30 = vmul.f32 %v2887_v18, %v1511_v28  ;;  %v1579_v32 = vmul.f32 %v2890_v19, %v1511_v28 }
 0xbb2   : > { %v1509_v27 = vpop.f32.mrf.mxu1 }
 0xbb5   : > { %1552 = vrot.lane.b32.xlu0 %v1508_v26, %s3333_s2  ;;  %s2061_s2 = scalar_lea.sflag [#allocation3], %s645_s5 }
 0xc1f   : > { %v1515_v29 = vpop.permute.xlu0 %1514 }
 0xc20   : > { %2362 = vmatpush.xpose.msk.msra.mxu3 %vm811_vm4, %v1515_v29 }
 0xc23   : > { %2363 = vmatmul.msk.f32.vlgmr.msra.gmra.mxu3 %vm811_vm4, %v1512_v30 }
 0xc24   : > { %2365 = vmatpush.xpose.msk.msrb.mxu3 %vm811_vm4, %v1515_v29  ;;  %v2559_v29 = vld [vmem:[%s3327_s7 + $0x1] ss:$0 sm:$0xff] }
 0xc27   : > { %v1553_v31 = vpop.permute.xlu0 %1552 }
 0xc28   : > { %1573 = vmatpush.msra.mxu2 %v1553_v31  ;;  %1656 = vmatpush.bf16.msra.mxu3 %v1647_v55 }
 0xc2a   : > { %1632 = vmatpush.msrb.mxu2 %v1553_v31 }
 0xc2b   : > { %2366 = vmatmul.msk.f32.vlgmr.msrb.gmra.mxu3 %vm811_vm4, %v1579_v32  ;;  %v2560_v32 = vld [vmem:[%s3328_s8 + $0x1] ss:$0 sm:$0xff]  ;;  %s647_s8 = scalar_lea.vmem [#allocation2], %s2139_s23 }
 0xc2c   : > { %s2073_s9 = sshll.u32 %s647_s8, 4  ;;  %s2074_s9 = int_to_ptr.vmem [resolvable:$true] %s2073_s9 }
 0xca6   : > { %v1538_v33 = vpop.f32.mrf.mxu3 }
 0xca7   : > { %v1539_v34 = vadd.f32 %v1538_v33, %v2900_v24 }
 0xca9   : > { %v1541_v35 = vsel %vm811_vm4, %v1539_v34, -inf }
 0xcaa   : > { %1542 = vmax.xlane.f32.xlu1 %v1541_v35 }
 0xcae   : > { %v1600_v36 = vpop.f32.mrf.mxu3 }
 0xcaf   : > { %v1601_v37 = vadd.f32 %v1600_v36, %v2900_v24  ;;  %v2327_v36 = vld [vmem:[%s3329_s30 + $0x8] sm:$0xff] }
 0xcb1   : > { %v1603_v38 = vsel %vm811_vm4, %v1601_v37, -inf }
 0xcb2   : > { %1604 = vmax.xlane.f32.xlu2 %v1603_v38 }
 0xd1d   : > { %v1543_v39 = vpop.xlane.xlu1 %1542 }
 0xd1e   : > { %v1544_v40 = vsub.f32 %v1539_v34, %v1543_v39 }
 0xd20   : > { %v1545_v41 = vmul.f32 1.442695, %v1544_v40 }
 0xd22   : > { %2591 = vpow2.f32 %v1545_v41 }
 0xd25   : > { %v1605_v42 = vpop.xlane.xlu2 %1604 }
 0xd26   : > { %v1606_v43 = vsub.f32 %v1601_v37, %v1605_v42  ;;  %v2561_v37 = vld [vmem:[%s3266_s10 + $0x1] ss:$0 sm:$0xff] }
 0xd28   : > { %v2592_v44 = vpop.eup %2591  ;;  %v1607_v45 = vmul.f32 1.442695, %v1606_v43 }
 0xd29   : > { %v1547_v46 = vsel %vm811_vm4, %v2592_v44, 0.0 }
 0xd2a   : > { %2593 = vpow2.f32 %v1607_v45  ;;  %1548 = vadd.xlane.f32.xlu1 %v1547_v46 }
 0xd30   : > { %v2594_v47 = vpop.eup %2593 }
 0xd31   : > { %v1609_v48 = vsel %vm811_vm4, %v2594_v47, 0.0 }
 0xd32   : > { %1610 = vadd.xlane.f32.xlu2 %v1609_v48 }
 0xd9d   : > { %v1549_v24 = vpop.xlane.xlu1 %1548 }
 0xd9e   : > { %2595 = vrcp.f32 %v1549_v24 }
 0xda4   : > { %v2596_v49 = vpop.eup %2595 }
 0xda5   : > { %v1551_v50 = vmul.f32 %v2596_v49, %v2592_v44  ;;  %v1611_v51 = vpop.xlane.xlu2 %1610  ;;  %v2329_v49 = vld [vmem:[%s3331_s1 + $0x18] sm:$0xff] }
 0xda6   : > { %2597 = vrcp.f32 %v1611_v51  ;;  %1869 = vmatpush.msrb.mxu3 %v2329_v49 }
 0xda7   : > { %2364 = vmatmul.msk.f32.vlgmr.msra.gmra.mxu2 %vm811_vm4, %v1551_v50  ;;  %v2328_v50 = vld [vmem:[%s3331_s1 + $0x10] sm:$0xff]  ;;  %s3336_s1 = sld [smem:[#allocation24_spill]] }
 0xda8   : > { %1777 = vmatpush.msra.mxu2 %v2327_v36  ;;  %1870 = vmatpush.msrb.mxu3 %v2328_v50 }
 0xdac   : > { %v2598_v52 = vpop.eup %2597 }
 0xdad   : > { %v1613_v53 = vmul.f32 %v2598_v52, %v2594_v47  ;;  %s2071_s6 = scalar_lea.hbm %s3336_s1, %s2448_s21  ;;  %s2634_s23 = scalar_lea.hbm %s3336_s1, 16 }
 0xdae   : > { %s2075_s3 = sshll.u32 %s2071_s6, 4  ;;  %s2076_s3 = int_to_ptr.hbm [resolvable:$true] %s2075_s3 }
 0xdaf   : > { %2367 = vmatmul.msk.f32.vlgmr.msrb.gmra.mxu2 %vm811_vm4, %v1613_v53  ;;  %s2628_s27 = sshra.s32 %s2076_s3, 4  ;;  %s2629_s27 = int_to_ptr.hbm [resolvable:$true] %s2628_s27 }
 0xdb0   : > { %1810 = vmatpush.msrb.mxu2 %v2329_v49  ;;  %s2630_s22 = scalar_lea.hbm %s2629_s27, 8  ;;  %p2635_p0 = scmp.lt.s32.totalorder %s2629_s27, %s3336_s1 }
 0xdb1   : > { %p2631_p11 = scmp.ne.s32.totalorder %s2629_s27, %s2630_s22  ;;  %p2636_p1 = scmp.lt.s32.totalorder %s2634_s23, %s2630_s22 }
 0xdb2   : > { %1811 = vmatpush.msrb.mxu2 %v2328_v50 }
 0xdb3   : > { %p2632_p12 = pnand %p2631_p11, %p2829_p5  ;;  %p2637_p2 = por %p2636_p1, %p2635_p0 }
 0xdb5   : > { %p2633_p13 = pneg %p2632_p12 }
 0xdb7   : > { %p2638_p3 = pnand %p2637_p2, %p2633_p13 }
 0xe2a   : > { %v1575_v56 = vpop.f32.mrf.mxu2 }
 0xe2b   : > { %v1578_v58 = vmul.f32 %v2887_v18, %v1575_v56 }
 0xe32   : > { %v1634_v57 = vpop.f32.mrf.mxu2 }
 0xe33   : > { %v1637_v59 = vmul.f32 %v2890_v19, %v1634_v57 }
 0xe35   : > { %v1638_v60 = vadd.f32 %v1637_v59, %v1578_v58 }
 0xe37   : > { %v1639_v61 = vpack.c.bf16 %v1638_v60, %v1638_v60 }
 0xe39   : > { %2368 = vmatmul.msk.bf16.vlgmr.msra.gmra.mxu3 %vm811_vm4, %v1639_v61 }
 0xebc   : > { %v1658_v63 = vpop.f32.mrf.mxu3 }
 0xebd   : > { %v1659_v1 = vadd.f32 %v2558_v62, %v1658_v63 }
 0xebf   : > { %v1662_v2 = vadd.f32 %v1659_v1, %v3070_v21 }
 0xec1   : > { %1663 = vadd.xlane.f32.xlu1 %v1662_v2 }
 0xec4   : > { %v1660_v3 = vpop.f32.mrf.mxu3 }
 0xec5   : > { %v2299_v3 = vld [vmem:[%s3267_s11 + $0x4] sm:$0xf] }
 0xec6   : > { %v1885_v4 = vsel %vm942_vm6, %v2299_v3, 0 }
 0xf34   : > { %v1664_v5 = vpop.xlane.xlu1 %1663 }
 0xf35   : > { %v1665_v6 = vmul.f32 0.125, %v1664_v5 }
 0xf37   : > { %v1666_v7 = vsub.f32 %v1662_v2, %v1665_v6 }
 0xf39   : > { %v1667_v8 = vmul.f32 %v2928_v0, %v1666_v7 }
 0xf3b   : > { %v1668_v9 = vmul.f32 %v1667_v8, %v1667_v8 }
 0xf3d   : > { %1669 = vadd.xlane.f32.xlu2 %v1668_v9 }
 0xfb0   : > { %v1670_v17 = vpop.xlane.xlu2 %1669 }
 0xfb1   : > { %v1671_v20 = vmul.f32 0.125, %v1670_v17 }
 0xfb3   : > { %v1672_v21 = vadd.f32 1e-05, %v1671_v20 }
 0xfb5   : > { %2599 = vrsqrt.f32 %v1672_v21  ;;  %vm1679_vm3 = vweird.f32 %v1672_v21 }
 0xfbb   : > { %v2600_v22 = vpop.eup %2599 }
 0xfbc   : > { %v1674_v23 = vmul.f32 %v2600_v22, %v1672_v21  ;;  %vm1680_vm2 = vweird.f32 %v2600_v22  ;;  %v2499_v21 = vld [vmem:[%s3271_s15 + $0x70] sm:$0xff] }
 0xfbd   : > { %vm1681_vm5 = vmor %vm1679_vm3, %vm1680_vm2 }
 0xfbe   : > { %v1675_v25 = vmul.f32 %v2600_v22, %v1674_v23  ;;  %v2497_v23 = vld [vmem:[%s3271_s15 + $0x60] sm:$0xff] }
 0xfc0   : > { %v1676_v26 = vmul.f32 0.5, %v1675_v25  ;;  %v2496_v25 = vld [vmem:[%s3271_s15 + $0x58] sm:$0xff] }
 0xfc2   : > { %v1677_v27 = vsub.f32 1.5, %v1676_v26  ;;  %v2495_v26 = vld [vmem:[%s3271_s15 + $0x50] sm:$0xff] }
 0xfc4   : > { %v1678_v28 = vmul.f32 %v2600_v22, %v1677_v27  ;;  %v2494_v27 = vld [vmem:[%s3271_s15 + $0x48] sm:$0xff] }
 0xfc6   : > { %v1682_v30 = vsel %vm1681_vm5, %v2600_v22, %v1678_v28  ;;  %v2498_v22 = vld [vmem:[%s3271_s15 + $0x68] sm:$0xff]  ;;  %v2493_v28 = vld [vmem:[%s3271_s15 + $0x40] sm:$0xff] }
 0xfc7   : > { %v1683_v31 = vmul.f32 %v1682_v30, %v1667_v8 }
 0xfc9   : > { %v1687_v33 = vmul.f32 %v2559_v29, %v1683_v31 }
 0xfcb   : > { %v3135_v34 = vadd.f32 %v2560_v32, %v1687_v33 }
 0xfcd   : > { %v1692_v35 = vpack.c.bf16 %v3135_v34, %v3135_v34 }
 0xfcf   : > { %1752 = vmatmul.bf16.vlgmr.msra.gmra.mxu0 %v1692_v35 }
0x104c   : > { %v1753_v38 = vpop.f32.mrf.mxu0 }
0x104d   : > { %v1754_v39 = vadd.f32 %v2561_v37, %v1753_v38  ;;  %v2563_v38 = vld [vmem:[%s3269_s13 + $0x1] ss:$0 sm:$0xff] }
0x104f   : > { %v1757_v40 = vmul.f32 0.5, %v1754_v39 }
0x1051   : > { %v1758_v41 = vmul.f32 %v2887_v18, %v1757_v40  ;;  %v1817_v54 = vmul.f32 %v2890_v19, %v1757_v40 }
0x1053   : > { %2401 = vmatmul.msk.f32.vlgmr.msra.gmra.mxu2 %vm811_vm4, %v1758_v41  ;;  %v2564_v41 = vld [vmem:[%s3270_s14 + $0x1] ss:$0 sm:$0xff] }
0x1054   : > { %v1755_v42 = vpop.f32.mrf.mxu0  ;;  %1836 = vmatpush.msra.mxu2 %v2327_v36 }
0x10d6   : > { %v1779_v43 = vpop.f32.mrf.mxu2 }
0x10d7   : > { %v1782_v44 = vsel %vm1079_vm10, %v1779_v43, -inf }
0x10d8   : > { %1783 = vmax.xlane.f32.xlu0 %v1782_v44 }
0x114b   : > { %v1784_v45 = vpop.xlane.xlu0 %1783 }
0x114c   : > { %v1785_v46 = vsub.f32 %v1779_v43, %v1784_v45  ;;  %v2502_v45 = vld [vmem:[%s3273_s17 + $0x18] sm:$0xff] }
0x114d   : > { %2021 = vmatpush.bf16.msra.mxu3 %v2502_v45 }
0x114e   : > { %v1786_v47 = vmul.f32 1.442695, %v1785_v46  ;;  %v2501_v46 = vld [vmem:[%s3273_s17 + $0x10] sm:$0xff] }
0x1150   : > { %2601 = vpow2.f32 %v1786_v47  ;;  %v2565_v47 = vld [vmem:[%s3272_s16 + $0x1] ss:$0 sm:$0xff] }
0x1151   : > { %2022 = vmatpush.bf16.msra.mxu3 %v2501_v46 }
0x1156   : > { %v2602_v48 = vpop.eup %2601 }
0x1157   : > { %v1788_v24 = vsel %vm1079_vm10, %v2602_v48, 0.0 }
0x1158   : > { %1789 = vadd.xlane.f32.xlu1 %v1788_v24 }
0x11cb   : > { %v1790_v51 = vpop.xlane.xlu1 %1789 }
0x11cc   : > { %2603 = vrcp.f32 %v1790_v51 }
0x11d2   : > { %v2604_v52 = vpop.eup %2603 }
0x11d3   : > { %v1792_v53 = vmul.f32 %v2604_v52, %v2602_v48  ;;  %v2566_v52 = vld [vmem:[%s3274_s18 + $0x1] ss:$0 sm:$0xff] }
0x11d5   : > { %2402 = vmatmul.msk.f32.vlgmr.msrb.gmra.mxu2 %vm1079_vm10, %v1792_v53 }
0x11d6   : > { %1894 = vmatpush.bf16.msrb.mxu2 %v1885_v4 }
0x11dd   : > { %2403 = vmatmul.msk.f32.vlgmr.msra.gmra.mxu2 %vm811_vm4, %v1817_v54 }
0x1258   : > { %v1813_v55 = vpop.f32.mrf.mxu2 }
0x1259   : > { %v1816_v6 = vmul.f32 %v2887_v18, %v1813_v55  ;;  %v2500_v18 = vld [vmem:[%s3271_s15 + $0x78] sm:$0xff] }
0x125a   : > { %1982 = vmatpush.bf16.msrb.mxu1 %v2500_v18 }
0x125e   : > { %1983 = vmatpush.bf16.msrb.mxu1 %v2499_v21 }
0x1260   : > { %v1838_v56 = vpop.f32.mrf.mxu2 }
0x1261   : > { %v1841_v57 = vsel %vm1079_vm10, %v1838_v56, -inf }
0x1262   : > { %1842 = vmax.xlane.f32.xlu2 %v1841_v57  ;;  %1984 = vmatpush.bf16.msrb.mxu1 %v2498_v22 }
0x1266   : > { %1985 = vmatpush.bf16.msrb.mxu1 %v2497_v23 }
0x126a   : > { %1986 = vmatpush.bf16.msrb.mxu1 %v2496_v25 }
0x126e   : > { %1987 = vmatpush.bf16.msrb.mxu1 %v2495_v26 }
0x1272   : > { %1988 = vmatpush.bf16.msrb.mxu1 %v2494_v27 }
0x1276   : > { %1989 = vmatpush.bf16.msrb.mxu1 %v2493_v28 }
0x12d5   : > { %v1843_v58 = vpop.xlane.xlu2 %1842 }
0x12d6   : > { %v1844_v59 = vsub.f32 %v1838_v56, %v1843_v58 }
0x12d8   : > { %v1845_v60 = vmul.f32 1.442695, %v1844_v59 }
0x12da   : > { %2605 = vpow2.f32 %v1845_v60 }
0x12e0   : > { %v2606_v61 = vpop.eup %2605 }
0x12e1   : > { %v1847_v62 = vsel %vm1079_vm10, %v2606_v61, 0.0 }
0x12e2   : > { %1848 = vadd.xlane.f32.xlu1 %v1847_v62 }
0x1355   : > { %v1849_v63 = vpop.xlane.xlu1 %1848 }
0x1356   : > { %2607 = vrcp.f32 %v1849_v63 }
0x135c   : > { %v2608_v1 = vpop.eup %2607 }
0x135d   : > { %v1851_v2 = vmul.f32 %v2608_v1, %v2606_v61 }
0x135f   : > { %2404 = vmatmul.msk.f32.vlgmr.msrb.gmra.mxu3 %vm1079_vm10, %v1851_v2 }
0x13e2   : > { %v1872_v5 = vpop.f32.mrf.mxu3 }
0x13e3   : > { %v1875_v7 = vmul.f32 %v2890_v19, %v1872_v5 }
0x13e5   : > { %v1876_v8 = vadd.f32 %v1875_v7, %v1816_v6 }
0x13e7   : > { %v1877_v9 = vpack.c.bf16 %v1876_v8, %v1876_v8 }
0x13e9   : > { %2405 = vmatmul.msk.bf16.vlgmr.msrb.gmra.mxu2 %vm811_vm4, %v1877_v9 }
0x146c   : > { %v1896_v11 = vpop.f32.mrf.mxu2 }
0x146d   : > { %v1897_v12 = vadd.f32 %v2562_v10, %v1896_v11  ;;  %v2568_v10 = vld [vmem:[%s3276_s20 + $0x1] ss:$0 sm:$0xff] }
0x146f   : > { %v1900_v13 = vadd.f32 %v1897_v12, %v3135_v34 }
0x1471   : > { %1901 = vadd.xlane.f32.xlu2 %v1900_v13 }
0x1474   : > { %v1898_v14 = vpop.f32.mrf.mxu2 }
0x14e4   : > { %v1902_v19 = vpop.xlane.xlu2 %1901 }
0x14e5   : > { %v1903_v15 = vmul.f32 0.125, %v1902_v19 }
0x14e7   : > { %v1904_v16 = vsub.f32 %v1900_v13, %v1903_v15  ;;  %v2613_v13 = vld [vmem:[%s3335_s26] sm:$0xff] }
0x14e9   : > { %v1905_v17 = vmul.f32 %v2928_v0, %v1904_v16 }
0x14eb   : > { %v1906_v20 = vmul.f32 %v1905_v17, %v1905_v17 }
0x14ed   : > { %1907 = vadd.xlane.f32.xlu1 %v1906_v20 }
0x1560   : > { %v1908_v29 = vpop.xlane.xlu1 %1907 }
0x1561   : > { %v1909_v30 = vmul.f32 0.125, %v1908_v29 }
0x1563   : > { %v1910_v31 = vadd.f32 1e-05, %v1909_v30 }
0x1565   : > { %2609 = vrsqrt.f32 %v1910_v31  ;;  %vm1917_vm6 = vweird.f32 %v1910_v31 }
0x156b   : > { %v2610_v32 = vpop.eup %2609 }
0x156c   : > { %v1912_v33 = vmul.f32 %v2610_v32, %v1910_v31  ;;  %vm1918_vm4 = vweird.f32 %v2610_v32 }
0x156d   : > { %vm1919_vm7 = vmor %vm1917_vm6, %vm1918_vm4 }
0x156e   : > { %v1913_v34 = vmul.f32 %v2610_v32, %v1912_v33 }
0x1570   : > { %v1914_v35 = vmul.f32 0.5, %v1913_v34 }
0x1572   : > { %v1915_v36 = vsub.f32 1.5, %v1914_v35 }
0x1574   : > { %v1916_v37 = vmul.f32 %v2610_v32, %v1915_v36 }
0x1576   : > { %v1920_v39 = vsel %vm1919_vm7, %v2610_v32, %v1916_v37 }
0x1577   : > { %v1921_v40 = vmul.f32 %v1920_v39, %v1905_v17 }
0x1579   : > { %v1925_v42 = vmul.f32 %v2563_v38, %v1921_v40 }
0x157b   : > { %v1929_v43 = vadd.f32 %v2564_v41, %v1925_v42 }
0x157d   : > { %v1930_v44 = vpack.c.bf16 %v1929_v43, %v1929_v43 }
0x157f   : > { %1990 = vmatmul.bf16.vlgmr.msrb.gmra.mxu1 %v1930_v44 }
0x15fc   : > { %v1991_v48 = vpop.f32.mrf.mxu1 }
0x15fd   : > { %v1992_v24 = vadd.f32 %v2565_v47, %v1991_v48 }
0x15ff   : > { %v1995_v49 = vmax.f32 %v1992_v24, 0.0 }
0x1601   : > { %v1996_v50 = vpack.c.bf16 %v1995_v49, %v1995_v49 }
0x1603   : > { %2446 = vmatmul.msk.bf16.vlgmr.msra.gmra.mxu3 %vm1310_vm14, %v1996_v50 }
0x1604   : > { %v1993_v51 = vpop.f32.mrf.mxu1 }
0x1686   : > { %v2024_v53 = vpop.f32.mrf.mxu3 }
0x1687   : > { %v2025_v54 = vadd.f32 %v2566_v52, %v2024_v53 }
0x1689   : > { %v2028_v55 = vadd.f32 %v2025_v54, %v1929_v43 }
0x168b   : > { %2029 = vadd.xlane.f32.xlu2 %v2028_v55 }
0x168e   : > { %v2026_v56 = vpop.f32.mrf.mxu3 }
0x16fe   : > { %v2030_v57 = vpop.xlane.xlu2 %2029 }
0x16ff   : > { %v2031_v58 = vmul.f32 0.125, %v2030_v57 }
0x1701   : > { %v2032_v59 = vsub.f32 %v2028_v55, %v2031_v58 }
0x1703   : > { %v2033_v60 = vmul.f32 %v2928_v0, %v2032_v59  ;;  %v2567_v0 = vld [vmem:[%s3275_s19 + $0x1] ss:$0 sm:$0xff] }
0x1705   : > { %v2034_v61 = vmul.f32 %v2033_v60, %v2033_v60 }
0x1707   : > { %2035 = vadd.xlane.f32.xlu1 %v2034_v61 }
0x177a   : > { %v2036_v62 = vpop.xlane.xlu1 %2035 }
0x177b   : > { %v2037_v63 = vmul.f32 0.125, %v2036_v62 }
0x177d   : > { %v2038_v1 = vadd.f32 1e-05, %v2037_v63 }
0x177f   : > { %2611 = vrsqrt.f32 %v2038_v1  ;;  %vm2045_vm9 = vweird.f32 %v2038_v1 }
0x1785   : > { %v2612_v2 = vpop.eup %2611 }
0x1786   : > { %v2040_v3 = vmul.f32 %v2612_v2, %v2038_v1  ;;  %vm2046_vm8 = vweird.f32 %v2612_v2 }
0x1787   : > { %vm2047_vm10 = vmor %vm2045_vm9, %vm2046_vm8 }
0x1788   : > { %v2041_v4 = vmul.f32 %v2612_v2, %v2040_v3 }
0x178a   : > { %v2042_v5 = vmul.f32 0.5, %v2041_v4 }
0x178c   : > { %v2043_v6 = vsub.f32 1.5, %v2042_v5 }
0x178e   : > { %v2044_v7 = vmul.f32 %v2612_v2, %v2043_v6 }
0x1790   : > { %v2048_v8 = vsel %vm2047_vm10, %v2612_v2, %v2044_v7 }
0x1791   : > { %v2049_v9 = vmul.f32 %v2048_v8, %v2033_v60 }
0x1793   : > { %v2053_v11 = vmul.f32 %v2567_v0, %v2049_v9 }
0x1795   : > { %v2057_v12 = vadd.f32 %v2568_v10, %v2053_v11 }
0x1797   : > { %v2058_v14 = vadd.f32 %v2613_v13, %v2057_v12 }
0x1799   : > { %2059 = vst [vmem:[%s647_s8] sm:$0xff] %v2058_v14 }
0x179a   : > { %2641 = shalt.err (!%p2638_p3)
}
0x179b   : > { %2503 = dma.vmem_to_hbm [thread:$0]  (%p2829_p5), %s2074_s9, 128, %s2076_s3, %s2061_s2  }
0x179c PF: > { %s3338_s8 = sld [smem:[#allocation7_spill]] }
0x179d   : > { %s3339_s5 = sld [smem:[#allocation5_spill]] }
0x17a2   : > { %p2509_p4 = scmp.ge.s32.totalorder %s3338_s8, 2 }
0x17a3   : > { %s2087_s4 = sand.u32 1, %s3339_s5  }
0x17a4   : > { %p2506_p7 = pnand %p2509_p4, %p2833_p6  ;;  %s2088_s0 = scalar_lea.sflag [#allocation3], %s2087_s4 }
0x17a6   : > { %p2507_p8 = pneg %p2506_p7 }
0x17a8   : > { %2659 = dma.done.wait (%p2507_p8), %s2088_s0, 128  }
0x17a9   : > { %2661 = vsyncadd (%p2507_p8), %s2088_s0, 4294967168  ;;  %s3341_s27 = sld [smem:[#allocation9_spill]]  ;;  %s3344_s2 = smov %s2668_s25 }
0x17aa   : > { %s3342_s22 = sld [smem:[#allocation6_spill]] }
0x17ab   : > { %s3343_s26 = sld [smem:[#allocation10_spill]] }
0x17af   : > { %p31_p9 = scmp.ge.s32.totalorder %s3341_s27, 4  }
0x17b0   : > { %s3345_s25 = smov %s3342_s22 }
0x17b1   :  { %33 = sbr.rel (!%p31_p9) target bundleno = 15 (0xf), region = 159 }
0x17b6   :  { %2094 = vsyncpa [#allocation3], 1 }
0x17b7   :  { %2096 = vsyncpa [#allocation3 + $0x1], 1 }

</bundles_post_ra>
